<compile_context>
chip_gen: v7x
topology: tpu7x:2x2x1
jax: 0.10.0
libtpu: 0.0.40
codegen_flags: <defaults>
</compile_context>

<pallas_src>
import functools
import numpy as np
import jax
import jax.numpy as jnp
from jax.experimental import pallas as pl
from jax.experimental.pallas import tpu as pltpu

BN_EPS = 1e-5
NEG_INF = -1e30


# --------------------------- kernel 1: per-graph ---------------------------
# GIN local model + masked multi-head attention, one graph per grid step.
# Also emits masked per-graph (sum, sumsq) partials for the two BatchNorms.
def gps_local_attn_kernel(num_heads, dh_pad,
                          h_ref, adj_ref, kmask_ref, rmask_ref,
                          gw1_ref, gb1_ref, gw2_ref, gb2_ref,
                          wqkv_ref, bqkv_ref, wo_ref, bo_ref,
                          yloc_ref, yatt_ref, stat_ref,
                          qkv_sc, acc_sc):
    bf16 = jnp.bfloat16
    h = h_ref[...]                                   # [MAXN_P, HID_P] f32
    maxn, hidp = h.shape
    hb = h.astype(bf16)
    rmask = rmask_ref[...]                           # [MAXN_P, 1] f32 (1 = real)

    def mm(a, b):                                    # bf16 x bf16 -> f32 acc
        return jnp.dot(a, b, preferred_element_type=jnp.float32)

    # ---- local model: GINConv('sum', eps=0) with MLP(Linear, ReLU, Linear) ----
    agg = mm(adj_ref[...], hb)                       # adj block is bf16 (0/1 exact)
    gin_in = (h + agg).astype(bf16)                  # (1+eps)*h + sum, eps=0
    t = jnp.maximum(mm(gin_in, gw1_ref[...]) + gb1_ref[...], 0.0)
    y_loc = h + (mm(t.astype(bf16), gw2_ref[...]) + gb2_ref[...])
    yloc_ref[...] = y_loc.astype(yloc_ref.dtype)     # lane-dense bf16 store
    yl_m = y_loc * rmask                             # masked BN partials (f32)
    s_l = jnp.sum(yl_m, axis=0, keepdims=True)
    ss_l = jnp.sum(yl_m * y_loc, axis=0, keepdims=True)

    # ---- global attention within this graph (key-padding mask) ----
    # 1/sqrt(dh) already folded into Wq / bq in the wrapper.
    qkv = mm(hb, wqkv_ref[...]) + bqkv_ref[...]      # fused QKV, [MAXN_P, 3*HID_P]
    qkv_sc[...] = qkv.astype(bf16)                   # bf16 QKV in VMEM scratch
    key_ok = kmask_ref[...] > 0.0                    # [1, MAXN_P] bool
    acc_sc[...] = jnp.zeros_like(acc_sc)             # f32 accumulator in VMEM

    for head in range(num_heads):                    # static loop over heads
        lo = head * dh_pad
        qh = qkv_sc[:, lo:lo + dh_pad]                           # [MAXN_P, dh_p]
        kh = qkv_sc[:, hidp + lo:hidp + lo + dh_pad]
        vh = qkv_sc[:, 2 * hidp + lo:2 * hidp + lo + dh_pad]
        # q @ k^T without materializing a transpose (contract last dims).
        s = jax.lax.dot_general(qh, kh, (((1,), (1,)), ((), ())),
                                preferred_element_type=jnp.float32)
        s = jnp.where(key_ok, s, NEG_INF)            # key-padding mask
        m = jnp.max(s, axis=-1, keepdims=True)
        p = jnp.exp(s - m)                           # f32 softmax numerator
        inv = pl.reciprocal(jnp.sum(p, axis=-1, keepdims=True), approx=True)
        ctx = mm(p.astype(bf16), vh) * inv           # [MAXN_P, dh_p] f32
        # fold this head's output projection straight into the accumulator
        # (wo is pre-cast bf16; row slice is sublane-aligned).
        acc_sc[...] += mm(ctx.astype(bf16), wo_ref[lo:lo + dh_pad, :])

    y_att = h_ref[...] + acc_sc[...] + bo_ref[...]   # dropout(p=0) + residual
    yatt_ref[...] = y_att.astype(yatt_ref.dtype)
    ya_m = y_att * rmask
    s_a = jnp.sum(ya_m, axis=0, keepdims=True)
    ss_a = jnp.sum(ya_m * y_att, axis=0, keepdims=True)
    stat_ref[...] = jnp.concatenate(
        [s_l, ss_l, s_a, ss_a, jnp.zeros((4, hidp), jnp.float32)], axis=0)


# --------------------- kernel 2: row-tiled BN + FFN ------------------------
# Applies the two BatchNorms (as precomputed scale/shift), the FFN with
# residual, and emits masked per-tile (sum, sumsq) partials for the final BN.
def gps_bn_ffn_kernel(yloc_ref, yatt_ref, rmask_ref,
                      sl_ref, tl_ref, sa_ref, ta_ref,
                      fw1_ref, fb1_ref, fw2_ref, fb2_ref,
                      hc_ref, stat_ref):
    bf16 = jnp.bfloat16
    hl = yloc_ref[...].astype(jnp.float32) * sl_ref[...] + tl_ref[...]
    ha = yatt_ref[...].astype(jnp.float32) * sa_ref[...] + ta_ref[...]
    hc = hl + ha
    f = jnp.maximum(
        jnp.dot(hc.astype(bf16), fw1_ref[...],
                preferred_element_type=jnp.float32) + fb1_ref[...], 0.0)
    hc = hc + jnp.dot(f.astype(bf16), fw2_ref[...],
                      preferred_element_type=jnp.float32) + fb2_ref[...]
    hc_ref[...] = hc.astype(hc_ref.dtype)
    hcm = hc * rmask_ref[...]
    s1 = jnp.sum(hcm, axis=0, keepdims=True)
    s2 = jnp.sum(hcm * hc, axis=0, keepdims=True)
    stat_ref[...] = jnp.concatenate(
        [s1, s2, jnp.zeros((6, hc.shape[1]), jnp.float32)], axis=0)


# --------------------- kernel 3: row-tiled final BN ------------------------
def gps_affine_kernel(x_ref, s_ref, t_ref, o_ref):
    o_ref[...] = x_ref[...].astype(jnp.float32) * s_ref[...] + t_ref[...]


# ------------------------------ helpers ------------------------------------
def _round_up(x, m):
    return ((x + m - 1) // m) * m


def _nbytes(shape, dtype):
    return int(np.prod(shape)) * int(np.dtype(dtype).itemsize)


def _vmem_capacity_bytes():
    try:
        return int(pltpu.get_tpu_info().vmem_capacity_bytes)
    except Exception:
        return 64 * 1024 * 1024          # conservative (v7x per-TensorCore)


def _vmem_limit_bytes(block_bytes):
    cap = _vmem_capacity_bytes()
    usable = cap - cap // 4              # leave pipeline/compiler headroom
    want = 2 * block_bytes + (4 << 20)   # double-buffered blocks + margin
    return int(max(min(want, usable), 16 << 20))


def _pad2(w, rows, cols, dtype=jnp.float32):
    out = jnp.zeros((rows, cols), dtype)
    return out.at[:w.shape[0], :w.shape[1]].set(w.astype(dtype))


# ------------------------------ wrapper -------------------------------------
def graphgps_forward(h, graph_meta, params, num_heads):
    adj_dense, kmask, rmask_dense, node_idx, B, MAXN_P = graph_meta
    n_nodes, hid = h.shape
    (gw1, gb1, gw2, gb2, wq, bq, wk, bk, wv, bv, wo, bo,
     fw1, fb1, fw2, fb2, gl, bl, ga, ba, go, bo2) = params
    f32, bf16 = jnp.float32, jnp.bfloat16

    hid_p = _round_up(hid, 128)
    ffn_p = _round_up(2 * hid, 128)
    assert hid % num_heads == 0 and hid_p % num_heads == 0
    dh = hid // num_heads
    dh_p = hid_p // num_heads
    scale = 1.0 / float(np.sqrt(dh))     # softmax scale uses the *real* dh

    # --- head-aware zero padding of the attention weights (math-preserving) ---
    def head_pack_in(w, b, col_scale):
        wp = jnp.zeros((hid_p, hid_p), f32)
        bp = jnp.zeros((1, hid_p), f32)
        for hh in range(num_heads):
            wp = wp.at[:hid, hh * dh_p:hh * dh_p + dh].set(
                w[:, hh * dh:(hh + 1) * dh] * col_scale)
            bp = bp.at[:, hh * dh_p:hh * dh_p + dh].set(
                b[:, hh * dh:(hh + 1) * dh] * col_scale)
        return wp, bp

    wq_p, bq_p = head_pack_in(wq, bq, scale)     # fold 1/sqrt(dh) into q
    wk_p, bk_p = head_pack_in(wk, bk, 1.0)
    wv_p, bv_p = head_pack_in(wv, bv, 1.0)
    wo_p = jnp.zeros((hid_p, hid_p), f32)
    for hh in range(num_heads):
        wo_p = wo_p.at[hh * dh_p:hh * dh_p + dh, :hid].set(
            wo[hh * dh:(hh + 1) * dh, :])
    wqkv = jnp.concatenate([wq_p, wk_p, wv_p], axis=1).astype(bf16)  # [H_p,3H_p]
    bqkv = jnp.concatenate([bq_p, bk_p, bv_p], axis=1)               # [1,3H_p]
    wo_pb = wo_p.astype(bf16)                                        # pre-cast
    bo_p = _pad2(bo, 1, hid_p)

    gw1_p = _pad2(gw1, hid_p, hid_p).astype(bf16)
    gb1_p = _pad2(gb1, 1, hid_p)
    gw2_p = _pad2(gw2, hid_p, hid_p).astype(bf16)
    gb2_p = _pad2(gb2, 1, hid_p)
    fw1_p = _pad2(fw1, hid_p, ffn_p).astype(bf16)
    fb1_p = _pad2(fb1, 1, ffn_p)
    fw2_p = _pad2(fw2, ffn_p, hid_p).astype(bf16)
    fb2_p = _pad2(fb2, 1, hid_p)
    # padded BN gammas/betas are zero -> padded feature columns stay exactly 0
    gl_p, bl_p = _pad2(gl, 1, hid_p), _pad2(bl, 1, hid_p)
    ga_p, ba_p = _pad2(ga, 1, hid_p), _pad2(ba, 1, hid_p)
    go_p, bo2_p = _pad2(go, 1, hid_p), _pad2(bo2, 1, hid_p)

    # dense-batch scatter (same role as to_dense_batch in the PyTorch spec)
    h_pad = jnp.zeros((n_nodes, hid_p), f32).at[:, :hid].set(h)
    h_dense = jnp.zeros((B * MAXN_P, hid_p), f32).at[node_idx].set(h_pad)
    h_dense = h_dense.reshape(B, MAXN_P, hid_p)

    # ------------------------------ kernel 1 ------------------------------
    k1_inputs = (h_dense, adj_dense, kmask, rmask_dense,
                 gw1_p, gb1_p, gw2_p, gb2_p, wqkv, bqkv, wo_pb, bo_p)
    in_specs1 = [
        pl.BlockSpec((None, MAXN_P, hid_p), lambda b: (b, 0, 0)),
        pl.BlockSpec((None, MAXN_P, MAXN_P), lambda b: (b, 0, 0)),
        pl.BlockSpec((None, 1, MAXN_P), lambda b: (b, 0, 0)),
        pl.BlockSpec((None, MAXN_P, 1), lambda b: (b, 0, 0)),
    ] + [pl.BlockSpec(x.shape, lambda b: (0, 0)) for x in k1_inputs[4:]]
    out_specs1 = [
        pl.BlockSpec((None, MAXN_P, hid_p), lambda b: (b, 0, 0)),
        pl.BlockSpec((None, MAXN_P, hid_p), lambda b: (b, 0, 0)),
        pl.BlockSpec((None, 8, hid_p), lambda b: (b, 0, 0)),
    ]
    out_shapes1 = [
        jax.ShapeDtypeStruct((B, MAXN_P, hid_p), bf16),
        jax.ShapeDtypeStruct((B, MAXN_P, hid_p), bf16),
        jax.ShapeDtypeStruct((B, 8, hid_p), f32),
    ]
    k1_block_bytes = (
        _nbytes((MAXN_P, hid_p), f32) + _nbytes((MAXN_P, MAXN_P), bf16)
        + _nbytes((1, MAXN_P), f32) + _nbytes((MAXN_P, 1), f32)
        + sum(_nbytes(x.shape, x.dtype) for x in k1_inputs[4:])
        + 2 * _nbytes((MAXN_P, hid_p), bf16) + _nbytes((8, hid_p), f32)
        + _nbytes((MAXN_P, 3 * hid_p), bf16) + _nbytes((MAXN_P, hid_p), f32))
    flops1 = B * (2 * MAXN_P * MAXN_P * hid_p        # GIN aggregation
                  + 4 * MAXN_P * hid_p * hid_p       # GIN MLP
                  + 6 * MAXN_P * hid_p * hid_p       # fused QKV projection
                  + 4 * MAXN_P * MAXN_P * hid_p      # Q@K^T and P@V
                  + 2 * MAXN_P * hid_p * hid_p)      # output projection
    cost1 = pl.CostEstimate(
        flops=int(flops1),
        transcendentals=int(B * num_heads * MAXN_P * MAXN_P),
        bytes_accessed=int(sum(_nbytes(x.shape, x.dtype) for x in k1_inputs)
                           + sum(_nbytes(s.shape, s.dtype) for s in out_shapes1)))

    y_loc_d, y_att_d, stats1 = pl.pallas_call(
        functools.partial(gps_local_attn_kernel, num_heads, dh_p),
        grid=(B,),
        in_specs=in_specs1,
        out_specs=out_specs1,
        out_shape=out_shapes1,
        scratch_shapes=[pltpu.VMEM((MAXN_P, 3 * hid_p), bf16),
                        pltpu.VMEM((MAXN_P, hid_p), f32)],
        compiler_params=pltpu.CompilerParams(
            dimension_semantics=("parallel",),
            vmem_limit_bytes=_vmem_limit_bytes(k1_block_bytes)),
        cost_estimate=cost1,
    )(*k1_inputs)

    # tiny O(hid) reductions: fold batch stats into per-feature scale/shift
    inv_n = 1.0 / float(n_nodes)
    st = jnp.sum(stats1, axis=0)                     # [8, hid_p]
    mean_l = st[0:1] * inv_n
    var_l = jnp.maximum(st[1:2] * inv_n - mean_l * mean_l, 0.0)
    scale_l = gl_p * jax.lax.rsqrt(var_l + BN_EPS)
    shift_l = bl_p - mean_l * scale_l
    mean_a = st[2:3] * inv_n
    var_a = jnp.maximum(st[3:4] * inv_n - mean_a * mean_a, 0.0)
    scale_a = ga_p * jax.lax.rsqrt(var_a + BN_EPS)
    shift_a = ba_p - mean_a * scale_a

    # ------------------------------ kernel 2 ------------------------------
    R = B * MAXN_P
    for TM in (512, 256, 128):
        if R % TM == 0:
            break
    n_tiles = R // TM
    yloc_flat = y_loc_d.reshape(R, hid_p)
    yatt_flat = y_att_d.reshape(R, hid_p)
    rmask_flat = rmask_dense.reshape(R, 1)

    k2_inputs = (yloc_flat, yatt_flat, rmask_flat,
                 scale_l, shift_l, scale_a, shift_a,
                 fw1_p, fb1_p, fw2_p, fb2_p)
    in_specs2 = [
        pl.BlockSpec((TM, hid_p), lambda t: (t, 0)),
        pl.BlockSpec((TM, hid_p), lambda t: (t, 0)),
        pl.BlockSpec((TM, 1), lambda t: (t, 0)),
    ] + [pl.BlockSpec(x.shape, lambda t: (0, 0)) for x in k2_inputs[3:]]
    out_specs2 = [
        pl.BlockSpec((TM, hid_p), lambda t: (t, 0)),
        pl.BlockSpec((None, 8, hid_p), lambda t: (t, 0, 0)),
    ]
    k2_block_bytes = (
        2 * _nbytes((TM, hid_p), bf16) + _nbytes((TM, 1), f32)
        + sum(_nbytes(x.shape, x.dtype) for x in k2_inputs[3:])
        + _nbytes((TM, hid_p), bf16) + _nbytes((8, hid_p), f32)
        + _nbytes((TM, ffn_p), f32))                 # FFN intermediate headroom

    hc_flat, stats2 = pl.pallas_call(
        gps_bn_ffn_kernel,
        grid=(n_tiles,),
        in_specs=in_specs2,
        out_specs=out_specs2,
        out_shape=[jax.ShapeDtypeStruct((R, hid_p), bf16),
                   jax.ShapeDtypeStruct((n_tiles, 8, hid_p), f32)],
        compiler_params=pltpu.CompilerParams(
            dimension_semantics=("parallel",),
            vmem_limit_bytes=_vmem_limit_bytes(k2_block_bytes)),
    )(*k2_inputs)

    st2 = jnp.sum(stats2, axis=0)
    mean_o = st2[0:1] * inv_n
    var_o = jnp.maximum(st2[1:2] * inv_n - mean_o * mean_o, 0.0)
    scale_o = go_p * jax.lax.rsqrt(var_o + BN_EPS)
    shift_o = bo2_p - mean_o * scale_o

    # ------------------------------ kernel 3 ------------------------------
    k3_block_bytes = (_nbytes((TM, hid_p), bf16) + 2 * _nbytes((1, hid_p), f32)
                      + _nbytes((TM, hid_p), f32))
    out_flat = pl.pallas_call(
        gps_affine_kernel,
        grid=(n_tiles,),
        in_specs=[pl.BlockSpec((TM, hid_p), lambda t: (t, 0)),
                  pl.BlockSpec((1, hid_p), lambda t: (0, 0)),
                  pl.BlockSpec((1, hid_p), lambda t: (0, 0))],
        out_specs=pl.BlockSpec((TM, hid_p), lambda t: (t, 0)),
        out_shape=jax.ShapeDtypeStruct((R, hid_p), f32),
        compiler_params=pltpu.CompilerParams(
            dimension_semantics=("parallel",),
            vmem_limit_bytes=_vmem_limit_bytes(k3_block_bytes)),
    )(hc_flat, scale_o, shift_o)

    # inverse of to_dense_batch: keep only real nodes / real feature columns
    # TODO(synk): fold this gather (and the scatter above) into the kernels via
    # PrefetchScalarGridSpec so padded rows never round-trip HBM for large N.
    return out_flat[node_idx][:, :hid]


# ------------------------- glue / setup (plain JAX) -------------------------
def make_graph(graph_nodes, lane=128):
    """Ring graphs -> lane-padded per-graph adjacency, masks, bookkeeping."""
    B = len(graph_nodes)
    MAXN_P = _round_up(int(max(graph_nodes)), lane)
    N = int(sum(graph_nodes))
    adj_dense = np.zeros((B, MAXN_P, MAXN_P), np.float32)
    kmask = np.zeros((B, 1, MAXN_P), np.float32)
    rmask = np.zeros((B, MAXN_P, 1), np.float32)
    node_idx = []
    adj_full = np.zeros((N, N), np.float32)          # reference only
    sg_full = np.zeros((N, N), np.float32)           # reference only
    off = 0
    for b, n in enumerate(graph_nodes):
        kmask[b, 0, :n] = 1.0
        rmask[b, :n, 0] = 1.0
        node_idx.extend(range(b * MAXN_P, b * MAXN_P + n))
        sg_full[off:off + n, off:off + n] = 1.0
        for i in range(n):
            j = (i + 1) % n
            adj_dense[b, i, j] = 1.0
            adj_dense[b, j, i] = 1.0
            adj_full[off + i, off + j] = 1.0
            adj_full[off + j, off + i] = 1.0
        off += n
    meta = (jnp.asarray(adj_dense, jnp.bfloat16),    # 0/1 exact in bf16
            jnp.asarray(kmask),
            jnp.asarray(rmask),
            jnp.asarray(np.asarray(node_idx, np.int32)),
            B, MAXN_P)
    return meta, jnp.asarray(adj_full), jnp.asarray(sg_full)


def init_params(key, hid):
    keys = jax.random.split(key, 22)

    def w(k, shape, scale=0.2):
        return jax.random.normal(k, shape, jnp.float32) * scale

    return (
        w(keys[0], (hid, hid)), w(keys[1], (1, hid)),            # GIN Linear 1
        w(keys[2], (hid, hid)), w(keys[3], (1, hid)),            # GIN Linear 2
        w(keys[4], (hid, hid)), w(keys[5], (1, hid)),            # Wq, bq
        w(keys[6], (hid, hid)), w(keys[7], (1, hid)),            # Wk, bk
        w(keys[8], (hid, hid)), w(keys[9], (1, hid)),            # Wv, bv
        w(keys[10], (hid, hid)), w(keys[11], (1, hid)),          # out_proj
        w(keys[12], (hid, 2 * hid)), w(keys[13], (1, 2 * hid)),  # FFN1
        w(keys[14], (2 * hid, hid)), w(keys[15], (1, hid)),      # FFN2
        1.0 + w(keys[16], (1, hid), 0.1), w(keys[17], (1, hid), 0.1),  # BN local
        1.0 + w(keys[18], (1, hid), 0.1), w(keys[19], (1, hid), 0.1),  # BN attn
        1.0 + w(keys[20], (1, hid), 0.1), w(keys[21], (1, hid), 0.1),  # BN out
    )


def reference(h, adj, sg, params, num_heads):
    (gw1, gb1, gw2, gb2, wq, bq, wk, bk, wv, bv, wo, bo,
     fw1, fb1, fw2, fb2, gl, bl, ga, ba, go, bo2) = params

    def bn(x, g, b):
        m = jnp.mean(x, 0, keepdims=True)
        v = jnp.mean((x - m) ** 2, 0, keepdims=True)
        return (x - m) / jnp.sqrt(v + BN_EPS) * g + b

    n, hid = h.shape
    dh = hid // num_heads
    gin_in = h + adj @ h
    hl = jnp.maximum(gin_in @ gw1 + gb1, 0.0) @ gw2 + gb2
    hl = bn(h + hl, gl, bl)

    q = (h @ wq + bq).reshape(n, num_heads, dh)
    k = (h @ wk + bk).reshape(n, num_heads, dh)
    v = (h @ wv + bv).reshape(n, num_heads, dh)
    s = jnp.einsum('ihd,jhd->hij', q, k) / np.sqrt(dh)
    s = jnp.where(sg[None] > 0, s, NEG_INF)
    p = jax.nn.softmax(s, axis=-1)
    attn = jnp.einsum('hij,jhd->ihd', p, v).reshape(n, hid)
    ha = bn(h + attn @ wo + bo, ga, ba)

    hc = hl + ha
    hc = hc + jnp.maximum(hc @ fw1 + fb1, 0.0) @ fw2 + fb2
    return bn(hc, go, bo2)


if __name__ == "__main__":
    hidden_size, num_heads = 32, 4
    graph_nodes = [5, 7]                 # batch of 2 graphs, 12 nodes total

    key = jax.random.PRNGKey(0)
    k_h, k_p = jax.random.split(key)

    meta, adj_full, sg_full = make_graph(graph_nodes)
    n_nodes = int(sum(graph_nodes))
    h = jax.random.normal(k_h, (n_nodes, hidden_size), jnp.float32)
    params = init_params(k_p, hidden_size)

    out = graphgps_forward(h, meta, params, num_heads)
    out = jax.block_until_ready(out)

    ref = reference(h, adj_full, sg_full, params, num_heads)
    assert out.shape == (n_nodes, hidden_size)
    # bf16 MXU operands + bf16 inter-kernel storage (f32 stats/accumulation)
    # -> compare with bf16-level tolerance.
    err = float(jnp.max(jnp.abs(out - ref)))
    assert bool(jnp.allclose(out, ref, rtol=1e-1, atol=1e-1)), \
        f"max abs diff {err}"
    print("KERNEL_OK")
</pallas_src>

<mosaic_0001>
module attributes {stable_mosaic.version = 11 : i64} {
  func.func @gps_local_attn_kernel(%arg0: i32, %arg1: memref<1x128x128xf32, #tpu.memory_space<vmem>>, %arg2: memref<1x128x128xbf16, #tpu.memory_space<vmem>>, %arg3: memref<1x1x128xf32, #tpu.memory_space<vmem>>, %arg4: memref<1x128x1xf32, #tpu.memory_space<vmem>>, %arg5: memref<128x128xbf16, #tpu.memory_space<vmem>>, %arg6: memref<1x128xf32, #tpu.memory_space<vmem>>, %arg7: memref<128x128xbf16, #tpu.memory_space<vmem>>, %arg8: memref<1x128xf32, #tpu.memory_space<vmem>>, %arg9: memref<128x384xbf16, #tpu.memory_space<vmem>>, %arg10: memref<1x384xf32, #tpu.memory_space<vmem>>, %arg11: memref<128x128xbf16, #tpu.memory_space<vmem>>, %arg12: memref<1x128xf32, #tpu.memory_space<vmem>>, %arg13: memref<1x128x128xbf16, #tpu.memory_space<vmem>>, %arg14: memref<1x128x128xbf16, #tpu.memory_space<vmem>>, %arg15: memref<1x8x128xf32, #tpu.memory_space<vmem>>, %arg16: memref<128x384xbf16, #tpu.memory_space<vmem>>, %arg17: memref<128x128xf32, #tpu.memory_space<vmem>>) attributes {dimension_semantics = [#tpu.dimension_semantics<parallel>], iteration_bounds = array<i64: 2>, scalar_prefetch = 0 : i64, scratch_operands = 2 : i64, tpu.core_type = #tpu.core_type<tc>, window_params = [{transform_indices = @transform_0, window_bounds = array<i64: 1, 128, 128>}, {transform_indices = @transform_1, window_bounds = array<i64: 1, 128, 128>}, {transform_indices = @transform_2, window_bounds = array<i64: 1, 1, 128>}, {transform_indices = @transform_3, window_bounds = array<i64: 1, 128, 1>}, {pipeline_mode = #tpu.pipeline_mode<synchronous>, transform_indices = @transform_4, window_bounds = array<i64: 128, 128>}, {pipeline_mode = #tpu.pipeline_mode<synchronous>, transform_indices = @transform_5, window_bounds = array<i64: 1, 128>}, {pipeline_mode = #tpu.pipeline_mode<synchronous>, transform_indices = @transform_6, window_bounds = array<i64: 128, 128>}, {pipeline_mode = #tpu.pipeline_mode<synchronous>, transform_indices = @transform_7, window_bounds = array<i64: 1, 128>}, {pipeline_mode = #tpu.pipeline_mode<synchronous>, transform_indices = @transform_8, window_bounds = array<i64: 128, 384>}, {pipeline_mode = #tpu.pipeline_mode<synchronous>, transform_indices = @transform_9, window_bounds = array<i64: 1, 384>}, {pipeline_mode = #tpu.pipeline_mode<synchronous>, transform_indices = @transform_10, window_bounds = array<i64: 128, 128>}, {pipeline_mode = #tpu.pipeline_mode<synchronous>, transform_indices = @transform_11, window_bounds = array<i64: 1, 128>}, {transform_indices = @transform_12, window_bounds = array<i64: 1, 128, 128>}, {transform_indices = @transform_13, window_bounds = array<i64: 1, 128, 128>}, {transform_indices = @transform_14, window_bounds = array<i64: 1, 8, 128>}]} {
    %c0 = arith.constant 0 : index
    %c0_0 = arith.constant 0 : index
    %c0_1 = arith.constant 0 : index
    %0 = vector.load %arg1[%c0, %c0_0, %c0_1] : memref<1x128x128xf32, #tpu.memory_space<vmem>>, vector<1x128x128xf32>
    %1 = vector.shape_cast %0 : vector<1x128x128xf32> to vector<128x128xf32>
    %2 = arith.truncf %1 : vector<128x128xf32> to vector<128x128xbf16>
    %c0_2 = arith.constant 0 : index
    %c0_3 = arith.constant 0 : index
    %c0_4 = arith.constant 0 : index
    %3 = vector.load %arg4[%c0_2, %c0_3, %c0_4] : memref<1x128x1xf32, #tpu.memory_space<vmem>>, vector<1x128x1xf32>
    %4 = vector.shape_cast %3 : vector<1x128x1xf32> to vector<128x1xf32>
    %c0_5 = arith.constant 0 : index
    %c0_6 = arith.constant 0 : index
    %c0_7 = arith.constant 0 : index
    %5 = vector.load %arg2[%c0_5, %c0_6, %c0_7] : memref<1x128x128xbf16, #tpu.memory_space<vmem>>, vector<1x128x128xbf16>
    %6 = vector.shape_cast %5 : vector<1x128x128xbf16> to vector<128x128xbf16>
    %cst = arith.constant dense<0.000000e+00> : vector<128x128xf32>
    %7 = tpu.matmul %6, %2, %cst {dimension_numbers = #tpu.dot_dimension_numbers<[1], [0], [0], [1], [0, 0, 1, 1], [], []>} : vector<128x128xbf16>, vector<128x128xbf16>, vector<128x128xf32> -> vector<128x128xf32>
    %8 = arith.addf %1, %7 : vector<128x128xf32>
    %9 = arith.truncf %8 : vector<128x128xf32> to vector<128x128xbf16>
    %c0_8 = arith.constant 0 : index
    %c0_9 = arith.constant 0 : index
    %10 = vector.load %arg5[%c0_8, %c0_9] : memref<128x128xbf16, #tpu.memory_space<vmem>>, vector<128x128xbf16>
    %cst_10 = arith.constant dense<0.000000e+00> : vector<128x128xf32>
    %11 = tpu.matmul %9, %10, %cst_10 {dimension_numbers = #tpu.dot_dimension_numbers<[1], [0], [0], [1], [0, 0, 1, 1], [], []>} : vector<128x128xbf16>, vector<128x128xbf16>, vector<128x128xf32> -> vector<128x128xf32>
    %c0_11 = arith.constant 0 : index
    %c0_12 = arith.constant 0 : index
    %12 = vector.load %arg6[%c0_11, %c0_12] : memref<1x128xf32, #tpu.memory_space<vmem>>, vector<1x128xf32>
    %13 = vector.broadcast %12 : vector<1x128xf32> to vector<128x128xf32>
    %14 = arith.addf %11, %13 : vector<128x128xf32>
    %cst_13 = arith.constant 0.000000e+00 : f32
    %15 = vector.broadcast %cst_13 : f32 to vector<128x128xf32>
    %16 = arith.maximumf %14, %15 : vector<128x128xf32>
    %17 = arith.truncf %16 : vector<128x128xf32> to vector<128x128xbf16>
    %c0_14 = arith.constant 0 : index
    %c0_15 = arith.constant 0 : index
    %18 = vector.load %arg7[%c0_14, %c0_15] : memref<128x128xbf16, #tpu.memory_space<vmem>>, vector<128x128xbf16>
    %cst_16 = arith.constant dense<0.000000e+00> : vector<128x128xf32>
    %19 = tpu.matmul %17, %18, %cst_16 {dimension_numbers = #tpu.dot_dimension_numbers<[1], [0], [0], [1], [0, 0, 1, 1], [], []>} : vector<128x128xbf16>, vector<128x128xbf16>, vector<128x128xf32> -> vector<128x128xf32>
    %c0_17 = arith.constant 0 : index
    %c0_18 = arith.constant 0 : index
    %20 = vector.load %arg8[%c0_17, %c0_18] : memref<1x128xf32, #tpu.memory_space<vmem>>, vector<1x128xf32>
    %21 = vector.broadcast %20 : vector<1x128xf32> to vector<128x128xf32>
    %22 = arith.addf %19, %21 : vector<128x128xf32>
    %23 = arith.addf %1, %22 : vector<128x128xf32>
    %24 = arith.truncf %23 : vector<128x128xf32> to vector<128x128xbf16>
    %c0_19 = arith.constant 0 : index
    %c0_20 = arith.constant 0 : index
    %c0_21 = arith.constant 0 : index
    %25 = vector.load %arg13[%c0_19, %c0_20, %c0_21] : memref<1x128x128xbf16, #tpu.memory_space<vmem>>, vector<1x128x128xbf16>
    %26 = vector.shape_cast %25 : vector<1x128x128xbf16> to vector<128x128xbf16>
    %27 = vector.shape_cast %24 : vector<128x128xbf16> to vector<1x128x128xbf16>
    tpu.vector_store %arg13[%c0_19, %c0_20, %c0_21], %27 {strides = array<i32>} : memref<1x128x128xbf16, #tpu.memory_space<vmem>>, vector<1x128x128xbf16>,
    %28 = vector.broadcast %4 : vector<128x1xf32> to vector<128x128xf32>
    %29 = arith.mulf %23, %28 : vector<128x128xf32>
    %cst_22 = arith.constant dense<0.000000e+00> : vector<128xf32>
    %30 = vector.multi_reduction <add>, %29, %cst_22 [0] : vector<128x128xf32> to vector<128xf32>
    %31 = vector.shape_cast %30 : vector<128xf32> to vector<1x128xf32>
    %32 = arith.mulf %29, %23 : vector<128x128xf32>
    %cst_23 = arith.constant dense<0.000000e+00> : vector<128xf32>
    %33 = vector.multi_reduction <add>, %32, %cst_23 [0] : vector<128x128xf32> to vector<128xf32>
    %34 = vector.shape_cast %33 : vector<128xf32> to vector<1x128xf32>
    %c0_24 = arith.constant 0 : index
    %c0_25 = arith.constant 0 : index
    %35 = vector.load %arg9[%c0_24, %c0_25] : memref<128x384xbf16, #tpu.memory_space<vmem>>, vector<128x384xbf16>
    %cst_26 = arith.constant dense<0.000000e+00> : vector<128x384xf32>
    %36 = tpu.matmul %2, %35, %cst_26 {dimension_numbers = #tpu.dot_dimension_numbers<[1], [0], [0], [1], [0, 0, 1, 1], [], []>} : vector<128x128xbf16>, vector<128x384xbf16>, vector<128x384xf32> -> vector<128x384xf32>
    %c0_27 = arith.constant 0 : index
    %c0_28 = arith.constant 0 : index
    %37 = vector.load %arg10[%c0_27, %c0_28] : memref<1x384xf32, #tpu.memory_space<vmem>>, vector<1x384xf32>
    %38 = vector.broadcast %37 : vector<1x384xf32> to vector<128x384xf32>
    %39 = arith.addf %36, %38 : vector<128x384xf32>
    %40 = arith.truncf %39 : vector<128x384xf32> to vector<128x384xbf16>
    %c0_29 = arith.constant 0 : index
    %c0_30 = arith.constant 0 : index
    %41 = vector.load %arg16[%c0_29, %c0_30] : memref<128x384xbf16, #tpu.memory_space<vmem>>, vector<128x384xbf16>
    tpu.vector_store %arg16[%c0_29, %c0_30], %40 {strides = array<i32>} : memref<128x384xbf16, #tpu.memory_space<vmem>>, vector<128x384xbf16>,
    %c0_31 = arith.constant 0 : index
    %c0_32 = arith.constant 0 : index
    %c0_33 = arith.constant 0 : index
    %42 = vector.load %arg3[%c0_31, %c0_32, %c0_33] : memref<1x1x128xf32, #tpu.memory_space<vmem>>, vector<1x1x128xf32>
    %43 = vector.shape_cast %42 : vector<1x1x128xf32> to vector<1x128xf32>
    %cst_34 = arith.constant 0.000000e+00 : f32
    %44 = vector.broadcast %cst_34 : f32 to vector<1x128xf32>
    %45 = arith.cmpf ogt, %43, %44 : vector<1x128xf32>
    %cst_35 = arith.constant 0.000000e+00 : f32
    %46 = vector.broadcast %cst_35 : f32 to vector<128x128xf32>
    %c0_36 = arith.constant 0 : index
    %c0_37 = arith.constant 0 : index
    %47 = vector.load %arg17[%c0_36, %c0_37] : memref<128x128xf32, #tpu.memory_space<vmem>>, vector<128x128xf32>
    tpu.vector_store %arg17[%c0_36, %c0_37], %46 {strides = array<i32>} : memref<128x128xf32, #tpu.memory_space<vmem>>, vector<128x128xf32>,
    %c0_38 = arith.constant 0 : index
    %c0_39 = arith.constant 0 : index
    %48 = vector.load %arg16[%c0_38, %c0_39] : memref<128x384xbf16, #tpu.memory_space<vmem>>, vector<128x32xbf16>
    %c0_40 = arith.constant 0 : index
    %c128 = arith.constant 128 : index
    %49 = vector.load %arg16[%c0_40, %c128] : memref<128x384xbf16, #tpu.memory_space<vmem>>, vector<128x32xbf16>
    %c0_41 = arith.constant 0 : index
    %c256 = arith.constant 256 : index
    %50 = vector.load %arg16[%c0_41, %c256] : memref<128x384xbf16, #tpu.memory_space<vmem>>, vector<128x32xbf16>
    %cst_42 = arith.constant dense<0.000000e+00> : vector<128x128xf32>
    %51 = tpu.matmul %48, %49, %cst_42 {dimension_numbers = #tpu.dot_dimension_numbers<[1], [1], [0], [0], [0, 0, 1, 0], [], []>} : vector<128x32xbf16>, vector<128x32xbf16>, vector<128x128xf32> -> vector<128x128xf32>
    %cst_43 = arith.constant -1.000000e+30 : f32
    %52 = vector.shape_cast %45 : vector<1x128xi1> to vector<1x128xi1>
    %53 = vector.broadcast %52 : vector<1x128xi1> to vector<128x128xi1>
    %54 = vector.broadcast %cst_43 : f32 to vector<128x128xf32>
    %55 = arith.select %53, %51, %54 : vector<128x128xi1>, vector<128x128xf32>
    %cst_44 = arith.constant dense<0xFF800000> : vector<128xf32>
    %56 = vector.multi_reduction <maximumf>, %55, %cst_44 [1] : vector<128x128xf32> to vector<128xf32>
    %57 = vector.shape_cast %56 : vector<128xf32> to vector<128x1xf32>
    %58 = vector.broadcast %57 : vector<128x1xf32> to vector<128x128xf32>
    %59 = arith.subf %55, %58 : vector<128x128xf32>
    %60 = math.exp %59 : vector<128x128xf32>
    %cst_45 = arith.constant dense<0.000000e+00> : vector<128xf32>
    %61 = vector.multi_reduction <add>, %60, %cst_45 [1] : vector<128x128xf32> to vector<128xf32>
    %62 = vector.shape_cast %61 : vector<128xf32> to vector<128x1xf32>
    %63 = tpu.reciprocal %62 {approx = true} : vector<128x1xf32> -> vector<128x1xf32>
    %64 = arith.truncf %60 : vector<128x128xf32> to vector<128x128xbf16>
    %cst_46 = arith.constant dense<0.000000e+00> : vector<128x32xf32>
    %65 = tpu.matmul %64, %50, %cst_46 {dimension_numbers = #tpu.dot_dimension_numbers<[1], [0], [0], [1], [0, 0, 1, 1], [], []>} : vector<128x128xbf16>, vector<128x32xbf16>, vector<128x32xf32> -> vector<128x32xf32>
    %66 = vector.broadcast %63 : vector<128x1xf32> to vector<128x32xf32>
    %67 = arith.mulf %65, %66 : vector<128x32xf32>
    %c0_47 = arith.constant 0 : index
    %c0_48 = arith.constant 0 : index
    %68 = vector.load %arg17[%c0_47, %c0_48] : memref<128x128xf32, #tpu.memory_space<vmem>>, vector<128x128xf32>
    %69 = arith.truncf %67 : vector<128x32xf32> to vector<128x32xbf16>
    %c0_49 = arith.constant 0 : index
    %c0_50 = arith.constant 0 : index
    %70 = vector.load %arg11[%c0_49, %c0_50] : memref<128x128xbf16, #tpu.memory_space<vmem>>, vector<32x128xbf16>
    %cst_51 = arith.constant dense<0.000000e+00> : vector<128x128xf32>
    %71 = tpu.matmul %69, %70, %cst_51 {dimension_numbers = #tpu.dot_dimension_numbers<[1], [0], [0], [1], [0, 0, 1, 1], [], []>} : vector<128x32xbf16>, vector<32x128xbf16>, vector<128x128xf32> -> vector<128x128xf32>
    %72 = arith.addf %68, %71 : vector<128x128xf32>
    %c0_52 = arith.constant 0 : index
    %c0_53 = arith.constant 0 : index
    %73 = vector.load %arg17[%c0_52, %c0_53] : memref<128x128xf32, #tpu.memory_space<vmem>>, vector<128x128xf32>
    tpu.vector_store %arg17[%c0_52, %c0_53], %72 {strides = array<i32>} : memref<128x128xf32, #tpu.memory_space<vmem>>, vector<128x128xf32>,
    %c0_54 = arith.constant 0 : index
    %c32 = arith.constant 32 : index
    %74 = vector.load %arg16[%c0_54, %c32] : memref<128x384xbf16, #tpu.memory_space<vmem>>, vector<128x32xbf16>
    %c0_55 = arith.constant 0 : index
    %c160 = arith.constant 160 : index
    %75 = vector.load %arg16[%c0_55, %c160] : memref<128x384xbf16, #tpu.memory_space<vmem>>, vector<128x32xbf16>
    %c0_56 = arith.constant 0 : index
    %c288 = arith.constant 288 : index
    %76 = vector.load %arg16[%c0_56, %c288] : memref<128x384xbf16, #tpu.memory_space<vmem>>, vector<128x32xbf16>
    %cst_57 = arith.constant dense<0.000000e+00> : vector<128x128xf32>
    %77 = tpu.matmul %74, %75, %cst_57 {dimension_numbers = #tpu.dot_dimension_numbers<[1], [1], [0], [0], [0, 0, 1, 0], [], []>} : vector<128x32xbf16>, vector<128x32xbf16>, vector<128x128xf32> -> vector<128x128xf32>
    %cst_58 = arith.constant -1.000000e+30 : f32
    %78 = vector.shape_cast %45 : vector<1x128xi1> to vector<1x128xi1>
    %79 = vector.broadcast %78 : vector<1x128xi1> to vector<128x128xi1>
    %80 = vector.broadcast %cst_58 : f32 to vector<128x128xf32>
    %81 = arith.select %79, %77, %80 : vector<128x128xi1>, vector<128x128xf32>
    %cst_59 = arith.constant dense<0xFF800000> : vector<128xf32>
    %82 = vector.multi_reduction <maximumf>, %81, %cst_59 [1] : vector<128x128xf32> to vector<128xf32>
    %83 = vector.shape_cast %82 : vector<128xf32> to vector<128x1xf32>
    %84 = vector.broadcast %83 : vector<128x1xf32> to vector<128x128xf32>
    %85 = arith.subf %81, %84 : vector<128x128xf32>
    %86 = math.exp %85 : vector<128x128xf32>
    %cst_60 = arith.constant dense<0.000000e+00> : vector<128xf32>
    %87 = vector.multi_reduction <add>, %86, %cst_60 [1] : vector<128x128xf32> to vector<128xf32>
    %88 = vector.shape_cast %87 : vector<128xf32> to vector<128x1xf32>
    %89 = tpu.reciprocal %88 {approx = true} : vector<128x1xf32> -> vector<128x1xf32>
    %90 = arith.truncf %86 : vector<128x128xf32> to vector<128x128xbf16>
    %cst_61 = arith.constant dense<0.000000e+00> : vector<128x32xf32>
    %91 = tpu.matmul %90, %76, %cst_61 {dimension_numbers = #tpu.dot_dimension_numbers<[1], [0], [0], [1], [0, 0, 1, 1], [], []>} : vector<128x128xbf16>, vector<128x32xbf16>, vector<128x32xf32> -> vector<128x32xf32>
    %92 = vector.broadcast %89 : vector<128x1xf32> to vector<128x32xf32>
    %93 = arith.mulf %91, %92 : vector<128x32xf32>
    %c0_62 = arith.constant 0 : index
    %c0_63 = arith.constant 0 : index
    %94 = vector.load %arg17[%c0_62, %c0_63] : memref<128x128xf32, #tpu.memory_space<vmem>>, vector<128x128xf32>
    %95 = arith.truncf %93 : vector<128x32xf32> to vector<128x32xbf16>
    %c32_64 = arith.constant 32 : index
    %c0_65 = arith.constant 0 : index
    %96 = vector.load %arg11[%c32_64, %c0_65] : memref<128x128xbf16, #tpu.memory_space<vmem>>, vector<32x128xbf16>
    %cst_66 = arith.constant dense<0.000000e+00> : vector<128x128xf32>
    %97 = tpu.matmul %95, %96, %cst_66 {dimension_numbers = #tpu.dot_dimension_numbers<[1], [0], [0], [1], [0, 0, 1, 1], [], []>} : vector<128x32xbf16>, vector<32x128xbf16>, vector<128x128xf32> -> vector<128x128xf32>
    %98 = arith.addf %94, %97 : vector<128x128xf32>
    %c0_67 = arith.constant 0 : index
    %c0_68 = arith.constant 0 : index
    %99 = vector.load %arg17[%c0_67, %c0_68] : memref<128x128xf32, #tpu.memory_space<vmem>>, vector<128x128xf32>
    tpu.vector_store %arg17[%c0_67, %c0_68], %98 {strides = array<i32>} : memref<128x128xf32, #tpu.memory_space<vmem>>, vector<128x128xf32>,
    %c0_69 = arith.constant 0 : index
    %c64 = arith.constant 64 : index
    %100 = vector.load %arg16[%c0_69, %c64] : memref<128x384xbf16, #tpu.memory_space<vmem>>, vector<128x32xbf16>
    %c0_70 = arith.constant 0 : index
    %c192 = arith.constant 192 : index
    %101 = vector.load %arg16[%c0_70, %c192] : memref<128x384xbf16, #tpu.memory_space<vmem>>, vector<128x32xbf16>
    %c0_71 = arith.constant 0 : index
    %c320 = arith.constant 320 : index
    %102 = vector.load %arg16[%c0_71, %c320] : memref<128x384xbf16, #tpu.memory_space<vmem>>, vector<128x32xbf16>
    %cst_72 = arith.constant dense<0.000000e+00> : vector<128x128xf32>
    %103 = tpu.matmul %100, %101, %cst_72 {dimension_numbers = #tpu.dot_dimension_numbers<[1], [1], [0], [0], [0, 0, 1, 0], [], []>} : vector<128x32xbf16>, vector<128x32xbf16>, vector<128x128xf32> -> vector<128x128xf32>
    %cst_73 = arith.constant -1.000000e+30 : f32
    %104 = vector.shape_cast %45 : vector<1x128xi1> to vector<1x128xi1>
    %105 = vector.broadcast %104 : vector<1x128xi1> to vector<128x128xi1>
    %106 = vector.broadcast %cst_73 : f32 to vector<128x128xf32>
    %107 = arith.select %105, %103, %106 : vector<128x128xi1>, vector<128x128xf32>
    %cst_74 = arith.constant dense<0xFF800000> : vector<128xf32>
    %108 = vector.multi_reduction <maximumf>, %107, %cst_74 [1] : vector<128x128xf32> to vector<128xf32>
    %109 = vector.shape_cast %108 : vector<128xf32> to vector<128x1xf32>
    %110 = vector.broadcast %109 : vector<128x1xf32> to vector<128x128xf32>
    %111 = arith.subf %107, %110 : vector<128x128xf32>
    %112 = math.exp %111 : vector<128x128xf32>
    %cst_75 = arith.constant dense<0.000000e+00> : vector<128xf32>
    %113 = vector.multi_reduction <add>, %112, %cst_75 [1] : vector<128x128xf32> to vector<128xf32>
    %114 = vector.shape_cast %113 : vector<128xf32> to vector<128x1xf32>
    %115 = tpu.reciprocal %114 {approx = true} : vector<128x1xf32> -> vector<128x1xf32>
    %116 = arith.truncf %112 : vector<128x128xf32> to vector<128x128xbf16>
    %cst_76 = arith.constant dense<0.000000e+00> : vector<128x32xf32>
    %117 = tpu.matmul %116, %102, %cst_76 {dimension_numbers = #tpu.dot_dimension_numbers<[1], [0], [0], [1], [0, 0, 1, 1], [], []>} : vector<128x128xbf16>, vector<128x32xbf16>, vector<128x32xf32> -> vector<128x32xf32>
    %118 = vector.broadcast %115 : vector<128x1xf32> to vector<128x32xf32>
    %119 = arith.mulf %117, %118 : vector<128x32xf32>
    %c0_77 = arith.constant 0 : index
    %c0_78 = arith.constant 0 : index
    %120 = vector.load %arg17[%c0_77, %c0_78] : memref<128x128xf32, #tpu.memory_space<vmem>>, vector<128x128xf32>
    %121 = arith.truncf %119 : vector<128x32xf32> to vector<128x32xbf16>
    %c64_79 = arith.constant 64 : index
    %c0_80 = arith.constant 0 : index
    %122 = vector.load %arg11[%c64_79, %c0_80] : memref<128x128xbf16, #tpu.memory_space<vmem>>, vector<32x128xbf16>
    %cst_81 = arith.constant dense<0.000000e+00> : vector<128x128xf32>
    %123 = tpu.matmul %121, %122, %cst_81 {dimension_numbers = #tpu.dot_dimension_numbers<[1], [0], [0], [1], [0, 0, 1, 1], [], []>} : vector<128x32xbf16>, vector<32x128xbf16>, vector<128x128xf32> -> vector<128x128xf32>
    %124 = arith.addf %120, %123 : vector<128x128xf32>
    %c0_82 = arith.constant 0 : index
    %c0_83 = arith.constant 0 : index
    %125 = vector.load %arg17[%c0_82, %c0_83] : memref<128x128xf32, #tpu.memory_space<vmem>>, vector<128x128xf32>
    tpu.vector_store %arg17[%c0_82, %c0_83], %124 {strides = array<i32>} : memref<128x128xf32, #tpu.memory_space<vmem>>, vector<128x128xf32>,
    %c0_84 = arith.constant 0 : index
    %c96 = arith.constant 96 : index
    %126 = vector.load %arg16[%c0_84, %c96] : memref<128x384xbf16, #tpu.memory_space<vmem>>, vector<128x32xbf16>
    %c0_85 = arith.constant 0 : index
    %c224 = arith.constant 224 : index
    %127 = vector.load %arg16[%c0_85, %c224] : memref<128x384xbf16, #tpu.memory_space<vmem>>, vector<128x32xbf16>
    %c0_86 = arith.constant 0 : index
    %c352 = arith.constant 352 : index
    %128 = vector.load %arg16[%c0_86, %c352] : memref<128x384xbf16, #tpu.memory_space<vmem>>, vector<128x32xbf16>
    %cst_87 = arith.constant dense<0.000000e+00> : vector<128x128xf32>
    %129 = tpu.matmul %126, %127, %cst_87 {dimension_numbers = #tpu.dot_dimension_numbers<[1], [1], [0], [0], [0, 0, 1, 0], [], []>} : vector<128x32xbf16>, vector<128x32xbf16>, vector<128x128xf32> -> vector<128x128xf32>
    %cst_88 = arith.constant -1.000000e+30 : f32
    %130 = vector.shape_cast %45 : vector<1x128xi1> to vector<1x128xi1>
    %131 = vector.broadcast %130 : vector<1x128xi1> to vector<128x128xi1>
    %132 = vector.broadcast %cst_88 : f32 to vector<128x128xf32>
    %133 = arith.select %131, %129, %132 : vector<128x128xi1>, vector<128x128xf32>
    %cst_89 = arith.constant dense<0xFF800000> : vector<128xf32>
    %134 = vector.multi_reduction <maximumf>, %133, %cst_89 [1] : vector<128x128xf32> to vector<128xf32>
    %135 = vector.shape_cast %134 : vector<128xf32> to vector<128x1xf32>
    %136 = vector.broadcast %135 : vector<128x1xf32> to vector<128x128xf32>
    %137 = arith.subf %133, %136 : vector<128x128xf32>
    %138 = math.exp %137 : vector<128x128xf32>
    %cst_90 = arith.constant dense<0.000000e+00> : vector<128xf32>
    %139 = vector.multi_reduction <add>, %138, %cst_90 [1] : vector<128x128xf32> to vector<128xf32>
    %140 = vector.shape_cast %139 : vector<128xf32> to vector<128x1xf32>
    %141 = tpu.reciprocal %140 {approx = true} : vector<128x1xf32> -> vector<128x1xf32>
    %142 = arith.truncf %138 : vector<128x128xf32> to vector<128x128xbf16>
    %cst_91 = arith.constant dense<0.000000e+00> : vector<128x32xf32>
    %143 = tpu.matmul %142, %128, %cst_91 {dimension_numbers = #tpu.dot_dimension_numbers<[1], [0], [0], [1], [0, 0, 1, 1], [], []>} : vector<128x128xbf16>, vector<128x32xbf16>, vector<128x32xf32> -> vector<128x32xf32>
    %144 = vector.broadcast %141 : vector<128x1xf32> to vector<128x32xf32>
    %145 = arith.mulf %143, %144 : vector<128x32xf32>
    %c0_92 = arith.constant 0 : index
    %c0_93 = arith.constant 0 : index
    %146 = vector.load %arg17[%c0_92, %c0_93] : memref<128x128xf32, #tpu.memory_space<vmem>>, vector<128x128xf32>
    %147 = arith.truncf %145 : vector<128x32xf32> to vector<128x32xbf16>
    %c96_94 = arith.constant 96 : index
    %c0_95 = arith.constant 0 : index
    %148 = vector.load %arg11[%c96_94, %c0_95] : memref<128x128xbf16, #tpu.memory_space<vmem>>, vector<32x128xbf16>
    %cst_96 = arith.constant dense<0.000000e+00> : vector<128x128xf32>
    %149 = tpu.matmul %147, %148, %cst_96 {dimension_numbers = #tpu.dot_dimension_numbers<[1], [0], [0], [1], [0, 0, 1, 1], [], []>} : vector<128x32xbf16>, vector<32x128xbf16>, vector<128x128xf32> -> vector<128x128xf32>
    %150 = arith.addf %146, %149 : vector<128x128xf32>
    %c0_97 = arith.constant 0 : index
    %c0_98 = arith.constant 0 : index
    %151 = vector.load %arg17[%c0_97, %c0_98] : memref<128x128xf32, #tpu.memory_space<vmem>>, vector<128x128xf32>
    tpu.vector_store %arg17[%c0_97, %c0_98], %150 {strides = array<i32>} : memref<128x128xf32, #tpu.memory_space<vmem>>, vector<128x128xf32>,
    %c0_99 = arith.constant 0 : index
    %c0_100 = arith.constant 0 : index
    %c0_101 = arith.constant 0 : index
    %152 = vector.load %arg1[%c0_99, %c0_100, %c0_101] : memref<1x128x128xf32, #tpu.memory_space<vmem>>, vector<1x128x128xf32>
    %153 = vector.shape_cast %152 : vector<1x128x128xf32> to vector<128x128xf32>
    %c0_102 = arith.constant 0 : index
    %c0_103 = arith.constant 0 : index
    %154 = vector.load %arg17[%c0_102, %c0_103] : memref<128x128xf32, #tpu.memory_space<vmem>>, vector<128x128xf32>
    %155 = arith.addf %153, %154 : vector<128x128xf32>
    %c0_104 = arith.constant 0 : index
    %c0_105 = arith.constant 0 : index
    %156 = vector.load %arg12[%c0_104, %c0_105] : memref<1x128xf32, #tpu.memory_space<vmem>>, vector<1x128xf32>
    %157 = vector.broadcast %156 : vector<1x128xf32> to vector<128x128xf32>
    %158 = arith.addf %155, %157 : vector<128x128xf32>
    %159 = arith.truncf %158 : vector<128x128xf32> to vector<128x128xbf16>
    %c0_106 = arith.constant 0 : index
    %c0_107 = arith.constant 0 : index
    %c0_108 = arith.constant 0 : index
    %160 = vector.load %arg14[%c0_106, %c0_107, %c0_108] : memref<1x128x128xbf16, #tpu.memory_space<vmem>>, vector<1x128x128xbf16>
    %161 = vector.shape_cast %160 : vector<1x128x128xbf16> to vector<128x128xbf16>
    %162 = vector.shape_cast %159 : vector<128x128xbf16> to vector<1x128x128xbf16>
    tpu.vector_store %arg14[%c0_106, %c0_107, %c0_108], %162 {strides = array<i32>} : memref<1x128x128xbf16, #tpu.memory_space<vmem>>, vector<1x128x128xbf16>,
    %163 = vector.broadcast %4 : vector<128x1xf32> to vector<128x128xf32>
    %164 = arith.mulf %158, %163 : vector<128x128xf32>
    %cst_109 = arith.constant dense<0.000000e+00> : vector<128xf32>
    %165 = vector.multi_reduction <add>, %164, %cst_109 [0] : vector<128x128xf32> to vector<128xf32>
    %166 = vector.shape_cast %165 : vector<128xf32> to vector<1x128xf32>
    %167 = arith.mulf %164, %158 : vector<128x128xf32>
    %cst_110 = arith.constant dense<0.000000e+00> : vector<128xf32>
    %168 = vector.multi_reduction <add>, %167, %cst_110 [0] : vector<128x128xf32> to vector<128xf32>
    %169 = vector.shape_cast %168 : vector<128xf32> to vector<1x128xf32>
    %cst_111 = arith.constant 0.000000e+00 : f32
    %170 = vector.broadcast %cst_111 : f32 to vector<4x128xf32>
    %171 = tpu.concatenate %31, %34, %166, %169, %170 in 0 : vector<1x128xf32>, vector<1x128xf32>, vector<1x128xf32>, vector<1x128xf32>, vector<4x128xf32> -> vector<8x128xf32>
    %c0_112 = arith.constant 0 : index
    %c0_113 = arith.constant 0 : index
    %c0_114 = arith.constant 0 : index
    %172 = vector.load %arg15[%c0_112, %c0_113, %c0_114] : memref<1x8x128xf32, #tpu.memory_space<vmem>>, vector<1x8x128xf32>
    %173 = vector.shape_cast %172 : vector<1x8x128xf32> to vector<8x128xf32>
    %174 = vector.shape_cast %171 : vector<8x128xf32> to vector<1x8x128xf32>
    tpu.vector_store %arg15[%c0_112, %c0_113, %c0_114], %174 {strides = array<i32>} : memref<1x8x128xf32, #tpu.memory_space<vmem>>, vector<1x8x128xf32>,
    return
  }
  func.func @transform_0(%arg0: i32) -> (i32, i32, i32) {
    %c0_i32 = arith.constant 0 : i32
    %c0_i32_0 = arith.constant 0 : i32
    %c0_i32_1 = arith.constant 0 : i32
    return %arg0, %c0_i32, %c0_i32_0 : i32, i32, i32
  }
  func.func @transform_1(%arg0: i32) -> (i32, i32, i32) {
    %c0_i32 = arith.constant 0 : i32
    %c0_i32_0 = arith.constant 0 : i32
    %c0_i32_1 = arith.constant 0 : i32
    return %arg0, %c0_i32, %c0_i32_0 : i32, i32, i32
  }
  func.func @transform_2(%arg0: i32) -> (i32, i32, i32) {
    %c0_i32 = arith.constant 0 : i32
    %c0_i32_0 = arith.constant 0 : i32
    %c0_i32_1 = arith.constant 0 : i32
    return %arg0, %c0_i32, %c0_i32_0 : i32, i32, i32
  }
  func.func @transform_3(%arg0: i32) -> (i32, i32, i32) {
    %c0_i32 = arith.constant 0 : i32
    %c0_i32_0 = arith.constant 0 : i32
    %c0_i32_1 = arith.constant 0 : i32
    return %arg0, %c0_i32, %c0_i32_0 : i32, i32, i32
  }
  func.func @transform_4(%arg0: i32) -> (i32, i32) {
    %c0_i32 = arith.constant 0 : i32
    %c0_i32_0 = arith.constant 0 : i32
    %c0_i32_1 = arith.constant 0 : i32
    return %c0_i32, %c0_i32_0 : i32, i32
  }
  func.func @transform_5(%arg0: i32) -> (i32, i32) {
    %c0_i32 = arith.constant 0 : i32
    %c0_i32_0 = arith.constant 0 : i32
    %c0_i32_1 = arith.constant 0 : i32
    return %c0_i32, %c0_i32_0 : i32, i32
  }
  func.func @transform_6(%arg0: i32) -> (i32, i32) {
    %c0_i32 = arith.constant 0 : i32
    %c0_i32_0 = arith.constant 0 : i32
    %c0_i32_1 = arith.constant 0 : i32
    return %c0_i32, %c0_i32_0 : i32, i32
  }
  func.func @transform_7(%arg0: i32) -> (i32, i32) {
    %c0_i32 = arith.constant 0 : i32
    %c0_i32_0 = arith.constant 0 : i32
    %c0_i32_1 = arith.constant 0 : i32
    return %c0_i32, %c0_i32_0 : i32, i32
  }
  func.func @transform_8(%arg0: i32) -> (i32, i32) {
    %c0_i32 = arith.constant 0 : i32
    %c0_i32_0 = arith.constant 0 : i32
    %c0_i32_1 = arith.constant 0 : i32
    return %c0_i32, %c0_i32_0 : i32, i32
  }
  func.func @transform_9(%arg0: i32) -> (i32, i32) {
    %c0_i32 = arith.constant 0 : i32
    %c0_i32_0 = arith.constant 0 : i32
    %c0_i32_1 = arith.constant 0 : i32
    return %c0_i32, %c0_i32_0 : i32, i32
  }
  func.func @transform_10(%arg0: i32) -> (i32, i32) {
    %c0_i32 = arith.constant 0 : i32
    %c0_i32_0 = arith.constant 0 : i32
    %c0_i32_1 = arith.constant 0 : i32
    return %c0_i32, %c0_i32_0 : i32, i32
  }
  func.func @transform_11(%arg0: i32) -> (i32, i32) {
    %c0_i32 = arith.constant 0 : i32
    %c0_i32_0 = arith.constant 0 : i32
    %c0_i32_1 = arith.constant 0 : i32
    return %c0_i32, %c0_i32_0 : i32, i32
  }
  func.func @transform_12(%arg0: i32) -> (i32, i32, i32) {
    %c0_i32 = arith.constant 0 : i32
    %c0_i32_0 = arith.constant 0 : i32
    %c0_i32_1 = arith.constant 0 : i32
    return %arg0, %c0_i32, %c0_i32_0 : i32, i32, i32
  }
  func.func @transform_13(%arg0: i32) -> (i32, i32, i32) {
    %c0_i32 = arith.constant 0 : i32
    %c0_i32_0 = arith.constant 0 : i32
    %c0_i32_1 = arith.constant 0 : i32
    return %arg0, %c0_i32, %c0_i32_0 : i32, i32, i32
  }
  func.func @transform_14(%arg0: i32) -> (i32, i32, i32) {
    %c0_i32 = arith.constant 0 : i32
    %c0_i32_0 = arith.constant 0 : i32
    %c0_i32_1 = arith.constant 0 : i32
    return %arg0, %c0_i32, %c0_i32_0 : i32, i32, i32
  }
}

</mosaic_0001>

<bundles_post_ra>
// kernel: tpu_custom_call.1
= control target key start
LH: loop header
LB: loop body
LE: loop exit
PB: predicated region body
PF: predicated region fallthrough
CT: control target
= control target key end

     0   :  { %s9130_s0 = inlined_call_operand.vmem [shape: f32[2,128,128], index: 0, kind: input, shape index: {}]   ;;  %s9131_s1 = inlined_call_operand.hbm [shape: bf16[2,128,128], index: 1, kind: input, shape index: {}]   ;;  %s9132_s2 = inlined_call_operand.vmem [shape: f32[2,1,128], index: 2, kind: input, shape index: {}]   ;;  %s9133_s3 = inlined_call_operand.vmem [shape: f32[2,128,1], index: 3, kind: input, shape index: {}]   ;;  %s9134_s4 = inlined_call_operand.hbm [shape: bf16[128,128], index: 4, kind: input, shape index: {}]   ;;  %s9135_s5 = inlined_call_operand.vmem [shape: f32[1,128], index: 5, kind: input, shape index: {}]   ;;  %s9136_s6 = inlined_call_operand.hbm [shape: bf16[128,128], index: 6, kind: input, shape index: {}]   ;;  %s9137_s7 = inlined_call_operand.vmem [shape: f32[1,128], index: 7, kind: input, shape index: {}]   ;;  %s9138_s8 = inlined_call_operand.hbm [shape: bf16[128,384], index: 8, kind: input, shape index: {}]   ;;  %s9139_s9 = inlined_call_operand.vmem [shape: f32[1,384], index: 9, kind: input, shape index: {}]   ;;  %s9140_s10 = inlined_call_operand.hbm [shape: bf16[128,128], index: 10, kind: input, shape index: {}]   ;;  %s9141_s11 = inlined_call_operand.vmem [shape: f32[1,128], index: 11, kind: input, shape index: {}]   ;;  %s9142_s12 = inlined_call_operand.hbm [shape: bf16[2,128,128], index: 12, kind: output, shape index: {0}]   ;;  %s9143_s13 = inlined_call_operand.hbm [shape: bf16[2,128,128], index: 13, kind: output, shape index: {1}]   ;;  %s9144_s14 = inlined_call_operand.hbm [shape: f32[2,8,128], index: 14, kind: output, shape index: {2}]  }
   0x1   :  { %9211 = sst [smem:[#allocation68_spill]] %s9133_s3 }
   0x2   :  { %9212 = sst [smem:[#allocation69_spill]] %s9134_s4 }
   0x3   :  { %9213 = sst [smem:[#allocation70_spill]] %s9141_s11 }
   0x4   :  { %9214 = sst [smem:[#allocation71_spill]] %s9142_s12 }
   0x5   :  { %9215 = sst [smem:[#allocation72_spill]] %s9143_s13 }
   0x6   :  { %9216 = sst [smem:[#allocation73_spill]] %s9144_s14 }
   0x7   :  { %20 = vsyncpa [#allocation5], 0 }
   0x8   :  { %22 = vsyncpa [#allocation5 + $0x1], 0 }
   0x9   :  { %23 = vsyncpa [#allocation8], 0 }
   0xa   :  { %24 = vsyncpa [#allocation11], 0 }
   0xb   :  { %25 = vsyncpa [#allocation6], 0 }
   0xc   :  { %27 = vsyncpa [#allocation6 + $0x1], 0 }
   0xd   :  { %28 = vsyncpa [#allocation15], 0 }
   0xe   :  { %30 = vsyncpa [#allocation15 + $0x1], 0  ;;  %s7077_s29 = smov 0   ;;  %s7079_s30 = smov 0  }
   0xf   :  { %s7081_s15 = smov 0   ;;  %s7083_s16 = smov 0  }
  0x10 LB: > { %9217 = sst [smem:[#allocation22_spill]] %s6971_s29  ;;  %s7098_s17 = sadd.s32 4294967295, %s6983_s16   ;;  %s6983_s16 = sphi %s7083_s16, %s9342_s16   ;;  %s6979_s15 = sphi %s7081_s15, %s9341_s15   ;;  %s6975_s30 = sphi %s7079_s30, %s9340_s30   ;;  %s6971_s29 = sphi %s7077_s29, %s9339_s29  }
  0x11   : > { %s9145_s18 = sadd.s32 4294967294, %s6983_s16   ;;  %p82_p0 = scmp.ne.s32.totalorder %s6975_s30, %s6971_s29 }
  0x12   : > { %p9149_p1 = scmp.eq.s32.totalorder %s7098_s17, 0  ;;  %p332_p3 = scmp.eq.s32.totalorder %s9145_s18, 1 }
  0x13   : > { %p5153_p5 = scmp.ge.s32.totalorder %s6983_s16, 1  ;;  %p391_p7 = scmp.lt.s32.totalorder %s6983_s16, 3 }
  0x14   : > { %p7109_p4 = por %p9149_p1, %p82_p0  ;;  %p7114_p6 = por %p332_p3, %p82_p0 }
  0x15   : > { %p7119_p8 = pnand %p5153_p5, %p391_p7  ;;  %s6985_s22 = smov [#allocation7]  }
  0x16   : > { %s9218_s19 = scalar_select %p7109_p4, 1, 0 }
  0x17   : > { %s9219_s20 = scalar_select %p7114_p6, 1, 0 }
  0x18   : > { %s9221_s21 = scalar_select %p7119_p8, 1, 0 }
  0x19   : > { %9220 = sst [smem:[#allocation23_spill]] %s9219_s20  ;;  %s403_s23 = sshll.u32 %s6985_s22, 4  ;;  %s7123_s23 = int_to_ptr.vmem [resolvable:$true] %s403_s23 }
  0x1a   : > { %p6287_p9 = pneg %p7119_p8  ;;  %s6986_s25 = smov [#allocation10]  }
  0x1b   : > { %s435_s26 = sshll.u32 %s6986_s25, 4  ;;  %s9223_s4 = sld [smem:[#allocation69_spill]]  ;;  %s7134_s26 = int_to_ptr.vmem [resolvable:$true] %s435_s26 }
  0x1c   : > { %p7130_p11 = pnand %p6287_p9, %p9149_p1 }
  0x1e   : > { %p7144_p13 = pneg %p7130_p11 }
  0x21   : > { %s6707_s18 = scalar_lea.hbm %s9223_s4, 1024 }
  0x22   : > { %p6708_p12 = scmp.ne.s32.totalorder %s9223_s4, %s6707_s18  ;;  %p6714_p5 = scmp.lt.u32.totalorder %s6707_s18, %s9223_s4 }
  0x24   : > { %p6710_p0 = pnand %p7144_p13, %p6708_p12 }
  0x26   : > { %p6711_p3 = pneg %p6710_p0 }
  0x28   : > { %p6716_p7 = pnand %p6714_p5, %p6711_p3 }
  0x2a   : > { %6719 = shalt.err (!%p6716_p7)
}
  0x2b   : > { %s6720_s20 = scalar_lea.vmem %s7123_s23, 1024  ;;  %p6728_p2 = scmp.lt.s32.totalorder %s7123_s23, %s7123_s23 }
  0x2c   : > { %p6721_p9 = scmp.ne.s32.totalorder %s7123_s23, %s6720_s20  ;;  %p6729_p6 = scmp.lt.s32.totalorder %s6720_s20, %s6720_s20 }
  0x2e   : > { %p6723_p10 = pnand %p6721_p9, %p7144_p13  ;;  %p6730_p12 = por %p6729_p6, %p6728_p2 }
  0x30   : > { %p6724_p1 = pneg %p6723_p10 }
  0x32   : > { %p6731_p0 = pnand %p6730_p12, %p6724_p1 }
  0x34   : > { %6734 = shalt.err (!%p6731_p0)
}
  0x35   : > { %s9152_s27 = smov 64   ;;  %s9154_s14 = smov 4  }
  0x36   : > { %6290 = dma.hbm_to_vmem [thread:$0]  (!%p7130_p11), %s9223_s4, 1024, %s7123_s23, [#allocation8], %s9152_s27, %s9152_s27, %s9154_s14  }
  0x37   : > { %s6735_s20 = scalar_lea.hbm %s9138_s8, 3072 }
  0x38   : > { %p6736_p1 = scmp.ne.s32.totalorder %s9138_s8, %s6735_s20  ;;  %p6742_p10 = scmp.lt.u32.totalorder %s6735_s20, %s9138_s8 }
  0x3a   : > { %p6738_p2 = pnand %p6736_p1, %p7144_p13 }
  0x3c   : > { %p6739_p6 = pneg %p6738_p2 }
  0x3e   : > { %p6744_p3 = pnand %p6742_p10, %p6739_p6 }
  0x40   : > { %6747 = shalt.err (!%p6744_p3)
}
  0x41   : > { %s6748_s23 = scalar_lea.vmem %s7134_s26, 3072  ;;  %p6756_p12 = scmp.lt.s32.totalorder %s7134_s26, %s7134_s26 }
  0x42   : > { %p6749_p5 = scmp.ne.s32.totalorder %s7134_s26, %s6748_s23  ;;  %p6757_p0 = scmp.lt.s32.totalorder %s6748_s23, %s6748_s23 }
  0x44   : > { %p6751_p7 = pnand %p6749_p5, %p7144_p13  ;;  %p6758_p1 = por %p6757_p0, %p6756_p12 }
  0x46   : > { %p6752_p9 = pneg %p6751_p7 }
  0x48   : > { %p6759_p2 = pnand %p6758_p1, %p6752_p9 }
  0x4a   : > { %6762 = shalt.err (!%p6759_p2)
}
  0x4b   : > { %s6989_s11 = smov 192   ;;  %s6990_s3 = smov 12  }
  0x4c   : > { %6296 = dma.hbm_to_vmem [thread:$0]  (!%p7130_p11), %s9138_s8, 3072, %s7134_s26, [#allocation11], %s6989_s11, %s6989_s11, %s6990_s3  }
  0x4d   : > { %s6991_s18 = smov [#allocation9]   ;;  %s6992_s22 = smov [#allocation12]  }
  0x4e   : > { %s419_s28 = sshll.u32 %s6991_s18, 4  ;;  %s451_s25 = sshll.u32 %s6992_s22, 4  ;;  %s420_s28 = int_to_ptr.vmem [resolvable:$true] %s419_s28  ;;  %s7191_s25 = int_to_ptr.vmem [resolvable:$true] %s451_s25 }
  0x4f   : > { %s6763_s27 = scalar_lea.hbm %s9136_s6, 1024 }
  0x50   : > { %p6764_p6 = scmp.ne.s32.totalorder %s9136_s6, %s6763_s27  ;;  %p6770_p5 = scmp.lt.u32.totalorder %s6763_s27, %s9136_s6 }
  0x52   : > { %p6766_p10 = pnand %p6764_p6, %p7144_p13 }
  0x54   : > { %p6767_p3 = pneg %p6766_p10 }
  0x56   : > { %p6772_p7 = pnand %p6770_p5, %p6767_p3 }
  0x58   : > { %6775 = shalt.err (!%p6772_p7)
}
  0x59   : > { %s6776_s11 = scalar_lea.vmem %s420_s28, 1024  ;;  %p6784_p1 = scmp.lt.s32.totalorder %s420_s28, %s420_s28 }
  0x5a   : > { %p6777_p9 = scmp.ne.s32.totalorder %s420_s28, %s6776_s11  ;;  %p6785_p2 = scmp.lt.s32.totalorder %s6776_s11, %s6776_s11 }
  0x5c   : > { %p6779_p12 = pnand %p6777_p9, %p7144_p13  ;;  %p6786_p4 = por %p6785_p2, %p6784_p1 }
  0x5e   : > { %p6780_p0 = pneg %p6779_p12 }
  0x60   : > { %p6787_p8 = pnand %p6786_p4, %p6780_p0 }
  0x62   : > { %6790 = shalt.err (!%p6787_p8)
}
  0x63   : > { %s9225_s4 = smov 4   ;;  %s9226_s14 = smov 64  }
  0x64   : > { %6293 = dma.hbm_to_vmem [thread:$0]  (!%p7130_p11), %s9136_s6, 1024, %s420_s28, [#allocation8], %s9226_s14, %s9226_s14, %s9225_s4  }
  0x65   : > { %s6791_s22 = scalar_lea.hbm %s9140_s10, 1024 }
  0x66   : > { %p6792_p6 = scmp.ne.s32.totalorder %s9140_s10, %s6791_s22  ;;  %p6798_p10 = scmp.lt.u32.totalorder %s6791_s22, %s9140_s10 }
  0x68   : > { %p6794_p4 = pnand %p6792_p6, %p7144_p13 }
  0x6a   : > { %p6795_p8 = pneg %p6794_p4 }
  0x6c   : > { %p6800_p3 = pnand %p6798_p10, %p6795_p8 }
  0x6e   : > { %6803 = shalt.err (!%p6800_p3)
}
  0x6f   : > { %s6804_s28 = scalar_lea.vmem %s7191_s25, 1024  ;;  %p6812_p12 = scmp.lt.s32.totalorder %s7191_s25, %s7191_s25 }
  0x70   : > { %p6805_p5 = scmp.ne.s32.totalorder %s7191_s25, %s6804_s28  ;;  %p6813_p0 = scmp.lt.s32.totalorder %s6804_s28, %s6804_s28 }
  0x72   : > { %p6807_p7 = pnand %p6805_p5, %p7144_p13  ;;  %p6814_p1 = por %p6813_p0, %p6812_p12 }
  0x74   : > { %p6808_p9 = pneg %p6807_p7 }
  0x76   : > { %p6815_p2 = pnand %p6814_p1, %p6808_p9 }
  0x78   : > { %6818 = shalt.err (!%p6815_p2)
}
  0x79   : > { %6299 = dma.hbm_to_vmem [thread:$0]  (!%p7130_p11), %s9140_s10, 1024, %s7191_s25, [#allocation11], %s9226_s14, %s9226_s14, %s9225_s4  }
  0x7a   : > { %s7241_s29 = sadd.s32 1, %s6983_s16   ;;  %s69_s27 = sadd.s32 1, %s6979_s15 }
  0x7b   : > { %s66_s24 = ssub.s32 %s6983_s16, %s7241_s29  ;;  %p76_p6 = scmp.ne.s32.totalorder %s6979_s15, %s6975_s30 }
  0x7c   : > { %p67_p13 = scmp.eq.s32.totalorder %s66_s24, 0  ;;  %p77_p4 = scmp.eq.s32.totalorder %s6983_s16, 0 }
  0x7d   : > { %p9227_p10 = scmp.eq.s32.totalorder %s7098_s17, 1  ;;  %p6318_p5 = scmp.lt.s32.totalorder %s6983_s16, 2 }
  0x7e   : > { %s7250_s13 = scalar_select %p67_p13, %s6979_s15, %s69_s27  }
  0x7f   : > { %p78_p8 = por %p77_p4, %p76_p6  ;;  %p7254_p3 = por %p9227_p10, %p76_p6 }
  0x80   : > { %s476_s22 = sand.u32 1, %s6979_s15   ;;  %s5340_s25 = sshll.u32 %s6983_s16, 10 }
  0x81   : > { %s5159_s20 = sshll.u32 %s476_s22, 6  ;;  %s7264_s26 = scalar_lea.hbm %s9131_s1, %s5340_s25 }
  0x82   : > { %s480_s28 = scalar_lea.vmem [#allocation4], %s5159_s20  ;;  %p7268_p11 = pnand %p6318_p5, %p78_p8 }
  0x83   : > { %s487_s11 = sshll.u32 %s480_s28, 4  ;;  %s7272_s24 = scalar_lea.sflag [#allocation5], %s476_s22  ;;  %s7266_s11 = int_to_ptr.vmem [resolvable:$true] %s487_s11 }
  0x84   : > { %s6819_s27 = scalar_lea.hbm %s7264_s26, 1024  ;;  %p6821_p9 = pneg %p7268_p11 }
  0x85   : > { %p6820_p7 = scmp.ne.s32.totalorder %s7264_s26, %s6819_s27  ;;  %s6824_s23 = scalar_lea.hbm %s9131_s1, 2048 }
  0x86   : > { %p6825_p1 = scmp.lt.u32.totalorder %s7264_s26, %s9131_s1  ;;  %p6826_p2 = scmp.lt.u32.totalorder %s6824_s23, %s6819_s27 }
  0x87   : > { %p6822_p12 = pnand %p6821_p9, %p6820_p7  ;;  %p6828_p6 = scmp.lt.u32.totalorder %s6819_s27, %s7264_s26 }
  0x88   : > { %p6827_p13 = por %p6826_p2, %p6825_p1 }
  0x89   : > { %p6823_p0 = pneg %p6822_p12 }
  0x8a   : > { %p6829_p4 = por %p6828_p6, %p6827_p13 }
  0x8c   : > { %p6830_p8 = pnand %p6829_p4, %p6823_p0 }
  0x8e   : > { %6833 = shalt.err (!%p6830_p8)
}
  0x8f   : > { %s6834_s22 = scalar_lea.vmem %s7266_s11, 1024  ;;  %s6993_s20 = smov [#allocation4]  }
  0x90   : > { %p6835_p10 = scmp.ne.s32.totalorder %s7266_s11, %s6834_s22  ;;  %s6839_s25 = sshll.u32 %s6993_s20, 4  ;;  %s6840_s25 = int_to_ptr.vmem [resolvable:$false] %s6839_s25 }
  0x91   : > { %s6841_s12 = scalar_lea.vmem %s6840_s25, 2048  ;;  %p6842_p12 = scmp.lt.s32.totalorder %s7266_s11, %s6840_s25 }
  0x92   : > { %p6837_p5 = pnand %p6835_p10, %p6821_p9  ;;  %p6843_p1 = scmp.lt.s32.totalorder %s6841_s12, %s6834_s22 }
  0x94   : > { %p6838_p7 = pneg %p6837_p5  ;;  %p6844_p2 = por %p6843_p1, %p6842_p12 }
  0x96   : > { %p6845_p13 = pnand %p6844_p2, %p6838_p7 }
  0x98   : > { %6848 = shalt.err (!%p6845_p13)
}
  0x99   : > { %6303 = dma.hbm_to_vmem [thread:$0]  (!%p7268_p11), %s7264_s26, 1024, %s7266_s11, %s7272_s24, %s9226_s14, %s9226_s14, %s9225_s4  }
  0x9a   : > { %p9230_p9 = scmp.ne.s32.totalorder %s9221_s21, 0 }
  0x9c   : > { %513 = sbr.rel (%p9230_p9) target bundleno = 2683 (0xa7b), region = 68 }
  0xa3   : > { %s7306_s27 = sand.u32 1, %s6975_s30   ;;  %p9231_p0 = scmp.ne.s32.totalorder %s9218_s19, 0 }
  0xa4   : > { %s7309_s23 = sshll.u32 %s7306_s27, 6  ;;  %s516_s3 = scalar_lea.sflag [#allocation5], %s7306_s27 }
  0xa5   : > { %s7313_s28 = scalar_lea.vmem [#allocation4], %s7309_s23 }
  0xa6   : > { %6950 = dma.done.wait (%p9231_p0), %s516_s3, 1024  }
  0xa7   : > { %6952 = vsyncadd (%p9231_p0), %s516_s3, 4294966272  ;;  %p9232_p11 = scmp.eq.s32.totalorder %s7098_s17, 0 }
  0xa9   : > { %6954 = dma.done.wait (%p9232_p11), [#allocation8], 2048   ;;  %p9233_p6 = pmov %p9232_p11 }
  0xab   : > { %6956 = vsyncadd (%p9233_p6), [#allocation8], 4294965248  ;;  %p9234_p4 = pmov %p9233_p6 }
  0xad   : > { %6958 = dma.done.wait (%p9234_p4), [#allocation11], 4096   ;;  %p9235_p8 = pmov %p9234_p4 }
  0xae   : > { %p603_p10 = scmp.lt.s32.totalorder %s7098_s17, 1  ;;  %v6371_v11 = vld [vmem:[%s7313_s28] sm:$0xff]   ;;  %v6380_v19 = vld [vmem:[#allocation7 + $0x8] sm:$0xff]   ;;  %v6381_v23 = vld [vmem:[#allocation7 + $0x10] sm:$0xff]   ;;  %v1486_v41 = vlaneseq  ;;  %v6994_v42 = vmov 0   ;;  %vm1929_vm0 = vcmask 261120  }
  0xaf   : > { %6960 = vsyncadd (%p9235_p8), [#allocation11], 4294963200  ;;  %5719 = vmatprep.mubr.bf16.mxu0 %v6371_v11  ;;  %v6379_v18 = vld [vmem:[#allocation7] sm:$0xff]   ;;  %v6382_v26 = vld [vmem:[#allocation7 + $0x18] sm:$0xff]   ;;  %6370 = vset.pattern.permute.xlu1 %v6994_v42  ;;  %s6995_s25 = smov 96   ;;  %s9207_s24 = smov 64  }
  0xb0   : > { %s7329_s21 = scalar_select %p603_p10, %s7098_s17, 1  ;;  %5735 = vmatprep.subr.bf16.mxu1 %v6379_v18  ;;  %v6383_v28 = vld [vmem:[#allocation7 + $0x20] sm:$0xff]   ;;  %v6384_v30 = vld [vmem:[#allocation7 + $0x28] sm:$0xff]   ;;  %v6373_v32 = vld [vmem:[%s7313_s28 + $0x10] sm:$0xff]   ;;  %6369 = vset.pattern.permute.xlu0 %v6994_v42  ;;  %v7445_v43 = vshrl.u32 %v1486_v41, 7 }
  0xb1   : > { %5736 = vmatpush3.bf16.msra.mxu1 %v6379_v18  ;;  %v6372_v31 = vld [vmem:[%s7313_s28 + $0x8] sm:$0xff]   ;;  %v6374_v33 = vld [vmem:[%s7313_s28 + $0x18] sm:$0xff]   ;;  %v6375_v34 = vld [vmem:[%s7313_s28 + $0x20] sm:$0xff]   ;;  %s6997_s22 = smov 32   ;;  %s9309_s12 = sld [smem:[#allocation68_spill]] }
  0xb2   : > { %s5341_s19 = sshll.u32 %s7329_s21, 7  ;;  %5737 = vmatprep.subr.bf16.mxu1 %v6380_v19  ;;  %v6376_v35 = vld [vmem:[%s7313_s28 + $0x28] sm:$0xff]   ;;  %v6377_v36 = vld [vmem:[%s7313_s28 + $0x30] sm:$0xff]   ;;  %v6378_v37 = vld [vmem:[%s7313_s28 + $0x38] sm:$0xff]   ;;  %v1496_v44 = vsub.s32 2, %v7445_v43  ;;  %s7695_s28 = scalar_lea.vmem [#allocation13], %s7309_s23 }
  0xb3   : > { %s7337_s26 = scalar_lea.vmem %s9130_s0, %s5341_s19  ;;  %v6385_v38 = vld [vmem:[#allocation7 + $0x30] sm:$0xff]   ;;  %v6386_v39 = vld [vmem:[#allocation7 + $0x38] sm:$0xff]   ;;  %v7451_v45 = vld [vmem:[%s9139_s9] sm:$0x7]  ;;  %s610_s11 = scalar_lea.vmem %s9132_s2, %s7329_s21 }
  0xb4   : > { %v7340_v0 = vld [vmem:[%s7337_s26] sm:$0xff]  ;;  %v7343_v1 = vld [vmem:[%s7337_s26 + $0x8] sm:$0xff]  ;;  %v7346_v2 = vld [vmem:[%s7337_s26 + $0x10] sm:$0xff]  ;;  %v7454_v46 = vrot.slane %v7451_v45, %v1496_v44  ;;  %s9209_s21 = sshll.u32 %s7098_s17, 10  ;;  %s9310_s14 = sld [smem:[#allocation71_spill]] }
  0xb5   : > { %v7350_v3 = vpack.c.bf16 %v7343_v1, %v7340_v0  ;;  %v7353_v4 = vld [vmem:[%s7337_s26 + $0x18] sm:$0xff]  ;;  %v7360_v6 = vld [vmem:[%s7337_s26 + $0x20] sm:$0xff]  ;;  %v7363_v7 = vld [vmem:[%s7337_s26 + $0x28] sm:$0xff]  ;;  %5738 = vmatpush3.bf16.msra.mxu1 %v6380_v19  ;;  %s4895_s20 = scalar_lea.sflag [#allocation6], %s7306_s27 }
  0xb6   : > { %v7357_v5 = vpack.c.bf16 %v7353_v4, %v7346_v2  ;;  %v7368_v8 = vld [vmem:[%s7337_s26 + $0x30] sm:$0xff]  ;;  %v7373_v9 = vpack.c.bf16 %v7363_v7, %v7360_v6  ;;  %v7376_v10 = vld [vmem:[%s7337_s26 + $0x38] sm:$0xff]  ;;  %v7386_v13 = vld [vmem:[%s7337_s26 + $0x40] sm:$0xff]  ;;  %5739 = vmatprep.subr.bf16.mxu1 %v6381_v23 }
  0xb7   : > { %5703 = vmatprep.subr.bf16.mxu0 %v7350_v3  ;;  %v7383_v12 = vpack.c.bf16 %v7376_v10, %v7368_v8  ;;  %v7389_v14 = vld [vmem:[%s7337_s26 + $0x48] sm:$0xff]  ;;  %v7393_v15 = vld [vmem:[%s7337_s26 + $0x50] sm:$0xff]  ;;  %v7401_v17 = vld [vmem:[%s7337_s26 + $0x58] sm:$0xff]  ;;  %s8864_s3 = scalar_lea.vmem %s9309_s12, %s5341_s19  ;;  %s6998_s12 = smov [#allocation13]  }
  0xb8   : > { %5704 = vmatpush3.bf16.msra.mxu0 %v7350_v3  ;;  %v7398_v16 = vpack.c.bf16 %v7389_v14, %v7386_v13  ;;  %v7405_v20 = vld [vmem:[%s7337_s26 + $0x60] sm:$0xff]  ;;  %v7410_v21 = vpack.c.bf16 %v7401_v17, %v7393_v15  ;;  %v7413_v22 = vld [vmem:[%s7337_s26 + $0x68] sm:$0xff]  ;;  %v7417_v24 = vld [vmem:[%s7337_s26 + $0x70] sm:$0xff] }
  0xb9   : > { %5705 = vmatprep.subr.bf16.mxu0 %v7357_v5  ;;  %v7420_v25 = vld [vmem:[%s7337_s26 + $0x78] sm:$0xff]  ;;  %v7425_v27 = vpack.c.bf16 %v7413_v22, %v7405_v20  ;;  %5740 = vmatpush3.bf16.msra.mxu1 %v6381_v23  ;;  %v6389_v40 = vld [vmem:[#allocation10 + $0x4] ss:$12 sps:$4 sm:$0xff]   ;;  %v6412_v48 = vld [vmem:[#allocation9 + $0x8] sm:$0xff]  }
  0xba   : > { %v7431_v29 = vpack.c.bf16 %v7420_v25, %v7417_v24  ;;  %5741 = vmatprep.subr.bf16.mxu1 %v6382_v26  ;;  %v6411_v47 = vld [vmem:[#allocation9] sm:$0xff]   ;;  %v6413_v49 = vld [vmem:[#allocation9 + $0x10] sm:$0xff]   ;;  %v6414_v50 = vld [vmem:[#allocation9 + $0x18] sm:$0xff]  }
  0xbb   : > { %v6415_v51 = vld [vmem:[#allocation9 + $0x20] sm:$0xff]   ;;  %v6416_v52 = vld [vmem:[#allocation9 + $0x28] sm:$0xff]  }
  0xbc   : > { %5706 = vmatpush3.bf16.msra.mxu0 %v7357_v5  ;;  %v6387_v63 = vld [vmem:[#allocation10] ss:$12 sps:$4 sm:$0xff]   ;;  %v6392_v11 = vld [vmem:[#allocation10 + $0x1c] ss:$12 sps:$4 sm:$0xff]  }
  0xbd   : > { %5707 = vmatprep.subr.bf16.mxu0 %v7373_v9  ;;  %5742 = vmatpush3.bf16.msra.mxu1 %v6382_v26  ;;  %v6390_v26 = vld [vmem:[#allocation10 + $0x18] ss:$12 sps:$4 sm:$0xff]  }
  0xbe   : > { %5743 = vmatprep.subr.bf16.mxu1 %v6383_v28 }
  0xc0   : > { %5708 = vmatpush3.bf16.msra.mxu0 %v7373_v9 }
  0xc1   : > { %5709 = vmatprep.subr.bf16.mxu0 %v7383_v12  ;;  %5744 = vmatpush3.bf16.msra.mxu1 %v6383_v28 }
  0xc2   : > { %5745 = vmatprep.subr.bf16.mxu1 %v6384_v30 }
  0xc4   : > { %5710 = vmatpush3.bf16.msra.mxu0 %v7383_v12 }
  0xc5   : > { %5711 = vmatprep.subr.bf16.mxu0 %v7398_v16  ;;  %5746 = vmatpush3.bf16.msra.mxu1 %v6384_v30 }
  0xc6   : > { %5747 = vmatprep.subr.bf16.mxu1 %v6385_v38 }
  0xc8   : > { %5712 = vmatpush3.bf16.msra.mxu0 %v7398_v16 }
  0xc9   : > { %5713 = vmatprep.subr.bf16.mxu0 %v7410_v21  ;;  %5748 = vmatpush3.bf16.msra.mxu1 %v6385_v38 }
  0xca   : > { %5749 = vmatprep.subr.bf16.mxu1 %v6386_v39 }
  0xcc   : > { %5714 = vmatpush3.bf16.msra.mxu0 %v7410_v21 }
  0xcd   : > { %5715 = vmatprep.subr.bf16.mxu0 %v7425_v27  ;;  %5750 = vmatpush3.bf16.msra.mxu1 %v6386_v39 }
  0xce   : > { %1629 = vmatprep.subr.bf16.mxu1 %v6389_v40 }
  0xd0   : > { %5716 = vmatpush3.bf16.msra.mxu0 %v7425_v27 }
  0xd1   : > { %5717 = vmatprep.subr.bf16.mxu0 %v7431_v29 }
  0xd4   : > { %5718 = vmatpush3.bf16.msra.mxu0 %v7431_v29 }
  0xd5   : > { %5767 = vmatprep.subr.bf16.mxu0 %v6411_v47 }
  0xd7   : > { %5720 = vmatmul.mubr.bf16.vlgmr.msra.gmra.mrb[0].mxu0 %v6372_v31 }
  0xd8   : > { %5723 = vmatprep.mubr.bf16.mxu0 %v6373_v32  ;;  %5768 = vmatpush3.bf16.msra.mxu0 %v6411_v47  ;;  %v6399_v47 = vld [vmem:[#allocation10 + $0x60] ss:$12 sps:$4 sm:$0xff]  }
  0xd9   : > { %5769 = vmatprep.subr.bf16.mxu0 %v6412_v48 }
  0xdc   : > { %5770 = vmatpush3.bf16.msra.mxu0 %v6412_v48  ;;  %v6404_v48 = vld [vmem:[#allocation10 + $0x7c] ss:$12 sps:$4 sm:$0xff]  }
  0xdd   : > { %5771 = vmatprep.subr.bf16.mxu0 %v6413_v49 }
  0xdf   : > { %5724 = vmatmul.mubr.bf16.gmra.mrb[4].mxu0 %v6374_v33  ;;  %v6393_v33 = vld [vmem:[#allocation10 + $0x30] ss:$12 sps:$4 sm:$0xff]  }
  0xe0   : > { %5727 = vmatprep.mubr.bf16.mxu0 %v6375_v34  ;;  %5772 = vmatpush3.bf16.msra.mxu0 %v6413_v49  ;;  %v6398_v34 = vld [vmem:[#allocation10 + $0x4c] ss:$12 sps:$4 sm:$0xff]  }
  0xe1   : > { %5773 = vmatprep.subr.bf16.mxu0 %v6414_v50 }
  0xe4   : > { %5774 = vmatpush3.bf16.msra.mxu0 %v6414_v50 }
  0xe5   : > { %5775 = vmatprep.subr.bf16.mxu0 %v6415_v51 }
  0xe7   : > { %5728 = vmatmul.mubr.bf16.gmra.mrb[8].mxu0 %v6376_v35 }
  0xe8   : > { %5731 = vmatprep.mubr.bf16.mxu0 %v6377_v36  ;;  %5776 = vmatpush3.bf16.msra.mxu0 %v6415_v51 }
  0xe9   : > { %5777 = vmatprep.subr.bf16.mxu0 %v6416_v52 }
  0xec   : > { %5778 = vmatpush3.bf16.msra.mxu0 %v6416_v52 }
  0xef   : > { %5732 = vmatmul.mubr.bf16.gmra.mrb[12].mxu0 %v6378_v37 }
 0x1aa   : > { %v5721_v53 = vpop.f32.mrb[0].mxu0 }
 0x1ab   : > { %v755_v54 = vpop.f32.mrb[1].mxu0  ;;  %v820_v56 = vadd.f32 %v5721_v53, %v7346_v2 }
 0x1ac   : > { %v5722_v55 = vpop.f32.mrb[2].mxu0  ;;  %v818_v59 = vadd.f32 %v755_v54, %v7340_v0  ;;  %v6395_v0 = vld [vmem:[#allocation10 + $0x34] ss:$12 sps:$4 sm:$0xff]  }
 0x1ad   : > { %v821_v57 = vadd.f32 %v5722_v55, %v7353_v4  ;;  %v758_v58 = vpop.f32.mrb[3].mxu0 }
 0x1ae   : > { %v819_v60 = vadd.f32 %v758_v58, %v7343_v1  ;;  %v6410_v58 = vld [vmem:[#allocation10 + $0xac] ss:$12 sps:$4 sm:$0xff]  }
 0x1af   : > { %v835_v61 = vpack.c.bf16 %v821_v57, %v820_v56  ;;  %v6405_v57 = vld [vmem:[#allocation10 + $0x90] ss:$12 sps:$4 sm:$0xff]  }
 0x1b0   : > { %v834_v62 = vpack.c.bf16 %v819_v60, %v818_v59  ;;  %v6408_v59 = vld [vmem:[#allocation10 + $0xa8] ss:$12 sps:$4 sm:$0xff]  }
 0x1b2   : > { %v5725_v18 = vpop.f32.mrb[4].mxu0  ;;  %5751 = vmatprep.mubr.bf16.mxu1 %v834_v62 }
 0x1b3   : > { %v771_v19 = vpop.f32.mrb[5].mxu0  ;;  %5752 = vmatmul.mubr.bf16.vlgmr.msra.gmra.mrb[0].mxu1 %v835_v61  ;;  %v824_v2 = vadd.f32 %v5725_v18, %v7368_v8 }
 0x1b4   : > { %v5726_v23 = vpop.f32.mrb[6].mxu0  ;;  %1630 = vmatpush1.bf16.msra.mxu1 %v6387_v63  ;;  %v822_v1 = vadd.f32 %v771_v19, %v7360_v6 }
 0x1b5   : > { %v825_v4 = vadd.f32 %v5726_v23, %v7376_v10  ;;  %v774_v28 = vpop.f32.mrb[7].mxu0  ;;  %1631 = vmatprep.subr.bf16.mxu1 %v6392_v11  ;;  %v6396_v10 = vld [vmem:[#allocation10 + $0x48] ss:$12 sps:$4 sm:$0xff]  }
 0x1b6   : > { %v823_v30 = vadd.f32 %v774_v28, %v7363_v7  ;;  %v6401_v7 = vld [vmem:[#allocation10 + $0x64] ss:$12 sps:$4 sm:$0xff]  }
 0x1b7   : > { %v837_v31 = vpack.c.bf16 %v825_v4, %v824_v2 }
 0x1b8   : > { %v836_v32 = vpack.c.bf16 %v823_v30, %v822_v1  ;;  %1632 = vmatpush1.bf16.msra.mxu1 %v6390_v26 }
 0x1b9   : > { %1633 = vmatprep.subr.bf16.mxu1 %v6395_v0 }
 0x1ba   : > { %v5729_v35 = vpop.f32.mrb[8].mxu0  ;;  %5755 = vmatprep.mubr.bf16.mxu1 %v836_v32 }
 0x1bb   : > { %v787_v36 = vpop.f32.mrb[9].mxu0  ;;  %5756 = vmatmul.mubr.bf16.gmra.mrb[4].mxu1 %v837_v31  ;;  %v828_v37 = vadd.f32 %v5729_v35, %v7393_v15 }
 0x1bc   : > { %v5730_v8 = vpop.f32.mrb[10].mxu0  ;;  %1634 = vmatpush1.bf16.msra.mxu1 %v6393_v33  ;;  %v826_v39 = vadd.f32 %v787_v36, %v7386_v13 }
 0x1bd   : > { %v829_v38 = vadd.f32 %v5730_v8, %v7401_v17  ;;  %v790_v6 = vpop.f32.mrb[11].mxu0  ;;  %1635 = vmatprep.subr.bf16.mxu1 %v6398_v34  ;;  %v6402_v17 = vld [vmem:[#allocation10 + $0x78] ss:$12 sps:$4 sm:$0xff]  }
 0x1be   : > { %v827_v40 = vadd.f32 %v790_v6, %v7389_v14  ;;  %v6407_v14 = vld [vmem:[#allocation10 + $0x94] ss:$12 sps:$4 sm:$0xff]  }
 0x1bf   : > { %v839_v41 = vpack.c.bf16 %v829_v38, %v828_v37 }
 0x1c0   : > { %v838_v44 = vpack.c.bf16 %v827_v40, %v826_v39  ;;  %1636 = vmatpush1.bf16.msra.mxu1 %v6396_v10 }
 0x1c1   : > { %1637 = vmatprep.subr.bf16.mxu1 %v6401_v7 }
 0x1c2   : > { %v5733_v49 = vpop.f32.mrb[12].mxu0  ;;  %5759 = vmatprep.mubr.bf16.mxu1 %v838_v44 }
 0x1c3   : > { %v803_v50 = vpop.f32.mrb[13].mxu0  ;;  %5760 = vmatmul.mubr.bf16.gmra.mrb[8].mxu1 %v839_v41  ;;  %v832_v51 = vadd.f32 %v5733_v49, %v7417_v24  ;;  %v5183_v24 = vld [vmem:[%s9135_s5] ss:$0 sm:$0xff] }
 0x1c4   : > { %v5734_v15 = vpop.f32.mrb[14].mxu0  ;;  %1638 = vmatpush1.bf16.msra.mxu1 %v6399_v47  ;;  %v830_v53 = vadd.f32 %v803_v50, %v7405_v20  ;;  %v6417_v20 = vld [vmem:[#allocation9 + $0x30] sm:$0xff]  }
 0x1c5   : > { %v833_v52 = vadd.f32 %v5734_v15, %v7420_v25  ;;  %v806_v13 = vpop.f32.mrb[15].mxu0  ;;  %1639 = vmatprep.subr.bf16.mxu1 %v6404_v48  ;;  %5779 = vmatprep.subr.bf16.mxu0 %v6417_v20 }
 0x1c6   : > { %v831_v54 = vadd.f32 %v806_v13, %v7413_v22  ;;  %5780 = vmatpush3.bf16.msra.mxu0 %v6417_v20  ;;  %v6418_v22 = vld [vmem:[#allocation9 + $0x38] sm:$0xff]  }
 0x1c7   : > { %v841_v55 = vpack.c.bf16 %v833_v52, %v832_v51  ;;  %5781 = vmatprep.subr.bf16.mxu0 %v6418_v22 }
 0x1c8   : > { %v840_v56 = vpack.c.bf16 %v831_v54, %v830_v53  ;;  %1640 = vmatpush1.bf16.msra.mxu1 %v6402_v17 }
 0x1c9   : > { %1641 = vmatprep.subr.bf16.mxu1 %v6407_v14 }
 0x1ca   : > { %5763 = vmatprep.mubr.bf16.mxu1 %v840_v56  ;;  %5782 = vmatpush3.bf16.msra.mxu0 %v6418_v22  ;;  %v1492_v22 = vsub.s32 1, %v7445_v43 }
 0x1cb   : > { %5764 = vmatmul.mubr.bf16.gmra.mrb[12].mxu1 %v841_v55 }
 0x1cc   : > { %1642 = vmatpush1.bf16.msra.mxu1 %v6405_v57  ;;  %1661 = vmatprep.mubr.bf16.mxu1 %v6994_v42 }
 0x1cd   : > { %1643 = vmatprep.subr.bf16.mxu1 %v6410_v58  ;;  %v1488_v58 = vsub.s32 0, %v7445_v43 }
 0x1d0   : > { %1644 = vmatpush1.bf16.msra.mxu1 %v6408_v59 }
 0x1d3   : > { %1662 = vmatmul.mubr.bf16.vlgmr.msra.gmra.mrb[16].mxu1 %v7350_v3 }
 0x1d4   : > { %1671 = vmatprep.mubr.bf16.mxu1 %v6994_v42 }
 0x1db   : > { %1672 = vmatmul.mubr.bf16.gmra.mrb[20].mxu1 %v7357_v5 }
 0x1dc   : > { %1681 = vmatprep.mubr.bf16.mxu1 %v6994_v42 }
 0x1e3   : > { %1682 = vmatmul.mubr.bf16.gmra.mrb[24].mxu1 %v7373_v9 }
 0x1e4   : > { %1691 = vmatprep.mubr.bf16.mxu1 %v6994_v42 }
 0x1eb   : > { %1692 = vmatmul.mubr.bf16.gmra.mrb[28].mxu1 %v7383_v12 }
 0x1ec   : > { %1701 = vmatprep.mubr.bf16.mxu1 %v6994_v42 }
 0x1f3   : > { %1702 = vmatmul.mubr.bf16.gmra.mrb[32].mxu1 %v7398_v16 }
 0x1f4   : > { %1711 = vmatprep.mubr.bf16.mxu1 %v6994_v42 }
 0x1fb   : > { %1712 = vmatmul.mubr.bf16.gmra.mrb[36].mxu1 %v7410_v21 }
 0x1fc   : > { %1721 = vmatprep.mubr.bf16.mxu1 %v6994_v42 }
 0x203   : > { %1722 = vmatmul.mubr.bf16.gmra.mrb[40].mxu1 %v7425_v27 }
 0x204   : > { %1731 = vmatprep.mubr.bf16.mxu1 %v6994_v42 }
 0x20b   : > { %1732 = vmatmul.mubr.bf16.gmra.mrb[44].mxu1 %v7431_v29 }
 0x286   : > { %v5753_v25 = vpop.f32.mrb[0].mxu1 }
 0x287   : > { %v956_v60 = vadd.f32 %v5753_v25, %v5183_v24  ;;  %v947_v61 = vpop.f32.mrb[1].mxu1 }
 0x288   : > { %v948_v62 = vadd.f32 %v5183_v24, %v947_v61  ;;  %v5754_v63 = vpop.f32.mrb[2].mxu1 }
 0x289   : > { %v959_v11 = vadd.f32 %v5754_v63, %v5183_v24  ;;  %v950_v18 = vpop.f32.mrb[3].mxu1  ;;  %v1012_v23 = vmax.f32 %v956_v60, 0.0 }
 0x28a   : > { %v951_v19 = vadd.f32 %v5183_v24, %v950_v18  ;;  %v1010_v2 = vmax.f32 %v948_v62, 0.0 }
 0x28b   : > { %v1013_v26 = vmax.f32 %v959_v11, 0.0  ;;  %v7496_v11 = vrot.slane %v7451_v45, %v1488_v58 }
 0x28c   : > { %v1011_v4 = vmax.f32 %v951_v19, 0.0  ;;  %v7499_v19 = vrot.slane %v7451_v45, %v1492_v22 }
 0x28d   : > { %v1027_v28 = vpack.c.bf16 %v1013_v26, %v1012_v23 }
 0x28e   : > { %v1026_v0 = vpack.c.bf16 %v1011_v4, %v1010_v2  ;;  %v5757_v1 = vpop.f32.mrb[4].mxu1 }
 0x28f   : > { %v972_v30 = vadd.f32 %v5757_v1, %v5183_v24  ;;  %v963_v31 = vpop.f32.mrb[5].mxu1 }
 0x290   : > { %v964_v32 = vadd.f32 %v5183_v24, %v963_v31  ;;  %v5758_v33 = vpop.f32.mrb[6].mxu1  ;;  %5783 = vmatprep.mubr.bf16.mxu0 %v1026_v0 }
 0x291   : > { %v975_v34 = vadd.f32 %v5758_v33, %v5183_v24  ;;  %v966_v35 = vpop.f32.mrb[7].mxu1  ;;  %5784 = vmatmul.mubr.bf16.vlgmr.msra.gmra.mrb[16].mxu0 %v1027_v28  ;;  %v1016_v8 = vmax.f32 %v972_v30, 0.0 }
 0x292   : > { %v967_v36 = vadd.f32 %v5183_v24, %v966_v35  ;;  %v1014_v37 = vmax.f32 %v964_v32, 0.0 }
 0x293   : > { %v1017_v10 = vmax.f32 %v975_v34, 0.0 }
 0x294   : > { %v1015_v38 = vmax.f32 %v967_v36, 0.0 }
 0x295   : > { %v1029_v6 = vpack.c.bf16 %v1017_v10, %v1016_v8 }
 0x296   : > { %v1028_v7 = vpack.c.bf16 %v1015_v38, %v1014_v37  ;;  %v5761_v39 = vpop.f32.mrb[8].mxu1 }
 0x297   : > { %v988_v40 = vadd.f32 %v5761_v39, %v5183_v24  ;;  %v979_v41 = vpop.f32.mrb[9].mxu1 }
 0x298   : > { %v980_v44 = vadd.f32 %v5183_v24, %v979_v41  ;;  %v5762_v47 = vpop.f32.mrb[10].mxu1  ;;  %5787 = vmatprep.mubr.bf16.mxu0 %v1028_v7  ;;  %v6419_v41 = vld [vmem:[#allocation10 + $0x8] ss:$12 sps:$4 sm:$0xff]  }
 0x299   : > { %v991_v48 = vadd.f32 %v5762_v47, %v5183_v24  ;;  %v982_v49 = vpop.f32.mrb[11].mxu1  ;;  %5788 = vmatmul.mubr.bf16.gmra.mrb[20].mxu0 %v1029_v6  ;;  %v1020_v15 = vmax.f32 %v988_v40, 0.0  ;;  %5799 = vmatprep.subr.bf16.mxu0 %v6419_v41 }
 0x29a   : > { %v983_v50 = vadd.f32 %v5183_v24, %v982_v49  ;;  %v1018_v51 = vmax.f32 %v980_v44, 0.0  ;;  %5800 = vmatpush3.bf16.msra.mxu0 %v6419_v41 }
 0x29b   : > { %v1021_v17 = vmax.f32 %v991_v48, 0.0 }
 0x29c   : > { %v1019_v52 = vmax.f32 %v983_v50, 0.0 }
 0x29d   : > { %v1031_v13 = vpack.c.bf16 %v1021_v17, %v1020_v15 }
 0x29e   : > { %v1030_v14 = vpack.c.bf16 %v1019_v52, %v1018_v51  ;;  %v5765_v53 = vpop.f32.mrb[12].mxu1  ;;  %v6420_v52 = vld [vmem:[#allocation10 + $0x20] ss:$12 sps:$4 sm:$0xff]  }
 0x29f   : > { %v1004_v54 = vadd.f32 %v5765_v53, %v5183_v24  ;;  %v995_v55 = vpop.f32.mrb[13].mxu1  ;;  %5801 = vmatprep.subr.bf16.mxu0 %v6420_v52 }
 0x2a0   : > { %v996_v56 = vadd.f32 %v5183_v24, %v995_v55  ;;  %v5766_v57 = vpop.f32.mrb[14].mxu1  ;;  %5791 = vmatprep.mubr.bf16.mxu0 %v1030_v14  ;;  %5802 = vmatpush3.bf16.msra.mxu0 %v6420_v52 }
 0x2a1   : > { %v1007_v59 = vadd.f32 %v5766_v57, %v5183_v24  ;;  %v998_v20 = vpop.f32.mrb[15].mxu1  ;;  %5792 = vmatmul.mubr.bf16.gmra.mrb[24].mxu0 %v1031_v13  ;;  %v1024_v60 = vmax.f32 %v1004_v54, 0.0  ;;  %v6421_v54 = vld [vmem:[#allocation10 + $0x38] ss:$12 sps:$4 sm:$0xff]  }
 0x2a2   : > { %v999_v25 = vadd.f32 %v5183_v24, %v998_v20  ;;  %v1022_v62 = vmax.f32 %v996_v56, 0.0  ;;  %5803 = vmatprep.subr.bf16.mxu0 %v6421_v54 }
 0x2a3   : > { %v1025_v61 = vmax.f32 %v1007_v59, 0.0 }
 0x2a4   : > { %v1023_v63 = vmax.f32 %v999_v25, 0.0  ;;  %5804 = vmatpush3.bf16.msra.mxu0 %v6421_v54 }
 0x2a5   : > { %v1033_v18 = vpack.c.bf16 %v1025_v61, %v1024_v60  ;;  %v6422_v61 = vld [vmem:[#allocation10 + $0x50] ss:$12 sps:$4 sm:$0xff]  }
 0x2a6   : > { %v1032_v23 = vpack.c.bf16 %v1023_v63, %v1022_v62  ;;  %v1663_v26 = vpop.f32.mrb[16].mxu1  ;;  %5805 = vmatprep.subr.bf16.mxu0 %v6422_v61 }
 0x2a7   : > { %v1665_v2 = vpop.f32.mrb[17].mxu1  ;;  %v1664_v24 = vadd.f32 %v1663_v26, %v7496_v11 }
 0x2a8   : > { %5795 = vmatprep.mubr.bf16.mxu0 %v1032_v23  ;;  %v1667_v4 = vpop.f32.mrb[18].mxu1  ;;  %v1666_v1 = vadd.f32 %v1665_v2, %v7499_v19  ;;  %v6423_v23 = vld [vmem:[#allocation10 + $0x68] ss:$12 sps:$4 sm:$0xff]   ;;  %5806 = vmatpush3.bf16.msra.mxu0 %v6422_v61 }
 0x2a9   : > { %v1668_v28 = vadd.f32 %v1667_v4, %v7496_v11  ;;  %5796 = vmatmul.mubr.bf16.gmra.mrb[28].mxu0 %v1033_v18  ;;  %v1669_v0 = vpop.f32.mrb[19].mxu1  ;;  %5807 = vmatprep.subr.bf16.mxu0 %v6423_v23 }
 0x2aa   : > { %v1670_v30 = vadd.f32 %v1669_v0, %v7499_v19  ;;  %5815 = vmatprep.mubr.bf16.mxu0 %v7350_v3 }
 0x2ab   : > { %v7506_v45 = vpack.c.bf16 %v1668_v28, %v1664_v24 }
 0x2ac   : > { %v7508_v31 = vpack.c.bf16 %v1670_v30, %v1666_v1  ;;  %5808 = vmatpush3.bf16.msra.mxu0 %v6423_v23 }
 0x2ad   : > { %2571 = vrot.lane.b32.xlu0 %v7506_v45, %s6995_s25  ;;  %5847 = vmatprep.mubr.msk.bf16.mxu1 %vm1929_vm0, %v7506_v45 }
 0x2ae   : > { %v1673_v32 = vpop.f32.mrb[20].mxu1  ;;  %6231 = vmatprep.subr.msk.bf16.mxu1 %vm1929_vm0, %v7508_v31  ;;  %v1955_v33 = vsel %vm1929_vm0, %v7508_v31, 0 }
 0x2af   : > { %v1675_v34 = vpop.f32.mrb[21].mxu1  ;;  %5832 = vmatpush3.bf16.xpose.msra.mxu1 %v1955_v33  ;;  %v1674_v35 = vadd.f32 %v1673_v32, %v7496_v11  ;;  %v6424_v32 = vld [vmem:[#allocation10 + $0x80] ss:$12 sps:$4 sm:$0xff]  }
 0x2b0   : > { %v1677_v3 = vpop.f32.mrb[22].mxu1  ;;  %v1676_v10 = vadd.f32 %v1675_v34, %v7499_v19  ;;  %5809 = vmatprep.subr.bf16.mxu0 %v6424_v32 }
 0x2b1   : > { %v1678_v36 = vadd.f32 %v1677_v3, %v7496_v11  ;;  %v1679_v8 = vpop.f32.mrb[23].mxu1  ;;  %2595 = vrot.lane.b32.xlu0 %v7508_v31, %s6995_s25  ;;  %5810 = vmatpush3.bf16.msra.mxu0 %v6424_v32 }
 0x2b2   : > { %v1680_v37 = vadd.f32 %v1679_v8, %v7499_v19 }
 0x2b3   : > { %v7524_v38 = vpack.c.bf16 %v1678_v36, %v1674_v35  ;;  %v6425_v36 = vld [vmem:[#allocation10 + $0x98] ss:$12 sps:$4 sm:$0xff]  }
 0x2b4   : > { %v7526_v6 = vpack.c.bf16 %v1680_v37, %v1676_v10  ;;  %5811 = vmatprep.subr.bf16.mxu0 %v6425_v36 }
 0x2b5   : > { %2573 = vrot.lane.b32.xlu1 %v7524_v38, %s6995_s25  ;;  %5812 = vmatpush3.bf16.msra.mxu0 %v6425_v36 }
 0x2b6   : > { %v1683_v7 = vpop.f32.mrb[24].mxu1  ;;  %6232 = vmatprep.subr.msk.bf16.mxu1 %vm1929_vm0, %v7526_v6  ;;  %2597 = vrot.lane.b32.xlu0 %v7526_v6, %s6995_s25  ;;  %v1958_v39 = vsel %vm1929_vm0, %v7526_v6, 0 }
 0x2b7   : > { %v1685_v40 = vpop.f32.mrb[25].mxu1  ;;  %5834 = vmatpush3.bf16.xpose.msra.mxu1 %v1958_v39  ;;  %v1684_v47 = vadd.f32 %v1683_v7, %v7496_v11 }
 0x2b8   : > { %v1687_v44 = vpop.f32.mrb[26].mxu1  ;;  %v1686_v50 = vadd.f32 %v1685_v40, %v7499_v19 }
 0x2b9   : > { %v1688_v48 = vadd.f32 %v1687_v44, %v7496_v11  ;;  %v1689_v49 = vpop.f32.mrb[27].mxu1  ;;  %v6426_v44 = vld [vmem:[#allocation10 + $0xb0] ss:$12 sps:$4 sm:$0xff]  }
 0x2ba   : > { %v1690_v15 = vadd.f32 %v1689_v49, %v7499_v19  ;;  %5813 = vmatprep.subr.bf16.mxu0 %v6426_v44 }
 0x2bb   : > { %v7540_v17 = vpack.c.bf16 %v1688_v48, %v1684_v47  ;;  %5814 = vmatpush3.bf16.msra.mxu0 %v6426_v44 }
 0x2bc   : > { %v7542_v51 = vpack.c.bf16 %v1690_v15, %v1686_v50 }
 0x2bd   : > { %2575 = vrot.lane.b32.xlu0 %v7540_v17, %s6995_s25 }
 0x2be   : > { %v1693_v13 = vpop.f32.mrb[28].mxu1  ;;  %2599 = vrot.lane.b32.xlu1 %v7542_v51, %s6995_s25  ;;  %6233 = vmatprep.subr.msk.bf16.mxu1 %vm1929_vm0, %v7542_v51  ;;  %v1961_v14 = vsel %vm1929_vm0, %v7542_v51, 0 }
 0x2bf   : > { %v1695_v53 = vpop.f32.mrb[29].mxu1  ;;  %5836 = vmatpush3.bf16.xpose.msra.mxu1 %v1961_v14  ;;  %v1694_v56 = vadd.f32 %v1693_v13, %v7496_v11  ;;  %5816 = vmatmul.mubr.bf16.vlgmr.msra.gmra.mrb[32].mxu0 %v7357_v5 }
 0x2c0   : > { %v1697_v55 = vpop.f32.mrb[30].mxu1  ;;  %v1696_v20 = vadd.f32 %v1695_v53, %v7499_v19  ;;  %5819 = vmatprep.mubr.bf16.mxu0 %v7373_v9 }
 0x2c1   : > { %v1698_v57 = vadd.f32 %v1697_v55, %v7496_v11  ;;  %v1699_v59 = vpop.f32.mrb[31].mxu1 }
 0x2c2   : > { %v1700_v22 = vadd.f32 %v1699_v59, %v7499_v19 }
 0x2c3   : > { %v7556_v25 = vpack.c.bf16 %v1698_v57, %v1694_v56 }
 0x2c4   : > { %v7558_v60 = vpack.c.bf16 %v1700_v22, %v1696_v20 }
 0x2c5   : > { %2577 = vrot.lane.b32.xlu1 %v7556_v25, %s6995_s25 }
 0x2c6   : > { %v1703_v62 = vpop.f32.mrb[32].mxu1  ;;  %6234 = vmatprep.subr.msk.bf16.mxu1 %vm1929_vm0, %v7558_v60  ;;  %v1964_v63 = vsel %vm1929_vm0, %v7558_v60, 0 }
 0x2c7   : > { %v1705_v18 = vpop.f32.mrb[33].mxu1  ;;  %5838 = vmatpush3.bf16.xpose.msra.mxu1 %v1964_v63  ;;  %v1704_v2 = vadd.f32 %v1703_v62, %v7496_v11  ;;  %5820 = vmatmul.mubr.bf16.gmra.mrb[36].mxu0 %v7383_v12 }
 0x2c8   : > { %v1707_v26 = vpop.f32.mrb[34].mxu1  ;;  %v1706_v28 = vadd.f32 %v1705_v18, %v7499_v19  ;;  %5823 = vmatprep.mubr.bf16.mxu0 %v7398_v16 }
 0x2c9   : > { %v1708_v4 = vadd.f32 %v1707_v26, %v7496_v11  ;;  %v1709_v24 = vpop.f32.mrb[35].mxu1  ;;  %2601 = vrot.lane.b32.xlu1 %v7558_v60, %s6995_s25 }
 0x2ca   : > { %v1710_v0 = vadd.f32 %v1709_v24, %v7499_v19 }
 0x2cb   : > { %v7572_v1 = vpack.c.bf16 %v1708_v4, %v1704_v2 }
 0x2cc   : > { %v7574_v30 = vpack.c.bf16 %v1710_v0, %v1706_v28 }
 0x2cd   : > { %2579 = vrot.lane.b32.xlu0 %v7572_v1, %s6995_s25 }
 0x2ce   : > { %v1713_v33 = vpop.f32.mrb[36].mxu1  ;;  %6235 = vmatprep.subr.msk.bf16.mxu1 %vm1929_vm0, %v7574_v30  ;;  %v1967_v34 = vsel %vm1929_vm0, %v7574_v30, 0 }
 0x2cf   : > { %v1715_v3 = vpop.f32.mrb[37].mxu1  ;;  %5840 = vmatpush3.bf16.xpose.msra.mxu1 %v1967_v34  ;;  %v1714_v8 = vadd.f32 %v1713_v33, %v7496_v11  ;;  %5824 = vmatmul.mubr.bf16.gmra.mrb[40].mxu0 %v7410_v21 }
 0x2d0   : > { %v1717_v35 = vpop.f32.mrb[38].mxu1  ;;  %v1716_v7 = vadd.f32 %v1715_v3, %v7499_v19  ;;  %5827 = vmatprep.mubr.bf16.mxu0 %v7425_v27 }
 0x2d1   : > { %v1718_v10 = vadd.f32 %v1717_v35, %v7496_v11  ;;  %v1719_v37 = vpop.f32.mrb[39].mxu1  ;;  %2603 = vrot.lane.b32.xlu0 %v7574_v30, %s6995_s25 }
 0x2d2   : > { %v1720_v39 = vadd.f32 %v1719_v37, %v7499_v19 }
 0x2d3   : > { %v7588_v40 = vpack.c.bf16 %v1718_v10, %v1714_v8 }
 0x2d4   : > { %v7590_v41 = vpack.c.bf16 %v1720_v39, %v1716_v7  ;;  %v7669_v7 = vld [vmem:[%s9137_s7] ss:$0 sm:$0xff] }
 0x2d5   : > { %2581 = vrot.lane.b32.xlu1 %v7588_v40, %s6995_s25 }
 0x2d6   : > { %v1723_v47 = vpop.f32.mrb[40].mxu1  ;;  %6236 = vmatprep.subr.msk.bf16.mxu1 %vm1929_vm0, %v7590_v41  ;;  %v1970_v48 = vsel %vm1929_vm0, %v7590_v41, 0 }
 0x2d7   : > { %v1724_v49 = vadd.f32 %v1723_v47, %v7496_v11  ;;  %v1725_v50 = vpop.f32.mrb[41].mxu1  ;;  %5842 = vmatpush3.bf16.xpose.msra.mxu1 %v1970_v48  ;;  %5828 = vmatmul.mubr.bf16.gmra.mrb[44].mxu0 %v7431_v29 }
 0x2d8   : > { %v1727_v15 = vpop.f32.mrb[42].mxu1  ;;  %v1726_v14 = vadd.f32 %v1725_v50, %v7499_v19 }
 0x2d9   : > { %v1728_v52 = vadd.f32 %v1727_v15, %v7496_v11  ;;  %v1729_v13 = vpop.f32.mrb[43].mxu1  ;;  %2605 = vrot.lane.b32.xlu1 %v7590_v41, %s6995_s25 }
 0x2da   : > { %v1730_v53 = vadd.f32 %v1729_v13, %v7499_v19  ;;  %v6691_v13 = vld [vmem:[%s7337_s26 + $0x10] sm:$0xff] }
 0x2db   : > { %v7604_v54 = vpack.c.bf16 %v1728_v52, %v1724_v49 }
 0x2dc   : > { %v7607_v55 = vpack.c.bf16 %v1730_v53, %v1726_v14  ;;  %v6692_v53 = vld [vmem:[%s7337_s26 + $0x18] sm:$0xff] }
 0x2de   : > { %v1733_v56 = vpop.f32.mrb[44].mxu1  ;;  %6237 = vmatprep.subr.msk.bf16.mxu1 %vm1929_vm0, %v7607_v55  ;;  %2607 = vrot.lane.b32.xlu0 %v7607_v55, %s6995_s25  ;;  %v1973_v57 = vsel %vm1929_vm0, %v7607_v55, 0 }
 0x2df   : > { %v1734_v59 = vadd.f32 %v1733_v56, %v7496_v11  ;;  %v1735_v20 = vpop.f32.mrb[45].mxu1  ;;  %5844 = vmatpush3.bf16.xpose.msra.mxu1 %v1973_v57  ;;  %v6693_v57 = vld [vmem:[%s7337_s26] sm:$0xff] }
 0x2e0   : > { %v1737_v22 = vpop.f32.mrb[46].mxu1  ;;  %v1736_v9 = vadd.f32 %v1735_v20, %v7499_v19  ;;  %v6694_v20 = vld [vmem:[%s7337_s26 + $0x8] sm:$0xff] }
 0x2e1   : > { %v1738_v5 = vadd.f32 %v1737_v22, %v7496_v11  ;;  %v1739_v61 = vpop.f32.mrb[47].mxu1 }
 0x2e2   : > { %v1740_v62 = vadd.f32 %v1739_v61, %v7499_v19 }
 0x2e3   : > { %v7620_v63 = vpack.c.bf16 %v1738_v5, %v1734_v59 }
 0x2e4   : > { %v7623_v18 = vpack.c.bf16 %v1740_v62, %v1736_v9 }
 0x2e6   : > { %2609 = vrot.lane.b32.xlu1 %v7623_v18, %s6995_s25  ;;  %6238 = vmatprep.subr.msk.bf16.mxu1 %vm1929_vm0, %v7623_v18  ;;  %v1976_v11 = vsel %vm1929_vm0, %v7623_v18, 0 }
 0x2e7   : > { %5846 = vmatpush3.bf16.xpose.msra.mxu1 %v1976_v11 }
 0x2ee   : > { %5848 = vmatmul.mubr.msk.bf16.vlgmr.msra.gmra.mrb[48].mxu1 %vm1929_vm0, %v7524_v38 }
 0x2ef   : > { %5851 = vmatprep.mubr.msk.bf16.mxu1 %vm1929_vm0, %v7540_v17 }
 0x2f6   : > { %5852 = vmatmul.mubr.msk.bf16.gmra.mrb[52].mxu1 %vm1929_vm0, %v7556_v25 }
 0x2f7   : > { %5855 = vmatprep.mubr.msk.bf16.mxu1 %vm1929_vm0, %v7572_v1 }
 0x2fe   : > { %5856 = vmatmul.mubr.msk.bf16.gmra.mrb[56].mxu1 %vm1929_vm0, %v7588_v40 }
 0x2ff   : > { %5859 = vmatprep.mubr.msk.bf16.mxu1 %vm1929_vm0, %v7604_v54 }
 0x306   : > { %5860 = vmatmul.mubr.msk.bf16.gmra.mrb[60].mxu1 %vm1929_vm0, %v7620_v63 }
 0x31f   : > { %v2572_v12 = vpop.permute.xlu0 %2571 }
 0x320   : > { %5931 = vmatprep.mubr.msk.bf16.mxu1 %vm1929_vm0, %v2572_v12 }
 0x323   : > { %v2596_v16 = vpop.permute.xlu0 %2595 }
 0x324   : > { %6239 = vmatprep.subr.msk.bf16.mxu1 %vm1929_vm0, %v2596_v16  ;;  %v2636_v21 = vsel %vm1929_vm0, %v2596_v16, 0 }
 0x325   : > { %5916 = vmatpush3.bf16.xpose.msra.mxu1 %v2636_v21 }
 0x327   : > { %v2574_v29 = vpop.permute.xlu1 %2573 }
 0x328   : > { %v2598_v27 = vpop.permute.xlu0 %2597 }
 0x329   : > { %6240 = vmatprep.subr.msk.bf16.mxu1 %vm1929_vm0, %v2598_v27  ;;  %v2639_v19 = vsel %vm1929_vm0, %v2598_v27, 0 }
 0x32d   : > { %5918 = vmatpush3.bf16.xpose.msra.mxu1 %v2639_v19  ;;  %v6695_v19 = vld [vmem:[%s7337_s26 + $0x30] sm:$0xff] }
 0x32f   : > { %v2576_v4 = vpop.permute.xlu0 %2575 }
 0x330   : > { %v2600_v23 = vpop.permute.xlu1 %2599 }
 0x331   : > { %6241 = vmatprep.subr.msk.bf16.mxu1 %vm1929_vm0, %v2600_v23  ;;  %v2642_v26 = vsel %vm1929_vm0, %v2600_v23, 0 }
 0x335   : > { %5920 = vmatpush3.bf16.xpose.msra.mxu1 %v2642_v26  ;;  %v6696_v26 = vld [vmem:[%s7337_s26 + $0x38] sm:$0xff] }
 0x337   : > { %v2578_v2 = vpop.permute.xlu1 %2577 }
 0x33b   : > { %v2602_v24 = vpop.permute.xlu1 %2601 }
 0x33c   : > { %6242 = vmatprep.subr.msk.bf16.mxu1 %vm1929_vm0, %v2602_v24  ;;  %v2645_v28 = vsel %vm1929_vm0, %v2602_v24, 0 }
 0x33d   : > { %5922 = vmatpush3.bf16.xpose.msra.mxu1 %v2645_v28  ;;  %v6698_v28 = vld [vmem:[%s7337_s26 + $0x28] sm:$0xff] }
 0x33f   : > { %v2580_v0 = vpop.permute.xlu0 %2579 }
 0x343   : > { %v2604_v32 = vpop.permute.xlu0 %2603 }
 0x344   : > { %6243 = vmatprep.subr.msk.bf16.mxu1 %vm1929_vm0, %v2604_v32  ;;  %v2648_v33 = vsel %vm1929_vm0, %v2604_v32, 0 }
 0x345   : > { %5924 = vmatpush3.bf16.xpose.msra.mxu1 %v2648_v33 }
 0x347   : > { %v2582_v34 = vpop.permute.xlu1 %2581 }
 0x34b   : > { %v2606_v3 = vpop.permute.xlu1 %2605 }
 0x34c   : > { %6244 = vmatprep.subr.msk.bf16.mxu1 %vm1929_vm0, %v2606_v3  ;;  %v2651_v35 = vsel %vm1929_vm0, %v2606_v3, 0 }
 0x34d   : > { %5926 = vmatpush3.bf16.xpose.msra.mxu1 %v2651_v35 }
 0x350   : > { %v2608_v36 = vpop.permute.xlu0 %2607 }
 0x351   : > { %6245 = vmatprep.subr.msk.bf16.mxu1 %vm1929_vm0, %v2608_v36  ;;  %v2654_v8 = vsel %vm1929_vm0, %v2608_v36, 0 }
 0x355   : > { %5928 = vmatpush3.bf16.xpose.msra.mxu1 %v2654_v8 }
 0x358   : > { %v2610_v10 = vpop.permute.xlu1 %2609 }
 0x359   : > { %6246 = vmatprep.subr.msk.bf16.mxu1 %vm1929_vm0, %v2610_v10  ;;  %v2657_v37 = vsel %vm1929_vm0, %v2610_v10, 0 }
 0x35d   : > { %5930 = vmatpush3.bf16.xpose.msra.mxu1 %v2657_v37 }
 0x364   : > { %v5785_v39 = vpop.f32.mrb[16].mxu0  ;;  %5932 = vmatmul.mubr.msk.bf16.vlgmr.msra.gmra.mrb[64].mxu1 %vm1929_vm0, %v2574_v29 }
 0x365   : > { %v1148_v44 = vadd.f32 %v5785_v39, %v7669_v7  ;;  %v1139_v47 = vpop.f32.mrb[17].mxu0  ;;  %5935 = vmatprep.mubr.msk.bf16.mxu1 %vm1929_vm0, %v2576_v4  ;;  %v6697_v4 = vld [vmem:[%s7337_s26 + $0x20] sm:$0xff] }
 0x366   : > { %v1140_v48 = vadd.f32 %v7669_v7, %v1139_v47  ;;  %v5786_v49 = vpop.f32.mrb[18].mxu0  ;;  %v6699_v47 = vld [vmem:[%s7337_s26 + $0x50] sm:$0xff] }
 0x367   : > { %v1151_v50 = vadd.f32 %v5786_v49, %v7669_v7  ;;  %v1142_v15 = vpop.f32.mrb[19].mxu0  ;;  %v7678_v14 = vadd.f32 %v6691_v13, %v1148_v44 }
 0x368   : > { %v1143_v52 = vadd.f32 %v7669_v7, %v1142_v15  ;;  %v7684_v59 = vadd.f32 %v6693_v57, %v1140_v48 }
 0x369   : > { %9236 = vst [vmem:[#allocation24_spill] sm:$0xff] %v7678_v14  ;;  %v7681_v56 = vadd.f32 %v6692_v53, %v1151_v50  ;;  %v6701_v50 = vld [vmem:[%s7337_s26 + $0x40] sm:$0xff] }
 0x36a   : > { %9238 = vst [vmem:[#allocation26_spill] sm:$0xff] %v7684_v59  ;;  %v7687_v22 = vadd.f32 %v6694_v20, %v1143_v52  ;;  %v6702_v52 = vld [vmem:[%s7337_s26 + $0x48] sm:$0xff] }
 0x36b   : > { %9237 = vst [vmem:[#allocation25_spill] sm:$0xff] %v7681_v56  ;;  %v5385_v5 = vpack.c.bf16 %v7681_v56, %v7678_v14 }
 0x36c   : > { %9239 = vst [vmem:[#allocation27_spill] sm:$0xff] %v7687_v22  ;;  %v5380_v61 = vpack.c.bf16 %v7687_v22, %v7684_v59  ;;  %v5789_v9 = vpop.f32.mrb[20].mxu0  ;;  %5936 = vmatmul.mubr.msk.bf16.gmra.mrb[68].mxu1 %vm1929_vm0, %v2578_v2 }
 0x36d   : > { %5457 = vst [vmem:[%s7695_s28 + $0x8] sm:$0xff] %v5385_v5   ;;  %v1164_v62 = vadd.f32 %v5789_v9, %v7669_v7  ;;  %v1155_v11 = vpop.f32.mrb[21].mxu0  ;;  %5939 = vmatprep.mubr.msk.bf16.mxu1 %vm1929_vm0, %v2580_v0 }
 0x36e   : > { %5381 = vst [vmem:[%s7695_s28] sm:$0xff] %v5380_v61   ;;  %v1156_v12 = vadd.f32 %v7669_v7, %v1155_v11  ;;  %v5790_v16 = vpop.f32.mrb[22].mxu0 }
 0x36f   : > { %v1167_v21 = vadd.f32 %v5790_v16, %v7669_v7  ;;  %v1158_v27 = vpop.f32.mrb[23].mxu0  ;;  %v7705_v23 = vadd.f32 %v6695_v19, %v1164_v62 }
 0x370   : > { %v1159_v29 = vadd.f32 %v7669_v7, %v1158_v27  ;;  %v7711_v24 = vadd.f32 %v6697_v4, %v1156_v12 }
 0x371   : > { %9240 = vst [vmem:[#allocation28_spill] sm:$0xff] %v7705_v23  ;;  %v7708_v2 = vadd.f32 %v6696_v26, %v1167_v21  ;;  %v6703_v21 = vld [vmem:[%s7337_s26 + $0x70] sm:$0xff]  ;;  %v6705_v26 = vld [vmem:[%s7337_s26 + $0x60] sm:$0xff] }
 0x372   : > { %9242 = vst [vmem:[#allocation30_spill] sm:$0xff] %v7711_v24  ;;  %v7714_v0 = vadd.f32 %v6698_v28, %v1159_v29  ;;  %v6704_v29 = vld [vmem:[%s7337_s26 + $0x78] sm:$0xff]  ;;  %v6706_v28 = vld [vmem:[%s7337_s26 + $0x68] sm:$0xff] }
 0x373   : > { %9241 = vst [vmem:[#allocation29_spill] sm:$0xff] %v7708_v2  ;;  %v5395_v32 = vpack.c.bf16 %v7708_v2, %v7705_v23 }
 0x374   : > { %9243 = vst [vmem:[#allocation31_spill] sm:$0xff] %v7714_v0  ;;  %v5390_v33 = vpack.c.bf16 %v7714_v0, %v7711_v24  ;;  %v5793_v3 = vpop.f32.mrb[24].mxu0  ;;  %5940 = vmatmul.mubr.msk.bf16.gmra.mrb[72].mxu1 %vm1929_vm0, %v2582_v34  ;;  %v6700_v34 = vld [vmem:[%s7337_s26 + $0x58] sm:$0xff] }
 0x375   : > { %5459 = vst [vmem:[%s7695_s28 + $0x18] sm:$0xff] %v5395_v32   ;;  %v1180_v35 = vadd.f32 %v5793_v3, %v7669_v7  ;;  %v1171_v36 = vpop.f32.mrb[25].mxu0 }
 0x376   : > { %5458 = vst [vmem:[%s7695_s28 + $0x10] sm:$0xff] %v5390_v33   ;;  %v1172_v8 = vadd.f32 %v7669_v7, %v1171_v36  ;;  %v5794_v10 = vpop.f32.mrb[26].mxu0 }
 0x377   : > { %v1183_v37 = vadd.f32 %v5794_v10, %v7669_v7  ;;  %v1174_v39 = vpop.f32.mrb[27].mxu0  ;;  %v7728_v48 = vadd.f32 %v6699_v47, %v1180_v35 }
 0x378   : > { %v1175_v44 = vadd.f32 %v7669_v7, %v1174_v39  ;;  %v7734_v15 = vadd.f32 %v6701_v50, %v1172_v8 }
 0x379   : > { %9244 = vst [vmem:[#allocation32_spill] sm:$0xff] %v7728_v48  ;;  %v7731_v49 = vadd.f32 %v6700_v34, %v1183_v37 }
 0x37a   : > { %9246 = vst [vmem:[#allocation34_spill] sm:$0xff] %v7734_v15  ;;  %v7737_v13 = vadd.f32 %v6702_v52, %v1175_v44 }
 0x37b   : > { %9245 = vst [vmem:[#allocation33_spill] sm:$0xff] %v7731_v49  ;;  %v5405_v53 = vpack.c.bf16 %v7731_v49, %v7728_v48 }
 0x37c   : > { %9247 = vst [vmem:[#allocation35_spill] sm:$0xff] %v7737_v13  ;;  %v5400_v57 = vpack.c.bf16 %v7737_v13, %v7734_v15  ;;  %v5797_v20 = vpop.f32.mrb[28].mxu0 }
 0x37d   : > { %5461 = vst [vmem:[%s7695_s28 + $0x28] sm:$0xff] %v5405_v53   ;;  %v1196_v5 = vadd.f32 %v5797_v20, %v7669_v7  ;;  %v1187_v61 = vpop.f32.mrb[29].mxu0 }
 0x37e   : > { %5460 = vst [vmem:[%s7695_s28 + $0x20] sm:$0xff] %v5400_v57   ;;  %v1188_v9 = vadd.f32 %v7669_v7, %v1187_v61  ;;  %v5798_v62 = vpop.f32.mrb[30].mxu0 }
 0x37f   : > { %v1199_v11 = vadd.f32 %v5798_v62, %v7669_v7  ;;  %v1190_v12 = vpop.f32.mrb[31].mxu0  ;;  %v7750_v27 = vadd.f32 %v6703_v21, %v1196_v5 }
 0x380   : > { %v1191_v16 = vadd.f32 %v7669_v7, %v1190_v12  ;;  %v7756_v4 = vadd.f32 %v6705_v26, %v1188_v9  ;;  %v1887_v7 = vld [vmem:[%s610_s11] sm:$0x1]  ;;  %s8897_s11 = scalar_lea.hbm %s9310_s14, %s9209_s21 }
 0x381   : > { %9248 = vst [vmem:[#allocation36_spill] sm:$0xff] %v7750_v27  ;;  %v7753_v19 = vadd.f32 %v6704_v29, %v1199_v11  ;;  %vm1888_vm1 = vcmp.gt.f32.partialorder %v1887_v7, 0.0 }
 0x382   : > { %9250 = vst [vmem:[#allocation38_spill] sm:$0xff] %v7756_v4  ;;  %v7759_v32 = vadd.f32 %v6706_v28, %v1191_v16  ;;  %v2075_v39 = vsel %vm1888_vm1, 1, %v6994_v42 }
 0x383   : > { %9249 = vst [vmem:[#allocation37_spill] sm:$0xff] %v7753_v19  ;;  %v5415_v33 = vpack.c.bf16 %v7753_v19, %v7750_v27  ;;  %v7781_v20 = vrot.slane %v2075_v39, %v1488_v58 }
 0x384   : > { %9251 = vst [vmem:[#allocation39_spill] sm:$0xff] %v7759_v32  ;;  %v5410_v3 = vpack.c.bf16 %v7759_v32, %v7756_v4 }
 0x385   : > { %5463 = vst [vmem:[%s7695_s28 + $0x38] sm:$0xff] %v5415_v33   ;;  %vm2080_vm2 = vcmp.eq.s32.totalorder %v7781_v20, 1 }
 0x386   : > { %5462 = vst [vmem:[%s7695_s28 + $0x30] sm:$0xff] %v5410_v3  }
 0x392   : > { %v5817_v35 = vpop.f32.mrb[32].mxu0 }
 0x393   : > { %v1785_v36 = vadd.f32 %v5817_v35, %v7454_v46  ;;  %v1776_v8 = vpop.f32.mrb[33].mxu0 }
 0x394   : > { %v1777_v10 = vadd.f32 %v1776_v8, %v7454_v46  ;;  %v5818_v37 = vpop.f32.mrb[34].mxu0 }
 0x395   : > { %v1788_v44 = vadd.f32 %v5818_v37, %v7454_v46  ;;  %v1779_v47 = vpop.f32.mrb[35].mxu0 }
 0x396   : > { %v1780_v34 = vadd.f32 %v1779_v47, %v7454_v46 }
 0x397   : > { %v7776_v52 = vpack.c.bf16 %v1788_v44, %v1785_v36 }
 0x398   : > { %v7783_v5 = vpack.c.bf16 %v1780_v34, %v1777_v10 }
 0x39a   : > { %v5821_v50 = vpop.f32.mrb[36].mxu0  ;;  %5863 = vmatprep.subr.bf16.mxu0 %v7783_v5 }
 0x39b   : > { %v1801_v53 = vadd.f32 %v5821_v50, %v7454_v46  ;;  %v1792_v57 = vpop.f32.mrb[37].mxu0  ;;  %5864 = vmatpush3.bf16.msra.mxu0 %v7783_v5 }
 0x39c   : > { %v1793_v61 = vadd.f32 %v1792_v57, %v7454_v46  ;;  %v5822_v42 = vpop.f32.mrb[38].mxu0  ;;  %5865 = vmatprep.subr.bf16.mxu0 %v7776_v52 }
 0x39d   : > { %v1804_v9 = vadd.f32 %v5822_v42, %v7454_v46  ;;  %v1795_v62 = vpop.f32.mrb[39].mxu0 }
 0x39e   : > { %v1796_v11 = vadd.f32 %v1795_v62, %v7454_v46 }
 0x39f   : > { %v7789_v12 = vpack.c.bf16 %v1804_v9, %v1801_v53  ;;  %5866 = vmatpush3.bf16.msra.mxu0 %v7776_v52 }
 0x3a0   : > { %v7793_v43 = vpack.c.bf16 %v1796_v11, %v1793_v61 }
 0x3a2   : > { %v5825_v16 = vpop.f32.mrb[40].mxu0  ;;  %5867 = vmatprep.subr.bf16.mxu0 %v7793_v43 }
 0x3a3   : > { %v1817_v58 = vadd.f32 %v5825_v16, %v7454_v46  ;;  %v1808_v21 = vpop.f32.mrb[41].mxu0  ;;  %5868 = vmatpush3.bf16.msra.mxu0 %v7793_v43 }
 0x3a4   : > { %v1809_v29 = vadd.f32 %v1808_v21, %v7454_v46  ;;  %v5826_v26 = vpop.f32.mrb[42].mxu0  ;;  %5869 = vmatprep.subr.bf16.mxu0 %v7789_v12 }
 0x3a5   : > { %v1820_v33 = vadd.f32 %v5826_v26, %v7454_v46  ;;  %v1811_v57 = vpop.f32.mrb[43].mxu0 }
 0x3a6   : > { %v1812_v42 = vadd.f32 %v1811_v57, %v7454_v46 }
 0x3a7   : > { %v7805_v36 = vpack.c.bf16 %v1820_v33, %v1817_v58  ;;  %5870 = vmatpush3.bf16.msra.mxu0 %v7789_v12 }
 0x3a8   : > { %v7827_v11 = vpack.c.bf16 %v1812_v42, %v1809_v29 }
 0x3a9   : > { %9252 = vst [vmem:[#allocation40_spill] sm:$0xff] %v7805_v36 }
 0x3aa   : > { %5871 = vmatprep.subr.bf16.mxu0 %v7827_v11  ;;  %v5829_v21 = vpop.f32.mrb[44].mxu0 }
 0x3ab   : > { %5872 = vmatpush3.bf16.msra.mxu0 %v7827_v11  ;;  %v1833_v29 = vadd.f32 %v5829_v21, %v7454_v46 }
 0x3ac   : > { %5873 = vmatprep.subr.bf16.mxu0 %v7805_v36 }
 0x3af   : > { %5874 = vmatpush3.bf16.msra.mxu0 %v7805_v36 }
 0x3c1   : > { %v5849_v28 = vpop.f32.mrb[48].mxu1 }
 0x3c2   : > { %v2012_v3 = vpop.f32.mrb[49].mxu1  ;;  %v7801_v7 = vsel %vm2080_vm2, %v5849_v28, -1e+30  ;;  %v1824_v28 = vpop.f32.mrb[45].mxu0 }
 0x3c3   : > { %2101 = vmax.xlane.f32.xlu0 %v7801_v7  ;;  %v5850_v35 = vpop.f32.mrb[50].mxu1  ;;  %v7815_v37 = vsel %vm2080_vm2, %v2012_v3, -1e+30  ;;  %v5830_v3 = vpop.f32.mrb[46].mxu0 }
 0x3c4   : > { %v2015_v8 = vpop.f32.mrb[51].mxu1  ;;  %v7822_v47 = vsel %vm2080_vm2, %v5850_v35, -1e+30  ;;  %v1825_v35 = vadd.f32 %v1824_v28, %v7454_v46  ;;  %v1827_v57 = vpop.f32.mrb[47].mxu0 }
 0x3c5   : > { %v7810_v10 = vsel %vm2080_vm2, %v2015_v8, -1e+30  ;;  %v1836_v8 = vadd.f32 %v5830_v3, %v7454_v46  ;;  %v1828_v42 = vadd.f32 %v1827_v57, %v7454_v46 }
 0x3c6   : > { %2099 = vmax.xlane.f32.xlu1 %v7810_v10 }
 0x3c7   : > { %2097 = vmax.xlane.f32.xlu0 %v7815_v37  ;;  %v7839_v19 = vpack.c.bf16 %v1836_v8, %v1833_v29  ;;  %v7841_v27 = vpack.c.bf16 %v1828_v42, %v1825_v35 }
 0x3c9   : > { %v5853_v39 = vpop.f32.mrb[52].mxu1  ;;  %9253 = vst [vmem:[#allocation41_spill] sm:$0xff] %v7839_v19  ;;  %9254 = vst [vmem:[#allocation42_spill] sm:$0xff] %v7841_v27  ;;  %5875 = vmatprep.subr.bf16.mxu0 %v7841_v27 }
 0x3ca   : > { %v2028_v44 = vpop.f32.mrb[53].mxu1  ;;  %5876 = vmatpush3.bf16.msra.mxu0 %v7841_v27  ;;  %v7856_v46 = vsel %vm2080_vm2, %v5853_v39, -1e+30 }
 0x3cb   : > { %2103 = vmax.xlane.f32.xlu0 %v7822_v47  ;;  %v5854_v34 = vpop.f32.mrb[54].mxu1  ;;  %5877 = vmatprep.subr.bf16.mxu0 %v7839_v19  ;;  %v7851_v21 = vsel %vm2080_vm2, %v2028_v44, -1e+30 }
 0x3cc   : > { %v2031_v50 = vpop.f32.mrb[55].mxu1  ;;  %v7871_v44 = vsel %vm2080_vm2, %v5854_v34, -1e+30 }
 0x3cd   : > { %v7861_v28 = vsel %vm2080_vm2, %v2031_v50, -1e+30 }
 0x3ce   : > { %5878 = vmatpush3.bf16.msra.mxu0 %v7839_v19 }
 0x3d1   : > { %v5857_v53 = vpop.f32.mrb[56].mxu1 }
 0x3d2   : > { %v2044_v61 = vpop.f32.mrb[57].mxu1  ;;  %v7876_v39 = vsel %vm2080_vm2, %v5857_v53, -1e+30 }
 0x3d3   : > { %v5858_v9 = vpop.f32.mrb[58].mxu1  ;;  %v7866_v3 = vsel %vm2080_vm2, %v2044_v61, -1e+30 }
 0x3d4   : > { %v2047_v62 = vpop.f32.mrb[59].mxu1  ;;  %v7891_v34 = vsel %vm2080_vm2, %v5858_v9, -1e+30 }
 0x3d5   : > { %v7881_v50 = vsel %vm2080_vm2, %v2047_v62, -1e+30 }
 0x3d7   : > { %2583 = vrot.lane.b32.xlu1 %v7604_v54, %s6995_s25 }
 0x3d9   : > { %v5861_v16 = vpop.f32.mrb[60].mxu1 }
 0x3da   : > { %v2060_v58 = vpop.f32.mrb[61].mxu1  ;;  %v7896_v53 = vsel %vm2080_vm2, %v5861_v16, -1e+30 }
 0x3db   : > { %v5862_v26 = vpop.f32.mrb[62].mxu1  ;;  %v7886_v61 = vsel %vm2080_vm2, %v2060_v58, -1e+30 }
 0x3dc   : > { %v2063_v33 = vpop.f32.mrb[63].mxu1  ;;  %v7906_v58 = vsel %vm2080_vm2, %v5862_v26, -1e+30 }
 0x3dd   : > { %v7901_v62 = vsel %vm2080_vm2, %v2063_v33, -1e+30 }
 0x3e1   : > { %2585 = vrot.lane.b32.xlu0 %v7620_v63, %s6995_s25 }
 0x3fb   : > { %2105 = vmax.xlane.f32.xlu1 %v7851_v21 }
 0x3ff   : > { %2109 = vmax.xlane.f32.xlu1 %v7856_v46 }
 0x400   : > { %2107 = vmax.xlane.f32.xlu0 %v7861_v28 }
 0x403   : > { %2113 = vmax.xlane.f32.xlu1 %v7866_v3 }
 0x404   : > { %2111 = vmax.xlane.f32.xlu0 %v7871_v44 }
 0x407   : > { %2117 = vmax.xlane.f32.xlu1 %v7876_v39 }
 0x408   : > { %2115 = vmax.xlane.f32.xlu0 %v7881_v50 }
 0x40b   : > { %2121 = vmax.xlane.f32.xlu1 %v7886_v61 }
 0x40c   : > { %2119 = vmax.xlane.f32.xlu0 %v7891_v34 }
 0x40f   : > { %2125 = vmax.xlane.f32.xlu1 %v7896_v53 }
 0x410   : > { %2123 = vmax.xlane.f32.xlu0 %v7901_v62 }
 0x414   : > { %2127 = vmax.xlane.f32.xlu0 %v7906_v58 }
 0x420   : > { %3302 = vrot.lane.b32.xlu1 %v7508_v31, %s9207_s24 }
 0x424   : > { %3306 = vrot.lane.b32.xlu1 %v7542_v51, %s9207_s24 }
 0x428   : > { %3308 = vrot.lane.b32.xlu1 %v7558_v60, %s9207_s24 }
 0x42a   : > { %3304 = vrot.lane.b32.xlu0 %v7526_v6, %s9207_s24 }
 0x42c   : > { %3312 = vrot.lane.b32.xlu1 %v7590_v41, %s9207_s24 }
 0x42e   : > { %3310 = vrot.lane.b32.xlu0 %v7574_v30, %s9207_s24 }
 0x430   : > { %3278 = vrot.lane.b32.xlu1 %v7506_v45, %s9207_s24 }
 0x432   : > { %3314 = vrot.lane.b32.xlu0 %v7607_v55, %s9207_s24 }
 0x434   : > { %3282 = vrot.lane.b32.xlu1 %v7540_v17, %s9207_s24 }
 0x436   : > { %3316 = vrot.lane.b32.xlu0 %v7623_v18, %s9207_s24 }
 0x437   : > { %v5933_v9 = vpop.f32.mrb[64].mxu1 }
 0x438   : > { %3288 = vrot.lane.b32.xlu1 %v7588_v40, %s9207_s24  ;;  %v2693_v16 = vpop.f32.mrb[65].mxu1 }
 0x439   : > { %v5934_v26 = vpop.f32.mrb[66].mxu1 }
 0x43a   : > { %v2696_v33 = vpop.f32.mrb[67].mxu1  ;;  %3280 = vrot.lane.b32.xlu0 %v7524_v38, %s9207_s24 }
 0x43c   : > { %3290 = vrot.lane.b32.xlu1 %v7604_v54, %s9207_s24 }
 0x43e   : > { %3284 = vrot.lane.b32.xlu0 %v7556_v25, %s9207_s24 }
 0x43f   : > { %v5937_v29 = vpop.f32.mrb[68].mxu1 }
 0x440   : > { %v2709_v35 = vpop.f32.mrb[69].mxu1  ;;  %2922 = vrot.lane.b32.xlu1 %v7789_v12, %s6995_s25 }
 0x441   : > { %v5938_v8 = vpop.f32.mrb[70].mxu1 }
 0x442   : > { %v2712_v57 = vpop.f32.mrb[71].mxu1  ;;  %3286 = vrot.lane.b32.xlu0 %v7572_v1, %s9207_s24 }
 0x444   : > { %2926 = vrot.lane.b32.xlu1 %v7805_v36, %s6995_s25 }
 0x446   : > { %2916 = vrot.lane.b32.xlu0 %v7783_v5, %s6995_s25 }
 0x447   : > { %v5941_v42 = vpop.f32.mrb[72].mxu1 }
 0x448   : > { %v2725_v32 = vpop.f32.mrb[73].mxu1 }
 0x449   : > { %v5942_v4 = vpop.f32.mrb[74].mxu1 }
 0x44a   : > { %v2728_v48 = vpop.f32.mrb[75].mxu1  ;;  %3292 = vrot.lane.b32.xlu0 %v7620_v63, %s9207_s24 }
 0x44e   : > { %2918 = vrot.lane.b32.xlu0 %v7776_v52, %s6995_s25 }
 0x450   : > { %v2102_v49 = vpop.xlane.xlu0 %2101 }
 0x451   : > { %v2131_v15 = vsub.f32 %v7801_v7, %v2102_v49  ;;  %v7988_v7 = vsel %vm2080_vm2, %v5938_v8, -1e+30 }
 0x452   : > { %2920 = vrot.lane.b32.xlu0 %v7793_v43, %s6995_s25 }
 0x453   : > { %v2100_v13 = vpop.xlane.xlu1 %2099  ;;  %v2149_v22 = vmul.f32 1.442695, %v2131_v15  ;;  %v7983_v15 = vsel %vm2080_vm2, %v5937_v29, -1e+30 }
 0x454   : > { %v2130_v2 = vsub.f32 %v7810_v10, %v2100_v13  ;;  %v2098_v23 = vpop.xlane.xlu0 %2097  ;;  %9255 = vst [vmem:[#allocation43_spill] sm:$0xff] %v7983_v15  ;;  %v7998_v10 = vsel %vm2080_vm2, %v2712_v57, -1e+30 }
 0x455   : > { %v2129_v0 = vsub.f32 %v7815_v37, %v2098_v23  ;;  %v8003_v37 = vsel %vm2080_vm2, %v2696_v33, -1e+30  ;;  %v8028_v33 = vsel %vm2080_vm2, %v5942_v4, -1e+30 }
 0x456   : > { %v2147_v24 = vmul.f32 1.442695, %v2130_v2  ;;  %2924 = vrot.lane.b32.xlu0 %v7827_v11, %s6995_s25  ;;  %9257 = vst [vmem:[#allocation45_spill] sm:$0xff] %v8028_v33 }
 0x457   : > { %v2145_v56 = vmul.f32 1.442695, %v2129_v0  ;;  %v2584_v14 = vpop.permute.xlu1 %2583 }
 0x458   : > { %6435 = vpow2.f32 %v2147_v24  ;;  %v2104_v59 = vpop.xlane.xlu0 %2103  ;;  %5943 = vmatprep.mubr.msk.bf16.mxu1 %vm1929_vm0, %v2584_v14 }
 0x459   : > { %6437 = vpow2.f32 %v2145_v56  ;;  %v2132_v36 = vsub.f32 %v7822_v47, %v2104_v59  ;;  %v7971_v56 = vsel %vm2080_vm2, %v5933_v9, -1e+30  ;;  %v8008_v47 = vsel %vm2080_vm2, %v5941_v42, -1e+30 }
 0x45a   : > { %6439 = vpow2.f32 %v2149_v22  ;;  %v7978_v22 = vsel %vm2080_vm2, %v5934_v26, -1e+30  ;;  %9256 = vst [vmem:[#allocation44_spill] sm:$0xff] %v8008_v47  ;;  %v8013_v9 = vsel %vm2080_vm2, %v2709_v35, -1e+30 }
 0x45b   : > { %v2151_v49 = vmul.f32 1.442695, %v2132_v36  ;;  %v7993_v36 = vsel %vm2080_vm2, %v2693_v16, -1e+30  ;;  %v8018_v16 = vsel %vm2080_vm2, %v2728_v48, -1e+30 }
 0x45c   : > { %v2586_v13 = vpop.permute.xlu0 %2585  ;;  %v8023_v26 = vsel %vm2080_vm2, %v2725_v32, -1e+30 }
 0x45d   : > { %6441 = vpow2.f32 %v2151_v49  ;;  %5944 = vmatmul.mubr.msk.bf16.gmra.mrb[76].mxu1 %vm1929_vm0, %v2586_v13 }
 0x462   : > { %v7959_v23 = vpop.eup %6435 }
 0x463   : > { %v7961_v2 = vpop.eup %6437 }
 0x464   : > { %v2225_v0 = vpack.c.bf16 %v7959_v23, %v7961_v2  ;;  %v7965_v24 = vpop.eup %6439 }
 0x466   : > { %5879 = vmatprep.mubr.bf16.mxu0 %v2225_v0 }
 0x467   : > { %v7967_v14 = vpop.eup %6441 }
 0x468   : > { %2776 = vmax.xlane.f32.xlu1 %v7971_v56  ;;  %v2226_v59 = vpack.c.bf16 %v7967_v14, %v7965_v24 }
 0x46a   : > { %5880 = vmatmul.mubr.bf16.vlgmr.msra.gmra.mrb[48].mxu0 %v2226_v59 }
 0x46c   : > { %2778 = vmax.xlane.f32.xlu1 %v7978_v22 }
 0x470   : > { %2784 = vmax.xlane.f32.xlu1 %v7983_v15 }
 0x474   : > { %2786 = vmax.xlane.f32.xlu1 %v7988_v7 }
 0x475   : > { %2772 = vmax.xlane.f32.xlu0 %v7993_v36 }
 0x478   : > { %2782 = vmax.xlane.f32.xlu1 %v7998_v10 }
 0x479   : > { %2774 = vmax.xlane.f32.xlu0 %v8003_v37 }
 0x47c   : > { %2792 = vmax.xlane.f32.xlu1 %v8008_v47 }
 0x47d   : > { %2780 = vmax.xlane.f32.xlu0 %v8013_v9 }
 0x480   : > { %2790 = vmax.xlane.f32.xlu1 %v8018_v16 }
 0x481   : > { %2788 = vmax.xlane.f32.xlu0 %v8023_v26 }
 0x485   : > { %2794 = vmax.xlane.f32.xlu0 %v8028_v33 }
 0x488   : > { %v2106_v29 = vpop.xlane.xlu1 %2105 }
 0x489   : > { %v2133_v35 = vsub.f32 %v7851_v21, %v2106_v29 }
 0x48b   : > { %v2153_v48 = vmul.f32 1.442695, %v2133_v35 }
 0x48c   : > { %v2110_v8 = vpop.xlane.xlu1 %2109 }
 0x48d   : > { %v2135_v57 = vsub.f32 %v7856_v46, %v2110_v8  ;;  %v2108_v42 = vpop.xlane.xlu0 %2107  ;;  %6443 = vpow2.f32 %v2153_v48 }
 0x48e   : > { %v2134_v49 = vsub.f32 %v7861_v28, %v2108_v42 }
 0x48f   : > { %v2157_v0 = vmul.f32 1.442695, %v2135_v57 }
 0x490   : > { %v2155_v32 = vmul.f32 1.442695, %v2134_v49  ;;  %v2114_v13 = vpop.xlane.xlu1 %2113 }
 0x491   : > { %v2137_v59 = vsub.f32 %v7866_v3, %v2114_v13  ;;  %v2112_v4 = vpop.xlane.xlu0 %2111 }
 0x492   : > { %6445 = vpow2.f32 %v2155_v32  ;;  %v2136_v47 = vsub.f32 %v7871_v44, %v2112_v4 }
 0x493   : > { %6447 = vpow2.f32 %v2157_v0  ;;  %v2161_v21 = vmul.f32 1.442695, %v2137_v59 }
 0x494   : > { %v2159_v33 = vmul.f32 1.442695, %v2136_v47  ;;  %v2118_v15 = vpop.xlane.xlu1 %2117 }
 0x495   : > { %v2139_v29 = vsub.f32 %v7876_v39, %v2118_v15  ;;  %v2116_v46 = vpop.xlane.xlu0 %2115 }
 0x496   : > { %6449 = vpow2.f32 %v2159_v33  ;;  %v2138_v28 = vsub.f32 %v7881_v50, %v2116_v46 }
 0x497   : > { %6451 = vpow2.f32 %v2161_v21  ;;  %v2165_v48 = vmul.f32 1.442695, %v2139_v29  ;;  %v8040_v47 = vpop.eup %6443 }
 0x498   : > { %v2163_v35 = vmul.f32 1.442695, %v2138_v28  ;;  %v2122_v8 = vpop.xlane.xlu1 %2121 }
 0x499   : > { %v2141_v3 = vsub.f32 %v7886_v61, %v2122_v8  ;;  %v2120_v57 = vpop.xlane.xlu0 %2119 }
 0x49a   : > { %6453 = vpow2.f32 %v2163_v35  ;;  %v2140_v44 = vsub.f32 %v7891_v34, %v2120_v57 }
 0x49b   : > { %6455 = vpow2.f32 %v2165_v48  ;;  %v2169_v15 = vmul.f32 1.442695, %v2141_v3 }
 0x49c   : > { %v8042_v42 = vpop.eup %6445  ;;  %v2167_v49 = vmul.f32 1.442695, %v2140_v44  ;;  %v2126_v39 = vpop.xlane.xlu1 %2125 }
 0x49d   : > { %v2143_v50 = vsub.f32 %v7896_v53, %v2126_v39  ;;  %v2124_v33 = vpop.xlane.xlu0 %2123  ;;  %v2227_v32 = vpack.c.bf16 %v8042_v42, %v8040_v47  ;;  %v8048_v13 = vpop.eup %6447 }
 0x49e   : > { %6457 = vpow2.f32 %v2167_v49  ;;  %v2142_v61 = vsub.f32 %v7901_v62, %v2124_v33 }
 0x49f   : > { %5883 = vmatprep.mubr.bf16.mxu0 %v2227_v32  ;;  %6459 = vpow2.f32 %v2169_v15  ;;  %v2173_v4 = vmul.f32 1.442695, %v2143_v50 }
 0x4a0   : > { %v8050_v34 = vpop.eup %6449  ;;  %v2171_v0 = vmul.f32 1.442695, %v2142_v61  ;;  %v3303_v59 = vpop.permute.xlu1 %3302 }
 0x4a1   : > { %6247 = vmatprep.subr.msk.bf16.mxu1 %vm1929_vm0, %v3303_v59  ;;  %v2128_v21 = vpop.xlane.xlu0 %2127  ;;  %v3343_v53 = vsel %vm1929_vm0, %v3303_v59, 0  ;;  %v2228_v29 = vpack.c.bf16 %v8050_v34, %v8048_v13  ;;  %v8057_v46 = vpop.eup %6451 }
 0x4a2   : > { %6461 = vpow2.f32 %v2171_v0  ;;  %v2144_v62 = vsub.f32 %v7906_v58, %v2128_v21  ;;  %6000 = vmatpush3.bf16.xpose.msra.mxu1 %v3343_v53 }
 0x4a3   : > { %5884 = vmatmul.mubr.bf16.gmra.mrb[52].mxu0 %v2228_v29  ;;  %6463 = vpow2.f32 %v2173_v4 }
 0x4a4   : > { %v8059_v28 = vpop.eup %6453  ;;  %v2175_v35 = vmul.f32 1.442695, %v2144_v62  ;;  %v3307_v8 = vpop.permute.xlu1 %3306 }
 0x4a5   : > { %v3305_v48 = vpop.permute.xlu0 %3304  ;;  %v2229_v3 = vpack.c.bf16 %v8059_v28, %v8057_v46  ;;  %v8064_v57 = vpop.eup %6455  ;;  %v3349_v21 = vsel %vm1929_vm0, %v3307_v8, 0 }
 0x4a6   : > { %6465 = vpow2.f32 %v2175_v35  ;;  %6248 = vmatprep.subr.msk.bf16.mxu1 %vm1929_vm0, %v3305_v48  ;;  %v3346_v49 = vsel %vm1929_vm0, %v3305_v48, 0 }
 0x4a7   : > { %5887 = vmatprep.mubr.bf16.mxu0 %v2229_v3 }
 0x4a8   : > { %v8066_v58 = vpop.eup %6457  ;;  %v3309_v44 = vpop.permute.xlu1 %3308 }
 0x4a9   : > { %v2230_v39 = vpack.c.bf16 %v8066_v58, %v8064_v57  ;;  %v8071_v15 = vpop.eup %6459  ;;  %v3311_v0 = vpop.permute.xlu0 %3310  ;;  %v3352_v62 = vsel %vm1929_vm0, %v3309_v44, 0 }
 0x4aa   : > { %6002 = vmatpush3.bf16.xpose.msra.mxu1 %v3346_v49  ;;  %v3355_v3 = vsel %vm1929_vm0, %v3311_v0, 0 }
 0x4ab   : > { %5888 = vmatmul.mubr.bf16.gmra.mrb[56].mxu0 %v2230_v39  ;;  %6249 = vmatprep.subr.msk.bf16.mxu1 %vm1929_vm0, %v3307_v8  ;;  %v6427_v39 = vld [vmem:[#allocation12] sm:$0xff]  }
 0x4ac   : > { %v8074_v50 = vpop.eup %6461  ;;  %v3313_v33 = vpop.permute.xlu1 %3312  ;;  %5895 = vmatprep.subr.bf16.mxu0 %v6427_v39 }
 0x4ad   : > { %v2231_v32 = vpack.c.bf16 %v8074_v50, %v8071_v15  ;;  %v8078_v61 = vpop.eup %6463  ;;  %v3315_v29 = vpop.permute.xlu0 %3314  ;;  %v3358_v49 = vsel %vm1929_vm0, %v3313_v33, 0  ;;  %5896 = vmatpush3.bf16.msra.mxu0 %v6427_v39 }
 0x4af   : > { %5891 = vmatprep.mubr.bf16.mxu0 %v2231_v32 }
 0x4b0   : > { %v8080_v59 = vpop.eup %6465  ;;  %v3279_v4 = vpop.permute.xlu1 %3278 }
 0x4b1   : > { %6015 = vmatprep.mubr.msk.bf16.mxu1 %vm1929_vm0, %v3279_v4  ;;  %v2232_v53 = vpack.c.bf16 %v8080_v59, %v8078_v61  ;;  %v3317_v35 = vpop.permute.xlu0 %3316  ;;  %v3361_v4 = vsel %vm1929_vm0, %v3315_v29, 0 }
 0x4b2   : > { %6004 = vmatpush3.bf16.xpose.msra.mxu1 %v3349_v21 }
 0x4b3   : > { %5892 = vmatmul.mubr.bf16.gmra.mrb[60].mxu0 %v2232_v53  ;;  %6250 = vmatprep.subr.msk.bf16.mxu1 %vm1929_vm0, %v3309_v44  ;;  %v6428_v44 = vld [vmem:[#allocation12 + $0x8] sm:$0xff]  }
 0x4b4   : > { %5897 = vmatprep.subr.bf16.mxu0 %v6428_v44 }
 0x4b5   : > { %v3281_v48 = vpop.permute.xlu0 %3280  ;;  %5898 = vmatpush3.bf16.msra.mxu0 %v6428_v44 }
 0x4b9   : > { %v3285_v8 = vpop.permute.xlu0 %3284 }
 0x4ba   : > { %6006 = vmatpush3.bf16.xpose.msra.mxu1 %v3352_v62 }
 0x4bb   : > { %6251 = vmatprep.subr.msk.bf16.mxu1 %vm1929_vm0, %v3311_v0  ;;  %v3283_v0 = vpop.permute.xlu1 %3282 }
 0x4bd   : > { %v3287_v32 = vpop.permute.xlu0 %3286 }
 0x4bf   : > { %v3289_v53 = vpop.permute.xlu1 %3288 }
 0x4c1   : > { %v8094_v21 = vpop.permute.xlu0 %2916 }
 0x4c2   : > { %6008 = vmatpush3.bf16.xpose.msra.mxu1 %v3355_v3  ;;  %5947 = vmatprep.subr.bf16.mxu0 %v8094_v21 }
 0x4c3   : > { %6252 = vmatprep.subr.msk.bf16.mxu1 %vm1929_vm0, %v3313_v33  ;;  %v3364_v33 = vsel %vm1929_vm0, %v3317_v35, 0 }
 0x4c5   : > { %v3293_v62 = vpop.permute.xlu0 %3292 }
 0x4ca   : > { %6010 = vmatpush3.bf16.xpose.msra.mxu1 %v3358_v49 }
 0x4cb   : > { %6253 = vmatprep.subr.msk.bf16.mxu1 %vm1929_vm0, %v3315_v29  ;;  %v3291_v29 = vpop.permute.xlu1 %3290 }
 0x4d2   : > { %6012 = vmatpush3.bf16.xpose.msra.mxu1 %v3361_v4 }
 0x4d3   : > { %6254 = vmatprep.subr.msk.bf16.mxu1 %vm1929_vm0, %v3317_v35 }
 0x4da   : > { %6014 = vmatpush3.bf16.xpose.msra.mxu1 %v3364_v33 }
 0x4e1   : > { %6016 = vmatmul.mubr.msk.bf16.vlgmr.msra.gmra.mrb[80].mxu1 %vm1929_vm0, %v3281_v48 }
 0x4e2   : > { %6019 = vmatprep.mubr.msk.bf16.mxu1 %vm1929_vm0, %v3283_v0 }
 0x4e9   : > { %6020 = vmatmul.mubr.msk.bf16.gmra.mrb[84].mxu1 %vm1929_vm0, %v3285_v8 }
 0x4ea   : > { %6023 = vmatprep.mubr.msk.bf16.mxu1 %vm1929_vm0, %v3287_v32 }
 0x4f1   : > { %6024 = vmatmul.mubr.msk.bf16.gmra.mrb[88].mxu1 %vm1929_vm0, %v3289_v53 }
 0x4f2   : > { %6027 = vmatprep.mubr.msk.bf16.mxu1 %vm1929_vm0, %v3291_v29 }
 0x4f9   : > { %6028 = vmatmul.mubr.msk.bf16.gmra.mrb[92].mxu1 %vm1929_vm0, %v3293_v62 }
 0x530   : > { %v5945_v35 = vpop.f32.mrb[76].mxu1 }
 0x531   : > { %v2741_v3 = vpop.f32.mrb[77].mxu1 }
 0x532   : > { %v5946_v49 = vpop.f32.mrb[78].mxu1  ;;  %v8108_v48 = vsel %vm2080_vm2, %v2741_v3, -1e+30 }
 0x533   : > { %9258 = vst [vmem:[#allocation46_spill] sm:$0xff] %v8108_v48  ;;  %v2744_v39 = vpop.f32.mrb[79].mxu1  ;;  %2796 = vmax.xlane.f32.xlu1 %v8108_v48 }
 0x534   : > { %v8113_v8 = vsel %vm2080_vm2, %v2744_v39, -1e+30 }
 0x535   : > { %9259 = vst [vmem:[#allocation47_spill] sm:$0xff] %v8113_v8  ;;  %2798 = vmax.xlane.f32.xlu0 %v8113_v8 }
 0x537   : > { %2181 = vadd.xlane.f32.xlu1 %v7965_v24 }
 0x539   : > { %2179 = vadd.xlane.f32.xlu0 %v7959_v23  ;;  %v8144_v23 = vsel %vm2080_vm2, %v5945_v35, -1e+30 }
 0x53a   : > { %9260 = vst [vmem:[#allocation48_spill] sm:$0xff] %v8144_v23 }
 0x53b   : > { %2177 = vadd.xlane.f32.xlu1 %v7961_v2 }
 0x53d   : > { %2185 = vadd.xlane.f32.xlu0 %v8040_v47  ;;  %v8120_v32 = vpop.f32.mrb[48].mxu0 }
 0x53e   : > { %v8122_v44 = vpop.f32.mrb[49].mxu0 }
 0x53f   : > { %2183 = vadd.xlane.f32.xlu1 %v7967_v14  ;;  %v8125_v4 = vpop.f32.mrb[50].mxu0 }
 0x540   : > { %v8127_v33 = vpop.f32.mrb[51].mxu0 }
 0x541   : > { %2193 = vadd.xlane.f32.xlu0 %v8057_v46 }
 0x543   : > { %2189 = vadd.xlane.f32.xlu1 %v8048_v13 }
 0x545   : > { %2207 = vadd.xlane.f32.xlu0 %v8080_v59 }
 0x547   : > { %2191 = vadd.xlane.f32.xlu1 %v8050_v34 }
 0x549   : > { %2203 = vadd.xlane.f32.xlu0 %v8074_v50 }
 0x54b   : > { %2187 = vadd.xlane.f32.xlu1 %v8042_v42  ;;  %v8163_v42 = vsel %vm2080_vm2, %v5946_v49, -1e+30 }
 0x54c   : > { %9261 = vst [vmem:[#allocation49_spill] sm:$0xff] %v8163_v42 }
 0x54f   : > { %2197 = vadd.xlane.f32.xlu1 %v8064_v57 }
 0x553   : > { %2199 = vadd.xlane.f32.xlu1 %v8066_v58 }
 0x557   : > { %2195 = vadd.xlane.f32.xlu1 %v8059_v28 }
 0x55b   : > { %2205 = vadd.xlane.f32.xlu1 %v8078_v61 }
 0x55f   : > { %2201 = vadd.xlane.f32.xlu1 %v8071_v15  ;;  %2928 = vrot.lane.b32.xlu0 %v7841_v27, %s6995_s25  ;;  %v8188_v15 = vpop.permute.xlu1 %2922 }
 0x563   : > { %2800 = vmax.xlane.f32.xlu1 %v8144_v23 }
 0x574   : > { %2930 = vrot.lane.b32.xlu1 %v7839_v19, %s6995_s25 }
 0x576   : > { %v8149_v2 = vpop.f32.mrb[52].mxu0 }
 0x577   : > { %v8151_v24 = vpop.f32.mrb[53].mxu0 }
 0x578   : > { %4009 = vrot.lane.b32.xlu1 %v7508_v31, %s6997_s22  ;;  %v8155_v14 = vpop.f32.mrb[54].mxu0 }
 0x579   : > { %v8157_v47 = vpop.f32.mrb[55].mxu0 }
 0x57c   : > { %4011 = vrot.lane.b32.xlu1 %v7526_v6, %s6997_s22 }
 0x57e   : > { %2802 = vmax.xlane.f32.xlu0 %v8163_v42  ;;  %v8166_v13 = vpop.f32.mrb[56].mxu0 }
 0x57f   : > { %v8168_v34 = vpop.f32.mrb[57].mxu0 }
 0x580   : > { %4013 = vrot.lane.b32.xlu1 %v7542_v51, %s6997_s22  ;;  %v8172_v31 = vpop.f32.mrb[58].mxu0  ;;  %v8194_v51 = vpop.permute.xlu1 %2926 }
 0x581   : > { %v8174_v46 = vpop.f32.mrb[59].mxu0 }
 0x584   : > { %4017 = vrot.lane.b32.xlu1 %v7574_v30, %s6997_s22  ;;  %v8196_v30 = vpop.permute.xlu0 %2918 }
 0x586   : > { %v8178_v6 = vpop.f32.mrb[60].mxu0 }
 0x587   : > { %v8180_v28 = vpop.f32.mrb[61].mxu0 }
 0x588   : > { %4019 = vrot.lane.b32.xlu1 %v7590_v41, %s6997_s22  ;;  %v8184_v57 = vpop.f32.mrb[62].mxu0  ;;  %v8202_v41 = vpop.xlane.xlu1 %2776 }
 0x589   : > { %v8186_v58 = vpop.f32.mrb[63].mxu0 }
 0x58c   : > { %4021 = vrot.lane.b32.xlu1 %v7607_v55, %s6997_s22  ;;  %v8208_v55 = vpop.permute.xlu0 %2920 }
 0x590   : > { %4023 = vrot.lane.b32.xlu1 %v7623_v18, %s6997_s22  ;;  %v8216_v18 = vpop.permute.xlu0 %2924 }
 0x594   : > { %3987 = vrot.lane.b32.xlu1 %v7524_v38, %s6997_s22  ;;  %4015 = vrot.lane.b32.xlu0 %v7558_v60, %s6997_s22  ;;  %v8214_v38 = vpop.xlane.xlu1 %2778 }
 0x598   : > { %3989 = vrot.lane.b32.xlu1 %v7540_v17, %s6997_s22  ;;  %3985 = vrot.lane.b32.xlu0 %v7506_v45, %s6997_s22  ;;  %v8220_v60 = vpop.xlane.xlu1 %2784  ;;  %v8222_v17 = vpop.xlane.xlu0 %2772 }
 0x59c   : > { %3993 = vrot.lane.b32.xlu1 %v7572_v1, %s6997_s22  ;;  %3991 = vrot.lane.b32.xlu0 %v7556_v25, %s6997_s22  ;;  %v8224_v45 = vpop.xlane.xlu1 %2786  ;;  %v8226_v50 = vpop.xlane.xlu0 %2774 }
 0x5a0   : > { %3995 = vrot.lane.b32.xlu0 %v7588_v40, %s6997_s22  ;;  %v8228_v61 = vpop.xlane.xlu1 %2782  ;;  %v8230_v1 = vpop.xlane.xlu0 %2780 }
 0x5a4   : > { %v8232_v0 = vpop.xlane.xlu1 %2792  ;;  %v8234_v62 = vpop.xlane.xlu0 %2788 }
 0x5a5   : > { %9262 = vst [vmem:[#allocation50_spill] sm:$0xff] %v8232_v0 }
 0x5a8   : > { %v8236_v40 = vpop.xlane.xlu1 %2790  ;;  %v8242_v49 = vpop.xlane.xlu0 %2794 }
 0x5b4   : > { %v6017_v25 = vpop.f32.mrb[80].mxu1 }
 0x5b5   : > { %v3400_v59 = vpop.f32.mrb[81].mxu1  ;;  %v8248_v19 = vsel %vm2080_vm2, %v6017_v25, -1e+30 }
 0x5b6   : > { %v6018_v53 = vpop.f32.mrb[82].mxu1  ;;  %9265 = vst [vmem:[#allocation53_spill] sm:$0xff] %v8248_v19  ;;  %v8252_v27 = vsel %vm2080_vm2, %v3400_v59, -1e+30 }
 0x5b7   : > { %v3403_v29 = vpop.f32.mrb[83].mxu1  ;;  %9266 = vst [vmem:[#allocation54_spill] sm:$0xff] %v8252_v27 }
 0x5b8   : > { %v8268_v25 = vsel %vm2080_vm2, %v3403_v29, -1e+30 }
 0x5b9   : > { %9271 = vst [vmem:[#allocation59_spill] sm:$0xff] %v8268_v25 }
 0x5bc   : > { %v8238_v35 = vpop.f32.mrb[84].mxu1 }
 0x5bd   : > { %v8240_v3 = vpop.f32.mrb[85].mxu1 }
 0x5be   : > { %9263 = vst [vmem:[#allocation51_spill] sm:$0xff] %v8240_v3  ;;  %v8244_v39 = vpop.f32.mrb[86].mxu1 }
 0x5bf   : > { %9264 = vst [vmem:[#allocation52_spill] sm:$0xff] %v8244_v39  ;;  %v8254_v42 = vpop.f32.mrb[87].mxu1  ;;  %3483 = vmax.xlane.f32.xlu0 %v8248_v19  ;;  %v8264_v39 = vsel %vm2080_vm2, %v6018_v53, -1e+30 }
 0x5c0   : > { %9267 = vst [vmem:[#allocation55_spill] sm:$0xff] %v8254_v42  ;;  %v8257_v23 = vpop.xlane.xlu1 %2796  ;;  %3479 = vmax.xlane.f32.xlu1 %v8252_v27  ;;  %9270 = vst [vmem:[#allocation58_spill] sm:$0xff] %v8264_v39 }
 0x5c1   : > { %9268 = vst [vmem:[#allocation56_spill] sm:$0xff] %v8257_v23 }
 0x5c2   : > { %v8260_v3 = vpop.xlane.xlu0 %2798 }
 0x5c3   : > { %9269 = vst [vmem:[#allocation57_spill] sm:$0xff] %v8260_v3  ;;  %3485 = vmax.xlane.f32.xlu0 %v8264_v39 }
 0x5c4   : > { %v8271_v59 = vpop.f32.mrb[88].mxu1  ;;  %v2182_v42 = vpop.xlane.xlu1 %2181  ;;  %3481 = vmax.xlane.f32.xlu1 %v8268_v25 }
 0x5c5   : > { %9272 = vst [vmem:[#allocation60_spill] sm:$0xff] %v8271_v59  ;;  %v8274_v19 = vpop.f32.mrb[89].mxu1 }
 0x5c6   : > { %9273 = vst [vmem:[#allocation61_spill] sm:$0xff] %v8274_v19  ;;  %v8276_v27 = vpop.f32.mrb[90].mxu1  ;;  %v2180_v48 = vpop.xlane.xlu0 %2179 }
 0x5c7   : > { %9274 = vst [vmem:[#allocation62_spill] sm:$0xff] %v8276_v27  ;;  %v8278_v23 = vpop.f32.mrb[91].mxu1  ;;  %6467 = vrcp.f32 %v2180_v48 }
 0x5c8   : > { %9275 = vst [vmem:[#allocation63_spill] sm:$0xff] %v8278_v23  ;;  %v2178_v53 = vpop.xlane.xlu1 %2177 }
 0x5c9   : > { %6469 = vrcp.f32 %v2178_v53 }
 0x5ca   : > { %6471 = vrcp.f32 %v2182_v42  ;;  %v2186_v3 = vpop.xlane.xlu0 %2185 }
 0x5cc   : > { %v2184_v29 = vpop.xlane.xlu1 %2183  ;;  %v8280_v0 = vpop.f32.mrb[92].mxu1 }
 0x5cd   : > { %9276 = vst [vmem:[#allocation64_spill] sm:$0xff] %v8280_v0  ;;  %6473 = vrcp.f32 %v2184_v29  ;;  %v8282_v39 = vpop.f32.mrb[93].mxu1 }
 0x5ce   : > { %9277 = vst [vmem:[#allocation65_spill] sm:$0xff] %v8282_v39  ;;  %v8284_v59 = vpop.f32.mrb[94].mxu1 }
 0x5cf   : > { %9278 = vst [vmem:[#allocation66_spill] sm:$0xff] %v8284_v59  ;;  %v8286_v25 = vpop.f32.mrb[95].mxu1 }
 0x5d0   : > { %9279 = vst [vmem:[#allocation67_spill] sm:$0xff] %v8286_v25  ;;  %v2190_v19 = vpop.xlane.xlu1 %2189 }
 0x5d1   : > { %v6468_v8 = vpop.eup %6467  ;;  %6475 = vrcp.f32 %v2190_v19  ;;  %v2194_v19 = vpop.xlane.xlu0 %2193 }
 0x5d2   : > { %v2331_v42 = vmul.f32 %v6468_v8, %v8127_v33 }
 0x5d3   : > { %v6470_v27 = vpop.eup %6469 }
 0x5d4   : > { %v2192_v23 = vpop.xlane.xlu1 %2191  ;;  %v2330_v48 = vmul.f32 %v6470_v27, %v8122_v44  ;;  %v6472_v53 = vpop.eup %6471 }
 0x5d5   : > { %6477 = vrcp.f32 %v2192_v23  ;;  %3623 = vrot.lane.b32.xlu1 %v7783_v5, %s9207_s24  ;;  %v2332_v59 = vmul.f32 %v6472_v53, %v8120_v32  ;;  %v9280_v23 = vld [vmem:[#allocation40_spill] sm:$0xff] }
 0x5d6   : > { %v2362_v29 = vpack.c.bf16 %v2331_v42, %v2330_v48  ;;  %6479 = vrcp.f32 %v2186_v3 }
 0x5d7   : > { %v6474_v0 = vpop.eup %6473 }
 0x5d8   : > { %v2333_v25 = vmul.f32 %v6474_v0, %v8125_v4  ;;  %v2188_v39 = vpop.xlane.xlu1 %2187  ;;  %5899 = vmatprep.mubr.msk.bf16.mxu0 %vm1929_vm0, %v2362_v29 }
 0x5d9   : > { %6481 = vrcp.f32 %v2188_v39  ;;  %3999 = vrot.lane.b32.xlu1 %v7620_v63, %s6997_s22  ;;  %3997 = vrot.lane.b32.xlu0 %v7604_v54, %s6997_s22 }
 0x5da   : > { %v2363_v27 = vpack.c.bf16 %v2333_v25, %v2332_v59  ;;  %v2805_v25 = vsub.f32 %v8003_v37, %v8226_v50 }
 0x5db   : > { %v6476_v44 = vpop.eup %6475 }
 0x5dc   : > { %v2198_v8 = vpop.xlane.xlu1 %2197  ;;  %5900 = vmatmul.mubr.msk.bf16.vlgmr.msra.gmra.mrb[64].mxu0 %vm1929_vm0, %v2363_v27  ;;  %v2336_v54 = vmul.f32 %v6476_v44, %v8149_v2  ;;  %v2822_v42 = vmul.f32 1.442695, %v2805_v25  ;;  %v2807_v27 = vsub.f32 %v7978_v22, %v8214_v38  ;;  %v2809_v22 = vsub.f32 %v7998_v10, %v8228_v61  ;;  %v6429_v61 = vld [vmem:[#allocation12 + $0x10] sm:$0xff]  }
 0x5dd   : > { %5948 = vmatpush3.bf16.msra.mxu0 %v8094_v21  ;;  %3625 = vrot.lane.b32.xlu1 %v7776_v52, %s9207_s24  ;;  %6483 = vrcp.f32 %v2198_v8  ;;  %v2208_v21 = vpop.xlane.xlu0 %2207 }
 0x5de   : > { %3629 = vrot.lane.b32.xlu0 %v7789_v12, %s9207_s24  ;;  %5949 = vmatprep.subr.bf16.mxu0 %v8196_v30 }
 0x5df   : > { %v6478_v63 = vpop.eup %6477 }
 0x5e0   : > { %v2200_v32 = vpop.xlane.xlu1 %2199  ;;  %v2337_v4 = vmul.f32 %v6478_v63, %v8155_v14  ;;  %v6480_v33 = vpop.eup %6479 }
 0x5e1   : > { %6485 = vrcp.f32 %v2200_v32  ;;  %5950 = vmatpush3.bf16.msra.mxu0 %v8196_v30  ;;  %3627 = vrot.lane.b32.xlu1 %v7793_v43, %s9207_s24  ;;  %v2334_v2 = vmul.f32 %v6480_v33, %v8151_v24  ;;  %v2204_v59 = vpop.xlane.xlu0 %2203 }
 0x5e2   : > { %3633 = vrot.lane.b32.xlu0 %v9280_v23, %s9207_s24  ;;  %5951 = vmatprep.subr.bf16.mxu0 %v8208_v55  ;;  %v2365_v0 = vpack.c.bf16 %v2337_v4, %v2336_v54  ;;  %6487 = vrcp.f32 %v2194_v19  ;;  %v2808_v19 = vsub.f32 %v8013_v9, %v8230_v1  ;;  %v2826_v1 = vmul.f32 1.442695, %v2807_v27 }
 0x5e3   : > { %v6482_v3 = vpop.eup %6481  ;;  %v2830_v4 = vmul.f32 1.442695, %v2809_v22 }
 0x5e4   : > { %v2196_v39 = vpop.xlane.xlu1 %2195  ;;  %v2335_v14 = vmul.f32 %v6482_v3, %v8157_v47  ;;  %v2804_v47 = vsub.f32 %v7993_v36, %v8222_v17  ;;  %v2828_v32 = vmul.f32 1.442695, %v2808_v19 }
 0x5e5   : > { %6489 = vrcp.f32 %v2196_v39  ;;  %5952 = vmatpush3.bf16.msra.mxu0 %v8208_v55  ;;  %3631 = vrot.lane.b32.xlu1 %v7827_v11, %s9207_s24  ;;  %v2929_v63 = vpop.permute.xlu0 %2928 }
 0x5e6   : > { %5953 = vmatprep.subr.bf16.mxu0 %v8188_v15  ;;  %v2364_v30 = vpack.c.bf16 %v2335_v14, %v2334_v2  ;;  %6491 = vrcp.f32 %v2208_v21  ;;  %v2813_v21 = vsub.f32 %v8018_v16, %v8236_v40 }
 0x5e7   : > { %v6484_v24 = vpop.eup %6483 }
 0x5e8   : > { %v2206_v48 = vpop.xlane.xlu1 %2205  ;;  %5903 = vmatprep.mubr.msk.bf16.mxu0 %vm1929_vm0, %v2364_v30  ;;  %v2340_v37 = vmul.f32 %v6484_v24, %v8166_v13  ;;  %v9282_v30 = vld [vmem:[#allocation45_spill] sm:$0xff]  ;;  %v9284_v24 = vld [vmem:[#allocation47_spill] sm:$0xff] }
 0x5e9   : > { %6493 = vrcp.f32 %v2206_v48  ;;  %5954 = vmatpush3.bf16.msra.mxu0 %v8188_v15  ;;  %v2820_v15 = vmul.f32 1.442695, %v2804_v47  ;;  %v2815_v25 = vsub.f32 %v9282_v30, %v8242_v49  ;;  %v9283_v48 = vld [vmem:[#allocation57_spill] sm:$0xff] }
 0x5ea   : > { %5904 = vmatmul.mubr.msk.bf16.gmra.mrb[68].mxu0 %vm1929_vm0, %v2365_v0  ;;  %5955 = vmatprep.subr.bf16.mxu0 %v8216_v18  ;;  %6495 = vrcp.f32 %v2204_v59  ;;  %v8375_v59 = vsel %vm2080_vm2, %v8238_v35, -1e+30  ;;  %v2817_v47 = vsub.f32 %v9284_v24, %v9283_v48 }
 0x5eb   : > { %v6486_v55 = vpop.eup %6485  ;;  %v2842_v27 = vmul.f32 1.442695, %v2815_v25 }
 0x5ec   : > { %v2202_v53 = vpop.xlane.xlu1 %2201  ;;  %v2341_v50 = vmul.f32 %v6486_v55, %v8172_v31  ;;  %v6488_v29 = vpop.eup %6487 }
 0x5ed   : > { %6497 = vrcp.f32 %v2202_v53  ;;  %5956 = vmatpush3.bf16.msra.mxu0 %v8216_v18  ;;  %v2338_v13 = vmul.f32 %v6488_v29, %v8168_v34  ;;  %v2806_v18 = vsub.f32 %v7971_v56, %v8202_v41  ;;  %v9286_v53 = vld [vmem:[#allocation44_spill] sm:$0xff] }
 0x5ee   : > { %5957 = vmatprep.subr.bf16.mxu0 %v8194_v51  ;;  %v2367_v36 = vpack.c.bf16 %v2341_v50, %v2340_v37  ;;  %6499 = vpow2.f32 %v2822_v42  ;;  %v9285_v42 = vld [vmem:[#allocation50_spill] sm:$0xff]  ;;  %v9287_v29 = vld [vmem:[#allocation56_spill] sm:$0xff] }
 0x5ef   : > { %v6490_v17 = vpop.eup %6489  ;;  %6501 = vpow2.f32 %v2820_v15  ;;  %v2824_v41 = vmul.f32 1.442695, %v2806_v18  ;;  %v2814_v37 = vsub.f32 %v9286_v53, %v9285_v42  ;;  %v9288_v15 = vld [vmem:[#allocation46_spill] sm:$0xff]  ;;  %v9298_v53 = vld [vmem:[#allocation65_spill] sm:$0xff] }
 0x5f0   : > { %v8336_v8 = vpop.xlane.xlu1 %2800  ;;  %v2339_v31 = vmul.f32 %v6490_v17, %v8174_v46  ;;  %v6492_v44 = vpop.eup %6491  ;;  %6503 = vpow2.f32 %v2826_v1  ;;  %v9290_v1 = vld [vmem:[#allocation48_spill] sm:$0xff] }
 0x5f1   : > { %5958 = vmatpush3.bf16.msra.mxu0 %v8194_v51  ;;  %v2345_v46 = vmul.f32 %v6492_v44, %v8184_v57  ;;  %v2811_v51 = vsub.f32 %v7988_v7, %v8224_v45  ;;  %6505 = vpow2.f32 %v2828_v32  ;;  %v9281_v45 = vld [vmem:[#allocation43_spill] sm:$0xff]  ;;  %v2846_v44 = vmul.f32 1.442695, %v2817_v47 }
 0x5f2   : > { %5959 = vmatprep.subr.bf16.mxu0 %v2929_v63  ;;  %v2366_v38 = vpack.c.bf16 %v2339_v31, %v2338_v13  ;;  %6507 = vpow2.f32 %v2824_v41  ;;  %v2810_v3 = vsub.f32 %v9281_v45, %v8220_v60  ;;  %v9289_v13 = vld [vmem:[#allocation52_spill] sm:$0xff]  ;;  %v2840_v22 = vmul.f32 1.442695, %v2814_v37 }
 0x5f3   : > { %v6494_v9 = vpop.eup %6493  ;;  %v2834_v16 = vmul.f32 1.442695, %v2811_v51  ;;  %6509 = vpow2.f32 %v2830_v4  ;;  %v8397_v31 = vsel %vm2080_vm2, %v9289_v13, -1e+30  ;;  %v2818_v32 = vsub.f32 %v9290_v1, %v8336_v8 }
 0x5f4   : > { %v2931_v54 = vpop.permute.xlu1 %2930  ;;  %5907 = vmatprep.mubr.msk.bf16.mxu0 %vm1929_vm0, %v2366_v38  ;;  %v2344_v34 = vmul.f32 %v6494_v9, %v8178_v6  ;;  %v6496_v56 = vpop.eup %6495  ;;  %v2812_v6 = vsub.f32 %v8023_v26, %v8234_v62  ;;  %v2838_v62 = vmul.f32 1.442695, %v2813_v21  ;;  %v2832_v60 = vmul.f32 1.442695, %v2810_v3  ;;  %v9293_v21 = vld [vmem:[#allocation60_spill] sm:$0xff] }
 0x5f5   : > { %5960 = vmatpush3.bf16.msra.mxu0 %v2929_v63  ;;  %v2343_v7 = vmul.f32 %v6496_v56, %v8186_v58  ;;  %6511 = vpow2.f32 %v2834_v16  ;;  %v6430_v63 = vld [vmem:[#allocation12 + $0x18] sm:$0xff]   ;;  %v9292_v56 = vld [vmem:[#allocation55_spill] sm:$0xff]  ;;  %v8459_v37 = vsel %vm2080_vm2, %v9298_v53, -1e+30 }
 0x5f6   : > { %5908 = vmatmul.mubr.msk.bf16.gmra.mrb[72].mxu0 %vm1929_vm0, %v2367_v36  ;;  %5961 = vmatprep.subr.bf16.mxu0 %v2931_v54  ;;  %v2369_v10 = vpack.c.bf16 %v2345_v46, %v2344_v34  ;;  %v2836_v58 = vmul.f32 1.442695, %v2812_v6  ;;  %6513 = vpow2.f32 %v2838_v62  ;;  %v2816_v36 = vsub.f32 %v9288_v15, %v9287_v29  ;;  %v9291_v34 = vld [vmem:[#allocation51_spill] sm:$0xff]  ;;  %v9296_v62 = vld [vmem:[#allocation62_spill] sm:$0xff] }
 0x5f7   : > { %v6498_v33 = vpop.eup %6497  ;;  %v8411_v46 = vsel %vm2080_vm2, %v9291_v34, -1e+30  ;;  %v8416_v41 = vsel %vm2080_vm2, %v9292_v56, -1e+30  ;;  %v8428_v6 = vsel %vm2080_vm2, %v9293_v21, -1e+30 }
 0x5f8   : > { %v4010_v57 = vpop.permute.xlu1 %4009  ;;  %v2342_v0 = vmul.f32 %v6498_v33, %v8180_v28  ;;  %v8361_v2 = vpop.eup %6499  ;;  %6515 = vpow2.f32 %v2836_v58  ;;  %v2844_v9 = vmul.f32 1.442695, %v2816_v36  ;;  %v8444_v58 = vsel %vm2080_vm2, %v9296_v62, -1e+30  ;;  %v9303_v21 = vld [vmem:[#allocation66_spill] sm:$0xff] }
 0x5f9   : > { %5962 = vmatpush3.bf16.msra.mxu0 %v2931_v54  ;;  %6255 = vmatprep.subr.msk.bf16.mxu1 %vm1929_vm0, %v4010_v57  ;;  %v4050_v39 = vsel %vm1929_vm0, %v4010_v57, 0  ;;  %v8363_v28 = vpop.eup %6501  ;;  %6517 = vpow2.f32 %v2832_v60  ;;  %v9294_v57 = vld [vmem:[#allocation61_spill] sm:$0xff] }
 0x5fa   : > { %6084 = vmatpush3.bf16.xpose.msra.mxu1 %v4050_v39  ;;  %v2368_v26 = vpack.c.bf16 %v2343_v7, %v2342_v0  ;;  %5979 = vmatprep.subr.bf16.mxu0 %v6429_v61  ;;  %v2900_v14 = vpack.c.bf16 %v8361_v2, %v8363_v28  ;;  %v8379_v55 = vpop.eup %6503  ;;  %6519 = vpow2.f32 %v2842_v27  ;;  %v8433_v0 = vsel %vm2080_vm2, %v9294_v57, -1e+30  ;;  %v9295_v7 = vld [vmem:[#allocation49_spill] sm:$0xff] }
 0x5fb   : > { %v8385_v50 = vpop.eup %6505  ;;  %6521 = vpow2.f32 %v2846_v44  ;;  %v8516_v57 = vsel %vm2080_vm2, %v9303_v21, -1e+30 }
 0x5fc   : > { %v4012_v40 = vpop.permute.xlu1 %4011  ;;  %5911 = vmatprep.mubr.msk.bf16.mxu0 %vm1929_vm0, %v2368_v26  ;;  %v8389_v17 = vpop.eup %6507  ;;  %6523 = vpow2.f32 %v2840_v22 }
 0x5fd   : > { %6256 = vmatprep.subr.msk.bf16.mxu1 %vm1929_vm0, %v4012_v40  ;;  %v4053_v49 = vsel %vm1929_vm0, %v4012_v40, 0  ;;  %v8392_v19 = vpop.eup %6509  ;;  %v2901_v18 = vpack.c.bf16 %v8379_v55, %v8389_v17  ;;  %6525 = vpow2.f32 %v2844_v9  ;;  %v9297_v40 = vld [vmem:[#allocation63_spill] sm:$0xff]  ;;  %v9301_v9 = vld [vmem:[#allocation64_spill] sm:$0xff] }
 0x5fe   : > { %5912 = vmatmul.mubr.msk.bf16.gmra.mrb[76].mxu0 %vm1929_vm0, %v2369_v10  ;;  %v2902_v38 = vpack.c.bf16 %v8392_v19, %v8385_v50  ;;  %v8449_v60 = vsel %vm2080_vm2, %v9297_v40, -1e+30 }
 0x5ff   : > { %5963 = vmatprep.mubr.bf16.mxu0 %v2900_v14  ;;  %v8406_v54 = vpop.eup %6511 }
 0x600   : > { %v4014_v35 = vpop.permute.xlu1 %4013  ;;  %v8418_v51 = vpop.eup %6513 }
 0x601   : > { %3491 = vmax.xlane.f32.xlu0 %v8375_v59  ;;  %v4056_v8 = vsel %vm1929_vm0, %v4014_v35, 0 }
 0x602   : > { %6086 = vmatpush3.bf16.xpose.msra.mxu1 %v4053_v49  ;;  %v8423_v4 = vpop.eup %6515  ;;  %v9299_v49 = vld [vmem:[#allocation67_spill] sm:$0xff] }
 0x603   : > { %6257 = vmatprep.subr.msk.bf16.mxu1 %vm1929_vm0, %v4014_v35  ;;  %v6518_v10 = vpop.eup %6517  ;;  %v2904_v39 = vpack.c.bf16 %v8418_v51, %v8423_v4  ;;  %v8464_v29 = vsel %vm2080_vm2, %v9299_v49, -1e+30 }
 0x604   : > { %v2903_v3 = vpack.c.bf16 %v8406_v54, %v6518_v10  ;;  %v6520_v30 = vpop.eup %6519  ;;  %v4018_v48 = vpop.permute.xlu1 %4017 }
 0x605   : > { %3493 = vmax.xlane.f32.xlu0 %v8397_v31  ;;  %v6522_v25 = vpop.eup %6521  ;;  %v4062_v27 = vsel %vm1929_vm0, %v4018_v48, 0 }
 0x606   : > { %5964 = vmatmul.mubr.bf16.vlgmr.msra.gmra.mrb[80].mxu0 %v2901_v18  ;;  %v6524_v24 = vpop.eup %6523 }
 0x607   : > { %5967 = vmatprep.mubr.bf16.mxu0 %v2902_v38  ;;  %5980 = vmatpush3.bf16.msra.mxu0 %v6429_v61  ;;  %v2848_v61 = vmul.f32 1.442695, %v2818_v32  ;;  %v6526_v42 = vpop.eup %6525  ;;  %v2905_v15 = vpack.c.bf16 %v6520_v30, %v6524_v24  ;;  %v9300_v38 = vld [vmem:[#allocation42_spill] sm:$0xff] }
 0x608   : > { %5981 = vmatprep.subr.bf16.mxu0 %v6430_v63  ;;  %v2906_v36 = vpack.c.bf16 %v6522_v25, %v6526_v42  ;;  %v4020_v44 = vpop.permute.xlu1 %4019 }
 0x609   : > { %3489 = vmax.xlane.f32.xlu0 %v8416_v41  ;;  %3487 = vmax.xlane.f32.xlu1 %v8411_v46  ;;  %6527 = vpow2.f32 %v2848_v61  ;;  %v9302_v61 = vld [vmem:[#allocation41_spill] sm:$0xff] }
 0x60a   : > { %6088 = vmatpush3.bf16.xpose.msra.mxu1 %v4056_v8 }
 0x60b   : > { %v2803_v33 = vpop.xlane.xlu0 %2802  ;;  %5982 = vmatpush3.bf16.msra.mxu0 %v6430_v63 }
 0x60c   : > { %v2819_v45 = vsub.f32 %v9295_v7, %v2803_v33  ;;  %v4022_v63 = vpop.permute.xlu1 %4021 }
 0x60d   : > { %3499 = vmax.xlane.f32.xlu0 %v8428_v6  ;;  %3495 = vmax.xlane.f32.xlu1 %v8433_v0 }
 0x60e   : > { %v2850_v16 = vmul.f32 1.442695, %v2819_v45  ;;  %5968 = vmatmul.mubr.bf16.gmra.mrb[84].mxu0 %v2903_v3 }
 0x60f   : > { %5971 = vmatprep.mubr.bf16.mxu0 %v2904_v39  ;;  %v4016_v26 = vpop.permute.xlu0 %4015 }
 0x610   : > { %6529 = vpow2.f32 %v2850_v16  ;;  %6258 = vmatprep.subr.msk.bf16.mxu1 %vm1929_vm0, %v4016_v26  ;;  %v4059_v14 = vsel %vm1929_vm0, %v4016_v26, 0 }
 0x611   : > { %3497 = vmax.xlane.f32.xlu0 %v8449_v60  ;;  %3501 = vmax.xlane.f32.xlu1 %v8444_v58 }
 0x612   : > { %6090 = vmatpush3.bf16.xpose.msra.mxu1 %v4059_v14 }
 0x613   : > { %6259 = vmatprep.subr.msk.bf16.mxu1 %vm1929_vm0, %v4018_v48  ;;  %v3986_v47 = vpop.permute.xlu0 %3985  ;;  %v6528_v35 = vpop.eup %6527 }
 0x614   : > { %6099 = vmatprep.mubr.msk.bf16.mxu1 %vm1929_vm0, %v3986_v47 }
 0x615   : > { %3503 = vmax.xlane.f32.xlu0 %v8459_v37  ;;  %3505 = vmax.xlane.f32.xlu1 %v8464_v29 }
 0x616   : > { %5972 = vmatmul.mubr.bf16.gmra.mrb[88].mxu0 %v2905_v15 }
 0x617   : > { %5975 = vmatprep.mubr.bf16.mxu0 %v2906_v36  ;;  %v3992_v1 = vpop.permute.xlu0 %3991 }
 0x619   : > { %2856 = vadd.xlane.f32.xlu0 %v8389_v17  ;;  %2852 = vadd.xlane.f32.xlu1 %v8363_v28  ;;  %v4065_v17 = vsel %vm1929_vm0, %v4020_v44, 0  ;;  %v4068_v28 = vsel %vm1929_vm0, %v4022_v63, 0 }
 0x61a   : > { %v6530_v13 = vpop.eup %6529  ;;  %6092 = vmatpush3.bf16.xpose.msra.mxu1 %v4062_v27 }
 0x61b   : > { %6260 = vmatprep.subr.msk.bf16.mxu1 %vm1929_vm0, %v4020_v44  ;;  %v2907_v18 = vpack.c.bf16 %v6530_v13, %v6528_v35 }
 0x61d   : > { %2858 = vadd.xlane.f32.xlu0 %v8379_v55  ;;  %2860 = vadd.xlane.f32.xlu1 %v8385_v50  ;;  %v4024_v55 = vpop.permute.xlu1 %4023 }
 0x61e   : > { %5976 = vmatmul.mubr.bf16.gmra.mrb[92].mxu0 %v2907_v18 }
 0x621   : > { %2854 = vadd.xlane.f32.xlu0 %v8361_v2  ;;  %2874 = vadd.xlane.f32.xlu1 %v6520_v30  ;;  %v4071_v2 = vsel %vm1929_vm0, %v4024_v55, 0  ;;  %v3988_v50 = vpop.permute.xlu1 %3987 }
 0x622   : > { %6094 = vmatpush3.bf16.xpose.msra.mxu1 %v4065_v17 }
 0x623   : > { %6261 = vmatprep.subr.msk.bf16.mxu1 %vm1929_vm0, %v4022_v63 }
 0x625   : > { %2864 = vadd.xlane.f32.xlu0 %v6518_v10  ;;  %2870 = vadd.xlane.f32.xlu1 %v8418_v51  ;;  %v3990_v22 = vpop.permute.xlu1 %3989 }
 0x629   : > { %2866 = vadd.xlane.f32.xlu0 %v8406_v54  ;;  %2882 = vadd.xlane.f32.xlu1 %v6530_v13  ;;  %v3994_v32 = vpop.permute.xlu1 %3993  ;;  %v3996_v54 = vpop.permute.xlu0 %3995 }
 0x62a   : > { %6096 = vmatpush3.bf16.xpose.msra.mxu1 %v4068_v28 }
 0x62b   : > { %6262 = vmatprep.subr.msk.bf16.mxu1 %vm1929_vm0, %v4024_v55 }
 0x62d   : > { %2862 = vadd.xlane.f32.xlu0 %v8392_v19  ;;  %2878 = vadd.xlane.f32.xlu1 %v6522_v25  ;;  %v8492_v19 = vsel %vm2080_vm2, %v9301_v9, -1e+30 }
 0x631   : > { %2872 = vadd.xlane.f32.xlu0 %v6524_v24 }
 0x632   : > { %6098 = vmatpush3.bf16.xpose.msra.mxu1 %v4071_v2 }
 0x635   : > { %2868 = vadd.xlane.f32.xlu0 %v8423_v4 }
 0x639   : > { %2880 = vadd.xlane.f32.xlu0 %v6528_v35  ;;  %6100 = vmatmul.mubr.msk.bf16.vlgmr.msra.gmra.mrb[96].mxu1 %vm1929_vm0, %v3988_v50 }
 0x63a   : > { %6103 = vmatprep.mubr.msk.bf16.mxu1 %vm1929_vm0, %v3990_v22 }
 0x63d   : > { %2876 = vadd.xlane.f32.xlu0 %v6526_v42 }
 0x63e   : > { %3635 = vrot.lane.b32.xlu1 %v9300_v38, %s9207_s24 }
 0x641   : > { %3507 = vmax.xlane.f32.xlu0 %v8492_v19  ;;  %6104 = vmatmul.mubr.msk.bf16.gmra.mrb[100].mxu1 %vm1929_vm0, %v3992_v1 }
 0x642   : > { %6107 = vmatprep.mubr.msk.bf16.mxu1 %vm1929_vm0, %v3994_v32 }
 0x649   : > { %6108 = vmatmul.mubr.msk.bf16.gmra.mrb[104].mxu1 %vm1929_vm0, %v3996_v54 }
 0x64c   : > { %v8498_v34 = vpop.xlane.xlu0 %3483 }
 0x64d   : > { %v8500_v56 = vpop.xlane.xlu1 %3479 }
 0x650   : > { %v8502_v51 = vpop.xlane.xlu0 %3485 }
 0x651   : > { %v8504_v8 = vpop.xlane.xlu1 %3481 }
 0x654   : > { %v3998_v4 = vpop.permute.xlu0 %3997 }
 0x655   : > { %v8506_v10 = vpop.permute.xlu1 %3623  ;;  %6111 = vmatprep.mubr.msk.bf16.mxu1 %vm1929_vm0, %v3998_v4 }
 0x656   : > { %6031 = vmatprep.subr.bf16.mxu0 %v8506_v10 }
 0x657   : > { %3637 = vrot.lane.b32.xlu0 %v9302_v61, %s9207_s24 }
 0x658   : > { %v8519_v7 = vpop.permute.xlu0 %3629 }
 0x659   : > { %v4000_v33 = vpop.permute.xlu1 %3999 }
 0x65a   : > { %6112 = vmatmul.mubr.msk.bf16.gmra.mrb[108].mxu1 %vm1929_vm0, %v4000_v33 }
 0x65c   : > { %v8521_v45 = vpop.permute.xlu0 %3633 }
 0x65d   : > { %v8529_v26 = vpop.permute.xlu1 %3625 }
 0x661   : > { %v8533_v40 = vpop.permute.xlu1 %3627 }
 0x662   : > { %3509 = vmax.xlane.f32.xlu1 %v8516_v57 }
 0x665   : > { %v8537_v30 = vpop.permute.xlu1 %3631 }
 0x68e   : > { %v8523_v3 = vpop.xlane.xlu0 %3491 }
 0x692   : > { %v8525_v39 = vpop.xlane.xlu0 %3493 }
 0x696   : > { %v8527_v16 = vpop.xlane.xlu0 %3489  ;;  %v8541_v48 = vpop.xlane.xlu1 %3487 }
 0x69a   : > { %v8531_v62 = vpop.xlane.xlu0 %3499  ;;  %v8543_v47 = vpop.xlane.xlu1 %3495 }
 0x69e   : > { %v8535_v14 = vpop.xlane.xlu0 %3497  ;;  %v8545_v53 = vpop.xlane.xlu1 %3501 }
 0x6a2   : > { %v8539_v25 = vpop.xlane.xlu0 %3503  ;;  %v8547_v15 = vpop.xlane.xlu1 %3505 }
 0x6a6   : > { %v2857_v24 = vpop.xlane.xlu0 %2856  ;;  %v2853_v35 = vpop.xlane.xlu1 %2852 }
 0x6a7   : > { %6531 = vrcp.f32 %v2857_v24 }
 0x6a8   : > { %6533 = vrcp.f32 %v2853_v35 }
 0x6aa   : > { %v2859_v42 = vpop.xlane.xlu0 %2858  ;;  %v2861_v13 = vpop.xlane.xlu1 %2860 }
 0x6ab   : > { %6535 = vrcp.f32 %v2859_v42 }
 0x6ae   : > { %v2855_v49 = vpop.xlane.xlu0 %2854  ;;  %v2875_v18 = vpop.xlane.xlu1 %2874 }
 0x6af   : > { %6537 = vrcp.f32 %v2855_v49 }
 0x6b0   : > { %6539 = vrcp.f32 %v2861_v13 }
 0x6b1   : > { %v6532_v63 = vpop.eup %6531 }
 0x6b2   : > { %v2865_v36 = vpop.xlane.xlu0 %2864  ;;  %v2871_v28 = vpop.xlane.xlu1 %2870 }
 0x6b3   : > { %6541 = vrcp.f32 %v2865_v36  ;;  %v6534_v2 = vpop.eup %6533 }
 0x6b5   : > { %v6536_v22 = vpop.eup %6535 }
 0x6b6   : > { %v2867_v27 = vpop.xlane.xlu0 %2866  ;;  %v2883_v49 = vpop.xlane.xlu1 %2882 }
 0x6b7   : > { %6543 = vrcp.f32 %v2867_v27 }
 0x6b9   : > { %v6538_v32 = vpop.eup %6537 }
 0x6ba   : > { %v2863_v44 = vpop.xlane.xlu0 %2862  ;;  %v6540_v35 = vpop.eup %6539 }
 0x6bb   : > { %6545 = vrcp.f32 %v2863_v44 }
 0x6bc   : > { %6547 = vrcp.f32 %v2875_v18  ;;  %v9304_v18 = vld [vmem:[#allocation59_spill] sm:$0xff] }
 0x6bd   : > { %6549 = vrcp.f32 %v2871_v28  ;;  %v6542_v44 = vpop.eup %6541 }
 0x6be   : > { %v2873_v17 = vpop.xlane.xlu0 %2872 }
 0x6bf   : > { %6551 = vrcp.f32 %v2873_v17 }
 0x6c2   : > { %v2869_v9 = vpop.xlane.xlu0 %2868 }
 0x6c3   : > { %6553 = vrcp.f32 %v2869_v9  ;;  %v9305_v9 = vld [vmem:[#allocation54_spill] sm:$0xff] }
 0x6c4   : > { %6555 = vrcp.f32 %v2883_v49 }
 0x6c6   : > { %v2881_v27 = vpop.xlane.xlu0 %2880 }
 0x6d9   : > { %v5965_v55 = vpop.f32.mrb[80].mxu0 }
 0x6da   : > { %v2974_v50 = vpop.f32.mrb[81].mxu0  ;;  %v3039_v54 = vmul.f32 %v6532_v63, %v5965_v55  ;;  %v6544_v63 = vpop.eup %6543 }
 0x6db   : > { %v5966_v1 = vpop.f32.mrb[82].mxu0  ;;  %v3037_v21 = vmul.f32 %v6534_v2, %v2974_v50  ;;  %v6546_v2 = vpop.eup %6545  ;;  %v3512_v50 = vsub.f32 %v9304_v18, %v8504_v8  ;;  %v9307_v18 = vld [vmem:[#allocation53_spill] sm:$0xff] }
 0x6dc   : > { %v3040_v4 = vmul.f32 %v6536_v22, %v5966_v1  ;;  %v2977_v33 = vpop.f32.mrb[83].mxu0  ;;  %v2879_v1 = vpop.xlane.xlu1 %2878 }
 0x6dd   : > { %v3038_v24 = vmul.f32 %v6538_v32, %v2977_v33  ;;  %6557 = vrcp.f32 %v2879_v1  ;;  %v6548_v8 = vpop.eup %6547 }
 0x6de   : > { %v3070_v42 = vpack.c.bf16 %v3040_v4, %v3039_v54  ;;  %v3511_v4 = vsub.f32 %v9305_v9, %v8500_v56  ;;  %6559 = vrcp.f32 %v2881_v27 }
 0x6df   : > { %v3069_v36 = vpack.c.bf16 %v3038_v24, %v3037_v21  ;;  %v2877_v21 = vpop.xlane.xlu0 %2876  ;;  %v3529_v24 = vmul.f32 1.442695, %v3512_v50  ;;  %v3513_v50 = vsub.f32 %v9307_v18, %v8498_v34 }
 0x6e0   : > { %6561 = vrcp.f32 %v2877_v21  ;;  %v3520_v21 = vsub.f32 %v8449_v60, %v8535_v14  ;;  %v3636_v60 = vpop.permute.xlu1 %3635 }
 0x6e1   : > { %v5969_v13 = vpop.f32.mrb[84].mxu0  ;;  %5983 = vmatprep.mubr.msk.bf16.mxu0 %vm1929_vm0, %v3069_v36  ;;  %v3527_v36 = vmul.f32 1.442695, %v3511_v4  ;;  %6563 = vpow2.f32 %v3529_v24  ;;  %v3518_v4 = vsub.f32 %v8397_v31, %v8525_v39 }
 0x6e2   : > { %v2990_v61 = vpop.f32.mrb[85].mxu0  ;;  %5984 = vmatmul.mubr.msk.bf16.vlgmr.msra.gmra.mrb[64].mxu0 %vm1929_vm0, %v3070_v42  ;;  %v3043_v28 = vmul.f32 %v6542_v44, %v5969_v13 }
 0x6e3   : > { %6032 = vmatpush3.bf16.msra.mxu0 %v8506_v10  ;;  %v5970_v55 = vpop.f32.mrb[86].mxu0  ;;  %v3041_v32 = vmul.f32 %v6540_v35, %v2990_v61  ;;  %v6550_v61 = vpop.eup %6549  ;;  %v9306_v35 = vld [vmem:[#allocation58_spill] sm:$0xff]  ;;  %6565 = vpow2.f32 %v3527_v36 }
 0x6e4   : > { %v3044_v22 = vmul.f32 %v6544_v63, %v5970_v55  ;;  %6033 = vmatprep.subr.bf16.mxu0 %v8529_v26  ;;  %v2993_v17 = vpop.f32.mrb[87].mxu0  ;;  %v3514_v56 = vsub.f32 %v9306_v35, %v8502_v51  ;;  %v6552_v13 = vpop.eup %6551  ;;  %v3515_v63 = vsub.f32 %v8411_v46, %v8541_v48  ;;  %v3531_v48 = vmul.f32 1.442695, %v3513_v50 }
 0x6e5   : > { %v3042_v54 = vmul.f32 %v6546_v2, %v2993_v17  ;;  %v6554_v27 = vpop.eup %6553 }
 0x6e6   : > { %v3072_v33 = vpack.c.bf16 %v3044_v22, %v3043_v28  ;;  %v3535_v1 = vmul.f32 1.442695, %v3515_v63  ;;  %v6556_v46 = vpop.eup %6555 }
 0x6e7   : > { %v3071_v10 = vpack.c.bf16 %v3042_v54, %v3041_v32  ;;  %6034 = vmatpush3.bf16.msra.mxu0 %v8529_v26  ;;  %v3516_v26 = vsub.f32 %v8416_v41, %v8527_v16  ;;  %v3533_v41 = vmul.f32 1.442695, %v3514_v56  ;;  %v6558_v54 = vpop.eup %6557  ;;  %v3541_v56 = vmul.f32 1.442695, %v3518_v4 }
 0x6e8   : > { %6035 = vmatprep.subr.bf16.mxu0 %v8533_v40  ;;  %v6560_v9 = vpop.eup %6559 }
 0x6e9   : > { %v5973_v42 = vpop.f32.mrb[88].mxu0  ;;  %5987 = vmatprep.mubr.msk.bf16.mxu0 %vm1929_vm0, %v3071_v10  ;;  %6567 = vpow2.f32 %v3533_v41 }
 0x6ea   : > { %v3006_v49 = vpop.f32.mrb[89].mxu0  ;;  %5988 = vmatmul.mubr.msk.bf16.gmra.mrb[68].mxu0 %vm1929_vm0, %v3072_v33  ;;  %v3047_v55 = vmul.f32 %v6552_v13, %v5973_v42  ;;  %v6562_v33 = vpop.eup %6561  ;;  %v3517_v42 = vsub.f32 %v8375_v59, %v8523_v3  ;;  %v3545_v13 = vmul.f32 1.442695, %v3520_v21 }
 0x6eb   : > { %6036 = vmatpush3.bf16.msra.mxu0 %v8533_v40  ;;  %v5974_v44 = vpop.f32.mrb[90].mxu0  ;;  %v3045_v28 = vmul.f32 %v6554_v27, %v3006_v49  ;;  %v3537_v40 = vmul.f32 1.442695, %v3516_v26  ;;  %v8583_v36 = vpop.eup %6563  ;;  %v3524_v27 = vsub.f32 %v8464_v29, %v8547_v15 }
 0x6ec   : > { %v3048_v2 = vmul.f32 %v6548_v8, %v5974_v44  ;;  %6037 = vmatprep.subr.bf16.mxu0 %v8519_v7  ;;  %v3009_v51 = vpop.f32.mrb[91].mxu0  ;;  %v3539_v26 = vmul.f32 1.442695, %v3517_v42 }
 0x6ed   : > { %v3046_v22 = vmul.f32 %v6550_v61, %v3009_v51  ;;  %6569 = vpow2.f32 %v3537_v40  ;;  %v3508_v61 = vpop.xlane.xlu0 %3507  ;;  %v8588_v49 = vpop.eup %6565 }
 0x6ee   : > { %v3074_v16 = vpack.c.bf16 %v3048_v2, %v3047_v55  ;;  %6571 = vpow2.f32 %v3535_v1  ;;  %v3607_v59 = vpack.c.bf16 %v8583_v36, %v8588_v49  ;;  %v3553_v2 = vmul.f32 1.442695, %v3524_v27 }
 0x6ef   : > { %v3073_v17 = vpack.c.bf16 %v3046_v22, %v3045_v28  ;;  %6038 = vmatpush3.bf16.msra.mxu0 %v8519_v7  ;;  %6573 = vpow2.f32 %v3531_v48  ;;  %v3510_v51 = vpop.xlane.xlu1 %3509  ;;  %v3525_v50 = vsub.f32 %v8492_v19, %v3508_v61 }
 0x6f0   : > { %6039 = vmatprep.subr.bf16.mxu0 %v8537_v30  ;;  %6575 = vpow2.f32 %v3541_v56 }
 0x6f1   : > { %v5977_v32 = vpop.f32.mrb[92].mxu0  ;;  %5991 = vmatprep.mubr.msk.bf16.mxu0 %vm1929_vm0, %v3073_v17  ;;  %6577 = vpow2.f32 %v3545_v13  ;;  %v3555_v17 = vmul.f32 1.442695, %v3525_v50 }
 0x6f2   : > { %v3022_v34 = vpop.f32.mrb[93].mxu0  ;;  %5992 = vmatmul.mubr.msk.bf16.gmra.mrb[72].mxu0 %vm1929_vm0, %v3074_v16  ;;  %v3051_v10 = vmul.f32 %v6560_v9, %v5977_v32  ;;  %6579 = vpow2.f32 %v3539_v26 }
 0x6f3   : > { %6040 = vmatpush3.bf16.msra.mxu0 %v8537_v30  ;;  %v5978_v7 = vpop.f32.mrb[94].mxu0  ;;  %v3049_v31 = vmul.f32 %v6562_v33, %v3022_v34  ;;  %v3519_v30 = vsub.f32 %v8433_v0, %v8543_v47  ;;  %v3522_v0 = vsub.f32 %v8444_v58, %v8545_v53  ;;  %v3638_v47 = vpop.permute.xlu0 %3637  ;;  %v3521_v58 = vsub.f32 %v8428_v6, %v8531_v62 }
 0x6f4   : > { %v3052_v24 = vmul.f32 %v6556_v46, %v5978_v7  ;;  %6041 = vmatprep.subr.bf16.mxu0 %v8521_v45  ;;  %v3025_v8 = vpop.f32.mrb[95].mxu0  ;;  %v8598_v44 = vpop.eup %6567  ;;  %v3526_v6 = vsub.f32 %v8516_v57, %v3510_v51 }
 0x6f5   : > { %v3050_v39 = vmul.f32 %v6558_v54, %v3025_v8  ;;  %v3543_v3 = vmul.f32 1.442695, %v3519_v30  ;;  %v3547_v15 = vmul.f32 1.442695, %v3521_v58 }
 0x6f6   : > { %v3076_v35 = vpack.c.bf16 %v3052_v24, %v3051_v10  ;;  %v3557_v41 = vmul.f32 1.442695, %v3526_v6  ;;  %v6431_v10 = vld [vmem:[#allocation12 + $0x20] sm:$0xff]  }
 0x6f7   : > { %v3075_v14 = vpack.c.bf16 %v3050_v39, %v3049_v31  ;;  %6042 = vmatpush3.bf16.msra.mxu0 %v8521_v45  ;;  %v3523_v45 = vsub.f32 %v8459_v37, %v8539_v25  ;;  %v8602_v63 = vpop.eup %6569  ;;  %6581 = vpow2.f32 %v3543_v3  ;;  %v3549_v37 = vmul.f32 1.442695, %v3522_v0 }
 0x6f8   : > { %6043 = vmatprep.subr.bf16.mxu0 %v3636_v60  ;;  %v8606_v53 = vpop.eup %6571 }
 0x6f9   : > { %5995 = vmatprep.mubr.msk.bf16.mxu0 %vm1929_vm0, %v3075_v14  ;;  %v8608_v25 = vpop.eup %6573  ;;  %v3551_v55 = vmul.f32 1.442695, %v3523_v45  ;;  %v3609_v18 = vpack.c.bf16 %v8602_v63, %v8606_v53  ;;  %6583 = vpow2.f32 %v3549_v37 }
 0x6fa   : > { %5996 = vmatmul.mubr.msk.bf16.gmra.mrb[76].mxu0 %vm1929_vm0, %v3076_v35  ;;  %v3608_v29 = vpack.c.bf16 %v8598_v44, %v8608_v25  ;;  %v8615_v62 = vpop.eup %6575 }
 0x6fb   : > { %6044 = vmatpush3.bf16.msra.mxu0 %v3636_v60  ;;  %6047 = vmatprep.mubr.bf16.mxu0 %v3607_v59  ;;  %6585 = vpow2.f32 %v3551_v55  ;;  %v8618_v28 = vpop.eup %6577  ;;  %v6432_v59 = vld [vmem:[#allocation12 + $0x28] sm:$0xff]  }
 0x6fc   : > { %6045 = vmatprep.subr.bf16.mxu0 %v3638_v47  ;;  %6587 = vpow2.f32 %v3553_v2  ;;  %v6580_v22 = vpop.eup %6579 }
 0x6fd   : > { %6589 = vpow2.f32 %v3547_v15  ;;  %v3610_v40 = vpack.c.bf16 %v8615_v62, %v6580_v22 }
 0x6fe   : > { %6591 = vpow2.f32 %v3557_v41 }
 0x6ff   : > { %6046 = vmatpush3.bf16.msra.mxu0 %v3638_v47  ;;  %6593 = vpow2.f32 %v3555_v17 }
 0x700   : > { %6063 = vmatprep.subr.bf16.mxu0 %v6431_v10 }
 0x701   : > { %v6582_v16 = vpop.eup %6581 }
 0x702   : > { %6048 = vmatmul.mubr.bf16.vlgmr.msra.gmra.mrb[96].mxu0 %v3608_v29  ;;  %v3611_v1 = vpack.c.bf16 %v8618_v28, %v6582_v16 }
 0x703   : > { %6051 = vmatprep.mubr.bf16.mxu0 %v3609_v18  ;;  %v6584_v57 = vpop.eup %6583  ;;  %6064 = vmatpush3.bf16.msra.mxu0 %v6431_v10  ;;  %v9308_v10 = vld [vmem:[#allocation41_spill] sm:$0xff] }
 0x704   : > { %6065 = vmatprep.subr.bf16.mxu0 %v6432_v59 }
 0x705   : > { %v6586_v48 = vpop.eup %6585 }
 0x706   : > { %v6588_v54 = vpop.eup %6587 }
 0x707   : > { %v6590_v9 = vpop.eup %6589  ;;  %v3613_v21 = vpack.c.bf16 %v6588_v54, %v6586_v48  ;;  %6066 = vmatpush3.bf16.msra.mxu0 %v6432_v59 }
 0x708   : > { %v3612_v33 = vpack.c.bf16 %v6584_v57, %v6590_v9  ;;  %v6592_v42 = vpop.eup %6591 }
 0x709   : > { %v6594_v39 = vpop.eup %6593 }
 0x70a   : > { %6052 = vmatmul.mubr.bf16.gmra.mrb[100].mxu0 %v3610_v40  ;;  %v3614_v56 = vpack.c.bf16 %v6592_v42, %v6594_v39 }
 0x70b   : > { %6055 = vmatprep.mubr.bf16.mxu0 %v3611_v1 }
 0x70c   : > { %v6101_v46 = vpop.f32.mrb[96].mxu1 }
 0x70d   : > { %v4107_v32 = vpop.f32.mrb[97].mxu1  ;;  %v8634_v24 = vsel %vm2080_vm2, %v6101_v46, -1e+30 }
 0x70e   : > { %v8624_v19 = vsel %vm2080_vm2, %v4107_v32, -1e+30  ;;  %v6102_v34 = vpop.f32.mrb[98].mxu1 }
 0x70f   : > { %4186 = vmax.xlane.f32.xlu0 %v8624_v19  ;;  %v4110_v4 = vpop.f32.mrb[99].mxu1  ;;  %v8639_v35 = vsel %vm2080_vm2, %v6102_v34, -1e+30 }
 0x710   : > { %v8629_v7 = vsel %vm2080_vm2, %v4110_v4, -1e+30 }
 0x711   : > { %4188 = vmax.xlane.f32.xlu1 %v8629_v7 }
 0x712   : > { %6056 = vmatmul.mubr.bf16.gmra.mrb[104].mxu0 %v3612_v33 }
 0x713   : > { %6059 = vmatprep.mubr.bf16.mxu0 %v3613_v21 }
 0x714   : > { %v6105_v8 = vpop.f32.mrb[100].mxu1 }
 0x715   : > { %4190 = vmax.xlane.f32.xlu1 %v8634_v24  ;;  %v4123_v61 = vpop.f32.mrb[101].mxu1 }
 0x716   : > { %v6106_v31 = vpop.f32.mrb[102].mxu1  ;;  %v8654_v27 = vsel %vm2080_vm2, %v4123_v61, -1e+30 }
 0x717   : > { %v4126_v30 = vpop.f32.mrb[103].mxu1 }
 0x719   : > { %4192 = vmax.xlane.f32.xlu1 %v8639_v35 }
 0x71a   : > { %6060 = vmatmul.mubr.bf16.gmra.mrb[108].mxu0 %v3614_v56 }
 0x71c   : > { %v8642_v60 = vpop.f32.mrb[104].mxu1 }
 0x71d   : > { %v4139_v14 = vpop.f32.mrb[105].mxu1 }
 0x71e   : > { %v8644_v13 = vpop.f32.mrb[106].mxu1 }
 0x71f   : > { %v4142_v26 = vpop.f32.mrb[107].mxu1 }
 0x720   : > { %v8716_v18 = vsel %vm2080_vm2, %v4142_v26, -1e+30 }
 0x725   : > { %4330 = vrot.lane.b32.xlu0 %v7783_v5, %s6997_s22  ;;  %v8660_v5 = vsel %vm2080_vm2, %v4126_v30, -1e+30 }
 0x72a   : > { %4332 = vrot.lane.b32.xlu1 %v7776_v52, %s6997_s22  ;;  %v8674_v52 = vsel %vm2080_vm2, %v6105_v8, -1e+30 }
 0x72d   : > { %v8650_v3 = vpop.f32.mrb[108].mxu1 }
 0x72e   : > { %v4155_v0 = vpop.f32.mrb[109].mxu1 }
 0x72f   : > { %v6114_v45 = vpop.f32.mrb[110].mxu1  ;;  %v8733_v6 = vsel %vm2080_vm2, %v4155_v0, -1e+30 }
 0x730   : > { %v4158_v47 = vpop.f32.mrb[111].mxu1  ;;  %v8743_v50 = vsel %vm2080_vm2, %v6114_v45, -1e+30 }
 0x744   : > { %4194 = vmax.xlane.f32.xlu0 %v8654_v27 }
 0x748   : > { %3559 = vadd.xlane.f32.xlu0 %v8588_v49  ;;  %v8686_v49 = vsel %vm2080_vm2, %v4139_v14, -1e+30 }
 0x74c   : > { %3571 = vadd.xlane.f32.xlu0 %v6580_v22 }
 0x74e   : > { %4196 = vmax.xlane.f32.xlu1 %v8660_v5 }
 0x750   : > { %3579 = vadd.xlane.f32.xlu0 %v6590_v9 }
 0x752   : > { %3563 = vadd.xlane.f32.xlu1 %v8608_v25 }
 0x754   : > { %3575 = vadd.xlane.f32.xlu0 %v6582_v16 }
 0x756   : > { %3565 = vadd.xlane.f32.xlu1 %v8598_v44 }
 0x758   : > { %3587 = vadd.xlane.f32.xlu0 %v6594_v39 }
 0x75a   : > { %3561 = vadd.xlane.f32.xlu1 %v8583_v36  ;;  %v8679_v36 = vsel %vm2080_vm2, %v6106_v31, -1e+30 }
 0x75c   : > { %3583 = vadd.xlane.f32.xlu0 %v6586_v48 }
 0x75e   : > { %3567 = vadd.xlane.f32.xlu1 %v8606_v53 }
 0x762   : > { %3573 = vadd.xlane.f32.xlu1 %v8615_v62  ;;  %v8738_v62 = vsel %vm2080_vm2, %v4158_v47, -1e+30 }
 0x766   : > { %3569 = vadd.xlane.f32.xlu1 %v8602_v63 }
 0x76a   : > { %3581 = vadd.xlane.f32.xlu1 %v6584_v57 }
 0x76e   : > { %3577 = vadd.xlane.f32.xlu1 %v8618_v28 }
 0x772   : > { %3589 = vadd.xlane.f32.xlu1 %v6592_v42  ;;  %4334 = vrot.lane.b32.xlu0 %v7793_v43, %s6997_s22 }
 0x776   : > { %3585 = vadd.xlane.f32.xlu1 %v6588_v54 }
 0x77a   : > { %4198 = vmax.xlane.f32.xlu1 %v8674_v52 }
 0x77e   : > { %4200 = vmax.xlane.f32.xlu1 %v8679_v36 }
 0x78f   : > { %4336 = vrot.lane.b32.xlu1 %v7789_v12, %s6997_s22 }
 0x791   : > { %4202 = vmax.xlane.f32.xlu0 %v8686_v49 }
 0x79c   : > { %v4187_v43 = vpop.xlane.xlu0 %4186 }
 0x79d   : > { %v4218_v44 = vsub.f32 %v8624_v19, %v4187_v43 }
 0x79e   : > { %v4189_v63 = vpop.xlane.xlu1 %4188 }
 0x79f   : > { %v4234_v58 = vmul.f32 1.442695, %v4218_v44  ;;  %v4219_v53 = vsub.f32 %v8629_v7, %v4189_v63 }
 0x7a0   : > { %v8691_v37 = vpop.permute.xlu0 %4330 }
 0x7a1   : > { %v4236_v25 = vmul.f32 1.442695, %v4219_v53  ;;  %6115 = vmatprep.subr.bf16.mxu0 %v8691_v37  ;;  %6167 = vmatprep.subr.bf16.mxu1 %v8691_v37  ;;  %6595 = vpow2.f32 %v4234_v58 }
 0x7a2   : > { %v8695_v12 = vpop.xlane.xlu1 %4190  ;;  %6175 = vmatpush3.bf16.msra.mxu1 %v8691_v37 }
 0x7a3   : > { %6597 = vpow2.f32 %v4236_v25 }
 0x7a6   : > { %v8698_v55 = vpop.xlane.xlu1 %4192 }
 0x7a7   : > { %4338 = vrot.lane.b32.xlu0 %v7827_v11, %s6997_s22  ;;  %v8722_v11 = vsel %vm2080_vm2, %v8642_v60, -1e+30  ;;  %v4220_v60 = vsub.f32 %v8634_v24, %v8695_v12  ;;  %v4221_v47 = vsub.f32 %v8639_v35, %v8698_v55 }
 0x7a9   : > { %v4238_v45 = vmul.f32 1.442695, %v4220_v60  ;;  %v4240_v35 = vmul.f32 1.442695, %v4221_v47 }
 0x7aa   : > { %v8702_v2 = vpop.permute.xlu1 %4332 }
 0x7ab   : > { %4340 = vrot.lane.b32.xlu0 %v9280_v23, %s6997_s22  ;;  %6168 = vmatprep.subr.bf16.mxu1 %v8702_v2  ;;  %v8707_v51 = vpop.eup %6595  ;;  %v8728_v23 = vsel %vm2080_vm2, %v8644_v13, -1e+30 }
 0x7ac   : > { %6176 = vmatpush3.bf16.msra.mxu1 %v8702_v2 }
 0x7ad   : > { %v8710_v29 = vpop.eup %6597 }
 0x7ae   : > { %v4314_v15 = vpack.c.bf16 %v8710_v29, %v8707_v51 }
 0x7b3   : > { %4204 = vmax.xlane.f32.xlu1 %v8716_v18 }
 0x7b7   : > { %4206 = vmax.xlane.f32.xlu1 %v8722_v11 }
 0x7bb   : > { %4208 = vmax.xlane.f32.xlu1 %v8728_v23 }
 0x7bf   : > { %4210 = vmax.xlane.f32.xlu1 %v8733_v6 }
 0x7ca   : > { %4212 = vmax.xlane.f32.xlu0 %v8738_v62 }
 0x7ce   : > { %4216 = vmax.xlane.f32.xlu0 %v8743_v50 }
 0x7d0   : > { %4342 = vrot.lane.b32.xlu1 %v9300_v38, %s6997_s22 }
 0x7d1   : > { %v4195_v28 = vpop.xlane.xlu0 %4194 }
 0x7d2   : > { %v4222_v40 = vsub.f32 %v8654_v27, %v4195_v28 }
 0x7d4   : > { %v4242_v46 = vmul.f32 1.442695, %v4222_v40 }
 0x7d5   : > { %v6049_v22 = vpop.f32.mrb[96].mxu0  ;;  %v3560_v41 = vpop.xlane.xlu0 %3559 }
 0x7d6   : > { %v3681_v16 = vpop.f32.mrb[97].mxu0  ;;  %6599 = vpow2.f32 %v4242_v46 }
 0x7d7   : > { %v6050_v17 = vpop.f32.mrb[98].mxu0 }
 0x7d8   : > { %v3684_v1 = vpop.f32.mrb[99].mxu0 }
 0x7d9   : > { %v3572_v57 = vpop.xlane.xlu0 %3571 }
 0x7db   : > { %v4197_v48 = vpop.xlane.xlu1 %4196 }
 0x7dc   : > { %v4223_v32 = vsub.f32 %v8660_v5, %v4197_v48 }
 0x7dd   : > { %v8750_v54 = vpop.f32.mrb[100].mxu0  ;;  %v3580_v19 = vpop.xlane.xlu0 %3579 }
 0x7de   : > { %v4244_v34 = vmul.f32 1.442695, %v4223_v32  ;;  %v8752_v9 = vpop.f32.mrb[101].mxu0 }
 0x7df   : > { %v8754_v38 = vpop.f32.mrb[102].mxu0  ;;  %v3564_v4 = vpop.xlane.xlu1 %3563 }
 0x7e0   : > { %6601 = vpow2.f32 %v4244_v34  ;;  %v8756_v7 = vpop.f32.mrb[103].mxu0  ;;  %v8770_v56 = vpop.eup %6599 }
 0x7e1   : > { %v3576_v33 = vpop.xlane.xlu0 %3575  ;;  %6603 = vrcp.f32 %v3564_v4 }
 0x7e3   : > { %v3566_v21 = vpop.xlane.xlu1 %3565 }
 0x7e4   : > { %6605 = vrcp.f32 %v3566_v21  ;;  %4344 = vrot.lane.b32.xlu0 %v9308_v10, %s6997_s22  ;;  %s4918_s22 = sshll.u32 %s7695_s28, 4  ;;  %s8900_s22 = int_to_ptr.vmem [resolvable:$true] %s4918_s22 }
 0x7e5   : > { %v8760_v8 = vpop.f32.mrb[104].mxu0  ;;  %v8762_v42 = vpop.xlane.xlu0 %3587  ;;  %6607 = vrcp.f32 %v3560_v41  ;;  %v8793_v41 = vsel %vm2080_vm2, %v8650_v3, -1e+30  ;;  %s6849_s25 = scalar_lea.vmem %s8900_s22, 1024 }
 0x7e6   : > { %v8764_v61 = vpop.f32.mrb[105].mxu0  ;;  %p6850_p5 = scmp.ne.s32.totalorder %s8900_s22, %s6849_s25 }
 0x7e7   : > { %v8766_v31 = vpop.f32.mrb[106].mxu0  ;;  %v3562_v39 = vpop.xlane.xlu1 %3561 }
 0x7e8   : > { %6609 = vrcp.f32 %v3562_v39  ;;  %v8768_v30 = vpop.f32.mrb[107].mxu0  ;;  %p6851_p7 = pnand %p6850_p5, %p7254_p3 }
 0x7e9   : > { %v8774_v14 = vpop.xlane.xlu0 %3583  ;;  %6611 = vrcp.f32 %v3572_v57 }
 0x7ea   : > { %v8776_v13 = vpop.eup %6601  ;;  %p6852_p12 = pneg %p6851_p7 }
 0x7eb   : > { %v3568_v26 = vpop.xlane.xlu1 %3567  ;;  %v4316_v59 = vpack.c.bf16 %v8776_v13, %v8770_v56  ;;  %v6604_v0 = vpop.eup %6603 }
 0x7ec   : > { %v3746_v24 = vmul.f32 %v6604_v0, %v6049_v22 }
 0x7ed   : > { %v8782_v27 = vpop.f32.mrb[108].mxu0  ;;  %v4335_v5 = vpop.permute.xlu0 %4334 }
 0x7ee   : > { %v6606_v43 = vpop.eup %6605  ;;  %v8784_v44 = vpop.f32.mrb[109].mxu0  ;;  %6169 = vmatprep.subr.bf16.mxu1 %v4335_v5 }
 0x7ef   : > { %v3747_v63 = vmul.f32 %v6606_v43, %v6050_v17  ;;  %v8786_v58 = vpop.f32.mrb[110].mxu0  ;;  %v3574_v53 = vpop.xlane.xlu1 %3573  ;;  %6177 = vmatpush3.bf16.msra.mxu1 %v4335_v5 }
 0x7f0   : > { %v6608_v25 = vpop.eup %6607  ;;  %6613 = vrcp.f32 %v3574_v53  ;;  %v8788_v12 = vpop.f32.mrb[111].mxu0 }
 0x7f1   : > { %6615 = vpow2.f32 %v4238_v45  ;;  %v3777_v55 = vpack.c.bf16 %v3747_v63, %v3746_v24  ;;  %v3744_v22 = vmul.f32 %v6608_v25, %v3681_v16 }
 0x7f2   : > { %v6610_v28 = vpop.eup %6609  ;;  %6617 = vrcp.f32 %v3568_v26 }
 0x7f3   : > { %v3570_v40 = vpop.xlane.xlu1 %3569  ;;  %v3745_v17 = vmul.f32 %v6610_v28, %v3684_v1  ;;  %v6612_v48 = vpop.eup %6611 }
 0x7f4   : > { %6619 = vrcp.f32 %v3570_v40  ;;  %4214 = vmax.xlane.f32.xlu1 %v8793_v41  ;;  %v3750_v16 = vmul.f32 %v6612_v48, %v8750_v54 }
 0x7f5   : > { %6621 = vpow2.f32 %v4240_v35  ;;  %v3776_v57 = vpack.c.bf16 %v3745_v17, %v3744_v22 }
 0x7f6   : > { %6623 = vrcp.f32 %v3580_v19 }
 0x7f7   : > { %v3582_v46 = vpop.xlane.xlu1 %3581  ;;  %6067 = vmatprep.mubr.msk.bf16.mxu0 %vm1929_vm0, %v3776_v57 }
 0x7f8   : > { %6625 = vrcp.f32 %v3582_v46  ;;  %4266 = vadd.xlane.f32.xlu1 %v8707_v51  ;;  %6068 = vmatmul.mubr.msk.bf16.vlgmr.msra.gmra.mrb[64].mxu0 %vm1929_vm0, %v3777_v55 }
 0x7f9   : > { %6116 = vmatpush3.bf16.msra.mxu0 %v8691_v37  ;;  %6627 = vrcp.f32 %v3576_v33 }
 0x7fa   : > { %v6614_v20 = vpop.eup %6613  ;;  %6117 = vmatprep.subr.bf16.mxu0 %v8702_v2 }
 0x7fb   : > { %v8801_v3 = vpop.eup %6615  ;;  %v3578_v1 = vpop.xlane.xlu1 %3577  ;;  %v3751_v32 = vmul.f32 %v6614_v20, %v8754_v38 }
 0x7fc   : > { %v6618_v19 = vpop.eup %6617  ;;  %6629 = vrcp.f32 %v3578_v1  ;;  %4270 = vadd.xlane.f32.xlu1 %v8801_v3 }
 0x7fd   : > { %6118 = vmatpush3.bf16.msra.mxu0 %v8702_v2  ;;  %v3779_v34 = vpack.c.bf16 %v3751_v32, %v3750_v16  ;;  %6631 = vrcp.f32 %v8762_v42  ;;  %v3748_v21 = vmul.f32 %v6618_v19, %v8752_v9 }
 0x7fe   : > { %v6620_v4 = vpop.eup %6619  ;;  %6119 = vmatprep.subr.bf16.mxu0 %v4335_v5 }
 0x7ff   : > { %v8808_v37 = vpop.eup %6621  ;;  %v3590_v33 = vpop.xlane.xlu1 %3589  ;;  %v3749_v54 = vmul.f32 %v6620_v4, %v8756_v7 }
 0x800   : > { %v6624_v10 = vpop.eup %6623  ;;  %6633 = vrcp.f32 %v3590_v33  ;;  %4272 = vadd.xlane.f32.xlu1 %v8808_v37 }
 0x801   : > { %6120 = vmatpush3.bf16.msra.mxu0 %v4335_v5  ;;  %v3778_v38 = vpack.c.bf16 %v3749_v54, %v3748_v21  ;;  %6635 = vrcp.f32 %v8774_v14  ;;  %v3754_v2 = vmul.f32 %v6624_v10, %v8760_v8 }
 0x802   : > { %v6626_v39 = vpop.eup %6625 }
 0x803   : > { %v3586_v42 = vpop.xlane.xlu1 %3585  ;;  %4268 = vadd.xlane.f32.xlu0 %v8710_v29  ;;  %6071 = vmatprep.mubr.msk.bf16.mxu0 %vm1929_vm0, %v3778_v38  ;;  %v3755_v9 = vmul.f32 %v6626_v39, %v8766_v31  ;;  %v6628_v60 = vpop.eup %6627 }
 0x804   : > { %6637 = vrcp.f32 %v3586_v42  ;;  %4274 = vadd.xlane.f32.xlu1 %v8770_v56  ;;  %6072 = vmatmul.mubr.msk.bf16.gmra.mrb[68].mxu0 %vm1929_vm0, %v3779_v34  ;;  %v3752_v0 = vmul.f32 %v6628_v60, %v8764_v61  ;;  %v642_v56 = vld [vmem:[%s8864_s3 + $0x8] sm:$0xff] }
 0x805   : > { %v3781_v7 = vpack.c.bf16 %v3755_v9, %v3754_v2 }
 0x806   : > { %v6630_v26 = vpop.eup %6629 }
 0x807   : > { %v4199_v14 = vpop.xlane.xlu1 %4198  ;;  %v3753_v8 = vmul.f32 %v6630_v26, %v8768_v30  ;;  %v6632_v45 = vpop.eup %6631 }
 0x808   : > { %v4224_v47 = vsub.f32 %v8674_v52, %v4199_v14  ;;  %4276 = vadd.xlane.f32.xlu1 %v8776_v13  ;;  %v3758_v24 = vmul.f32 %v6632_v45, %v8782_v27  ;;  %v643_v13 = vld [vmem:[%s8864_s3 + $0x10] sm:$0xff]  ;;  %v646_v45 = vld [vmem:[%s8864_s3 + $0x28] sm:$0xff] }
 0x809   : > { %v3780_v5 = vpack.c.bf16 %v3753_v8, %v3752_v0  ;;  %v645_v8 = vld [vmem:[%s8864_s3 + $0x20] sm:$0xff] }
 0x80a   : > { %v6634_v31 = vpop.eup %6633  ;;  %v4246_v43 = vmul.f32 1.442695, %v4224_v47  ;;  %v647_v47 = vld [vmem:[%s8864_s3 + $0x30] sm:$0xff] }
 0x80b   : > { %v4201_v63 = vpop.xlane.xlu1 %4200  ;;  %6075 = vmatprep.mubr.msk.bf16.mxu0 %vm1929_vm0, %v3780_v5  ;;  %v3759_v53 = vmul.f32 %v6634_v31, %v8786_v58  ;;  %v6636_v25 = vpop.eup %6635 }
 0x80c   : > { %6639 = vpow2.f32 %v4246_v43  ;;  %v4225_v61 = vsub.f32 %v8679_v36, %v4201_v63  ;;  %6076 = vmatmul.mubr.msk.bf16.gmra.mrb[72].mxu0 %vm1929_vm0, %v3781_v7  ;;  %v3756_v55 = vmul.f32 %v6636_v25, %v8784_v44  ;;  %v4315_v7 = vpack.c.bf16 %v8808_v37, %v8801_v3  ;;  %v644_v3 = vld [vmem:[%s8864_s3 + $0x18] sm:$0xff]  ;;  %v650_v43 = vld [vmem:[%s8864_s3 + $0x48] sm:$0xff]  ;;  %v641_v25 = vld [vmem:[%s8864_s3] sm:$0xff] }
 0x80d   : > { %v3783_v30 = vpack.c.bf16 %v3759_v53, %v3758_v24  ;;  %v652_v24 = vld [vmem:[%s8864_s3 + $0x58] sm:$0xff]  ;;  %v654_v63 = vld [vmem:[%s8864_s3 + $0x68] sm:$0xff] }
 0x80e   : > { %v6638_v52 = vpop.eup %6637  ;;  %v4248_v35 = vmul.f32 1.442695, %v4225_v61  ;;  %v656_v53 = vld [vmem:[%s8864_s3 + $0x78] sm:$0xff]  ;;  %v649_v61 = vld [vmem:[%s8864_s3 + $0x40] sm:$0xff] }
 0x80f   : > { %v4337_v28 = vpop.permute.xlu1 %4336  ;;  %v3757_v22 = vmul.f32 %v6638_v52, %v8788_v12  ;;  %v653_v52 = vld [vmem:[%s8864_s3 + $0x60] sm:$0xff] }
 0x810   : > { %6641 = vpow2.f32 %v4248_v35  ;;  %6121 = vmatprep.subr.bf16.mxu0 %v4337_v28  ;;  %6170 = vmatprep.subr.bf16.mxu1 %v4337_v28  ;;  %v655_v35 = vld [vmem:[%s8864_s3 + $0x70] sm:$0xff] }
 0x811   : > { %6122 = vmatpush3.bf16.msra.mxu0 %v4337_v28  ;;  %6178 = vmatpush3.bf16.msra.mxu1 %v4337_v28  ;;  %v3782_v27 = vpack.c.bf16 %v3757_v22, %v3756_v55  ;;  %v6433_v55 = vld [vmem:[#allocation12 + $0x30] sm:$0xff]   ;;  %v6434_v28 = vld [vmem:[#allocation12 + $0x38] sm:$0xff]  }
 0x813   : > { %6079 = vmatprep.mubr.msk.bf16.mxu0 %vm1929_vm0, %v3782_v27 }
 0x814   : > { %6080 = vmatmul.mubr.msk.bf16.gmra.mrb[76].mxu0 %vm1929_vm0, %v3783_v30  ;;  %v651_v30 = vld [vmem:[%s8864_s3 + $0x50] sm:$0xff] }
 0x815   : > { %6131 = vmatprep.mubr.bf16.mxu0 %v4314_v15 }
 0x816   : > { %v8836_v36 = vpop.eup %6639 }
 0x817   : > { %4278 = vadd.xlane.f32.xlu1 %v8836_v36 }
 0x81a   : > { %v8839_v44 = vpop.eup %6641 }
 0x81b   : > { %4280 = vadd.xlane.f32.xlu1 %v8839_v44  ;;  %v4317_v58 = vpack.c.bf16 %v8839_v44, %v8836_v36 }
 0x81e   : > { %v4203_v12 = vpop.xlane.xlu0 %4202 }
 0x81f   : > { %v4226_v40 = vsub.f32 %v8686_v49, %v4203_v12 }
 0x821   : > { %v4250_v17 = vmul.f32 1.442695, %v4226_v40 }
 0x822   : > { %v4339_v57 = vpop.permute.xlu0 %4338 }
 0x823   : > { %6643 = vpow2.f32 %v4250_v17  ;;  %6123 = vmatprep.subr.bf16.mxu0 %v4339_v57  ;;  %6171 = vmatprep.subr.bf16.mxu1 %v4339_v57 }
 0x824   : > { %6124 = vmatpush3.bf16.msra.mxu0 %v4339_v57  ;;  %6179 = vmatpush3.bf16.msra.mxu1 %v4339_v57 }
 0x826   : > { %v4341_v51 = vpop.permute.xlu0 %4340 }
 0x827   : > { %6125 = vmatprep.subr.bf16.mxu0 %v4341_v51  ;;  %6172 = vmatprep.subr.bf16.mxu1 %v4341_v51 }
 0x828   : > { %6126 = vmatpush3.bf16.msra.mxu0 %v4341_v51  ;;  %6180 = vmatpush3.bf16.msra.mxu1 %v4341_v51 }
 0x82d   : > { %v6644_v29 = vpop.eup %6643 }
 0x82e   : > { %4282 = vadd.xlane.f32.xlu1 %v6644_v29 }
 0x840   : > { %v4205_v15 = vpop.xlane.xlu1 %4204 }
 0x841   : > { %v4227_v46 = vsub.f32 %v8716_v18, %v4205_v15 }
 0x843   : > { %v4252_v48 = vmul.f32 1.442695, %v4227_v46 }
 0x844   : > { %v4207_v20 = vpop.xlane.xlu1 %4206 }
 0x845   : > { %6645 = vpow2.f32 %v4252_v48  ;;  %v4228_v49 = vsub.f32 %v8722_v11, %v4207_v20 }
 0x847   : > { %v4254_v16 = vmul.f32 1.442695, %v4228_v49 }
 0x848   : > { %v4209_v1 = vpop.xlane.xlu1 %4208 }
 0x849   : > { %6647 = vpow2.f32 %v4254_v16  ;;  %v4229_v32 = vsub.f32 %v8728_v23, %v4209_v1 }
 0x84b   : > { %v4256_v19 = vmul.f32 1.442695, %v4229_v32 }
 0x84c   : > { %v4211_v34 = vpop.xlane.xlu1 %4210 }
 0x84d   : > { %6649 = vpow2.f32 %v4256_v19  ;;  %v4230_v4 = vsub.f32 %v8733_v6, %v4211_v34 }
 0x84f   : > { %v6646_v33 = vpop.eup %6645  ;;  %v4258_v21 = vmul.f32 1.442695, %v4230_v4 }
 0x850   : > { %v4343_v54 = vpop.permute.xlu1 %4342  ;;  %4284 = vadd.xlane.f32.xlu1 %v6646_v33  ;;  %v4318_v18 = vpack.c.bf16 %v6646_v33, %v6644_v29 }
 0x851   : > { %6651 = vpow2.f32 %v4258_v21  ;;  %6127 = vmatprep.subr.bf16.mxu0 %v4343_v54  ;;  %6173 = vmatprep.subr.bf16.mxu1 %v4343_v54 }
 0x852   : > { %6128 = vmatpush3.bf16.msra.mxu0 %v4343_v54  ;;  %6181 = vmatpush3.bf16.msra.mxu1 %v4343_v54 }
 0x853   : > { %v6648_v11 = vpop.eup %6647  ;;  %6139 = vmatprep.mubr.bf16.mxu1 %v4318_v18 }
 0x854   : > { %4286 = vadd.xlane.f32.xlu0 %v6648_v11 }
 0x857   : > { %v6650_v10 = vpop.eup %6649  ;;  %v4213_v23 = vpop.xlane.xlu0 %4212 }
 0x858   : > { %v4231_v38 = vsub.f32 %v8738_v62, %v4213_v23  ;;  %4288 = vadd.xlane.f32.xlu1 %v6650_v10  ;;  %v4319_v62 = vpack.c.bf16 %v6650_v10, %v6648_v11 }
 0x85a   : > { %v4260_v39 = vmul.f32 1.442695, %v4231_v38 }
 0x85b   : > { %v6652_v6 = vpop.eup %6651  ;;  %v4217_v2 = vpop.xlane.xlu0 %4216 }
 0x85c   : > { %6653 = vpow2.f32 %v4260_v39  ;;  %v4233_v42 = vsub.f32 %v8743_v50, %v4217_v2  ;;  %4290 = vadd.xlane.f32.xlu0 %v6652_v6 }
 0x85e   : > { %v4264_v9 = vmul.f32 1.442695, %v4233_v42 }
 0x85f   : > { %v4345_v60 = vpop.permute.xlu0 %4344 }
 0x860   : > { %6655 = vpow2.f32 %v4264_v9  ;;  %6129 = vmatprep.subr.bf16.mxu0 %v4345_v60  ;;  %6174 = vmatprep.subr.bf16.mxu1 %v4345_v60 }
 0x861   : > { %6130 = vmatpush3.bf16.msra.mxu0 %v4345_v60  ;;  %6182 = vmatpush3.bf16.msra.mxu1 %v4345_v60 }
 0x862   : > { %6147 = vmatprep.subr.bf16.mxu0 %v6433_v55 }
 0x864   : > { %6132 = vmatmul.mubr.bf16.vlgmr.msra.gmra.mrb[112].mxu0 %v4315_v7  ;;  %6140 = vmatmul.mubr.bf16.vlgmr.msra.gmra.mrb[112].mxu1 %v4319_v62 }
 0x865   : > { %6135 = vmatprep.mubr.bf16.mxu0 %v4316_v59  ;;  %6148 = vmatpush3.bf16.msra.mxu0 %v6433_v55 }
 0x866   : > { %v6654_v50 = vpop.eup %6653  ;;  %6149 = vmatprep.subr.bf16.mxu0 %v6434_v28 }
 0x867   : > { %4292 = vadd.xlane.f32.xlu1 %v6654_v50  ;;  %v4320_v26 = vpack.c.bf16 %v6654_v50, %v6652_v6 }
 0x869   : > { %6143 = vmatprep.mubr.bf16.mxu1 %v4320_v26  ;;  %6150 = vmatpush3.bf16.msra.mxu0 %v6434_v28 }
 0x86a   : > { %v6656_v0 = vpop.eup %6655 }
 0x86b   : > { %4296 = vadd.xlane.f32.xlu1 %v6656_v0 }
 0x86c   : > { %6136 = vmatmul.mubr.bf16.gmra.mrb[116].mxu0 %v4317_v58 }
 0x87c   : > { %1305 = vperm.xlu1 %6370, %v642_v56  }
 0x880   : > { %1310 = vperm.xlu1 %6370, %v643_v13  }
 0x881   : > { %v4215_v59 = vpop.xlane.xlu1 %4214 }
 0x882   : > { %v4232_v37 = vsub.f32 %v8793_v41, %v4215_v59  ;;  %v648_v41 = vld [vmem:[%s8864_s3 + $0x38] sm:$0xff]  ;;  %s6853_s3 = sshll.u32 %s6998_s12, 4  ;;  %s6854_s3 = int_to_ptr.vmem [resolvable:$false] %s6853_s3 }
 0x883   : > { %s6855_s24 = scalar_lea.vmem %s6854_s3, 2048  ;;  %p6856_p1 = scmp.lt.s32.totalorder %s8900_s22, %s6854_s3 }
 0x884   : > { %v4262_v14 = vmul.f32 1.442695, %v4232_v37  ;;  %1315 = vperm.xlu1 %6370, %v644_v3   ;;  %p6857_p2 = scmp.lt.s32.totalorder %s6855_s24, %s6849_s25 }
 0x885   : > { %v4267_v22 = vpop.xlane.xlu1 %4266 }
 0x886   : > { %6657 = vpow2.f32 %v4262_v14  ;;  %p6858_p13 = por %p6857_p2, %p6856_p1 }
 0x887   : > { %6659 = vrcp.f32 %v4267_v22 }
 0x888   : > { %1320 = vperm.xlu1 %6370, %v645_v8   ;;  %p6859_p9 = pnand %p6858_p13, %p6852_p12 }
 0x889   : > { %v4271_v27 = vpop.xlane.xlu1 %4270 }
 0x88a   : > { %6661 = vrcp.f32 %v4271_v27 }
 0x88c   : > { %1325 = vperm.xlu1 %6370, %v646_v45  }
 0x88d   : > { %v4273_v36 = vpop.xlane.xlu1 %4272 }
 0x88e   : > { %6663 = vrcp.f32 %v4273_v36 }
 0x890   : > { %v6658_v5 = vpop.eup %6657  ;;  %1330 = vperm.xlu1 %6370, %v647_v47   ;;  %v4269_v57 = vpop.xlane.xlu0 %4268 }
 0x891   : > { %4294 = vadd.xlane.f32.xlu0 %v6658_v5  ;;  %v4321_v31 = vpack.c.bf16 %v6656_v0, %v6658_v5  ;;  %v4275_v44 = vpop.xlane.xlu1 %4274  ;;  %6665 = vrcp.f32 %v4269_v57  ;;  %v6660_v46 = vpop.eup %6659 }
 0x893   : > { %6144 = vmatmul.mubr.bf16.gmra.mrb[116].mxu1 %v4321_v31 }
 0x894   : > { %1335 = vperm.xlu1 %6370, %v648_v41   ;;  %v6662_v48 = vpop.eup %6661 }
 0x895   : > { %v4277_v58 = vpop.xlane.xlu1 %4276 }
 0x898   : > { %1345 = vperm.xlu1 %6370, %v650_v43   ;;  %v6664_v20 = vpop.eup %6663 }
 0x89b   : > { %v6666_v49 = vpop.eup %6665 }
 0x89c   : > { %1355 = vperm.xlu1 %6370, %v652_v24  }
 0x8a0   : > { %1365 = vperm.xlu1 %6370, %v654_v63  }
 0x8a4   : > { %1375 = vperm.xlu1 %6370, %v656_v53   ;;  %v4279_v12 = vpop.xlane.xlu1 %4278 }
 0x8a7   : > { %1300 = vperm.xlu0 %6369, %v641_v25  }
 0x8a8   : > { %v4281_v40 = vpop.xlane.xlu1 %4280 }
 0x8ab   : > { %1340 = vperm.xlu0 %6369, %v649_v61  }
 0x8af   : > { %1350 = vperm.xlu0 %6369, %v651_v30  }
 0x8b3   : > { %1360 = vperm.xlu0 %6369, %v653_v52  }
 0x8b7   : > { %1370 = vperm.xlu0 %6369, %v655_v35  }
 0x8bb   : > { %v4283_v17 = vpop.xlane.xlu1 %4282 }
 0x8bc   : > { %6667 = vrcp.f32 %v4283_v17 }
 0x8c6   : > { %v6668_v16 = vpop.eup %6667 }
 0x8dd   : > { %v4285_v51 = vpop.xlane.xlu1 %4284 }
 0x8e1   : > { %v4287_v29 = vpop.xlane.xlu0 %4286 }
 0x8e2   : > { %6669 = vrcp.f32 %v4287_v29 }
 0x8e5   : > { %v4289_v15 = vpop.xlane.xlu1 %4288 }
 0x8e6   : > { %6671 = vrcp.f32 %v4289_v15 }
 0x8e7   : > { %6673 = vrcp.f32 %v4285_v51 }
 0x8e8   : > { %6675 = vrcp.f32 %v4275_v44 }
 0x8e9   : > { %6677 = vrcp.f32 %v4279_v12  ;;  %v4291_v63 = vpop.xlane.xlu0 %4290 }
 0x8ea   : > { %6679 = vrcp.f32 %v4281_v40 }
 0x8eb   : > { %6681 = vrcp.f32 %v4277_v58 }
 0x8ec   : > { %v6670_v19 = vpop.eup %6669  ;;  %6683 = vrcp.f32 %v4291_v63 }
 0x8f0   : > { %v6672_v33 = vpop.eup %6671 }
 0x8f1   : > { %v6674_v18 = vpop.eup %6673 }
 0x8f2   : > { %v6676_v0 = vpop.eup %6675 }
 0x8f3   : > { %v6678_v13 = vpop.eup %6677 }
 0x8f4   : > { %v6680_v3 = vpop.eup %6679  ;;  %v4293_v24 = vpop.xlane.xlu1 %4292 }
 0x8f5   : > { %v6682_v14 = vpop.eup %6681 }
 0x8f6   : > { %v6684_v61 = vpop.eup %6683 }
 0x8f8   : > { %v4297_v53 = vpop.xlane.xlu1 %4296 }
 0x8f9   : > { %6685 = vrcp.f32 %v4297_v53 }
 0x903   : > { %v6686_v52 = vpop.eup %6685 }
 0x91e   : > { %v4295_v25 = vpop.xlane.xlu0 %4294 }
 0x91f   : > { %6687 = vrcp.f32 %v4295_v25 }
 0x920   : > { %6689 = vrcp.f32 %v4293_v24 }
 0x929   : > { %v6688_v55 = vpop.eup %6687 }
 0x92a   : > { %v6690_v22 = vpop.eup %6689 }
 0x937   : > { %v6133_v1 = vpop.f32.mrb[112].mxu0  ;;  %v6141_v32 = vpop.f32.mrb[112].mxu1 }
 0x938   : > { %v4388_v34 = vpop.f32.mrb[113].mxu0  ;;  %v4420_v4 = vpop.f32.mrb[113].mxu1  ;;  %v4453_v11 = vmul.f32 %v6662_v48, %v6133_v1  ;;  %v4461_v10 = vmul.f32 %v6670_v19, %v6141_v32 }
 0x939   : > { %v6134_v21 = vpop.f32.mrb[114].mxu0  ;;  %v6142_v54 = vpop.f32.mrb[114].mxu1  ;;  %v4451_v2 = vmul.f32 %v6660_v46, %v4388_v34  ;;  %v4459_v42 = vmul.f32 %v6668_v16, %v4420_v4 }
 0x93a   : > { %v4454_v23 = vmul.f32 %v6664_v20, %v6134_v21  ;;  %v4462_v38 = vmul.f32 %v6672_v33, %v6142_v54  ;;  %v4391_v39 = vpop.f32.mrb[115].mxu0  ;;  %v4423_v6 = vpop.f32.mrb[115].mxu1 }
 0x93b   : > { %v4452_v9 = vmul.f32 %v6666_v49, %v4391_v39  ;;  %v4460_v60 = vmul.f32 %v6674_v18, %v4423_v6 }
 0x93c   : > { %v4484_v7 = vpack.c.bf16 %v4454_v23, %v4453_v11  ;;  %v4488_v62 = vpack.c.bf16 %v4462_v38, %v4461_v10 }
 0x93d   : > { %v4483_v50 = vpack.c.bf16 %v4452_v9, %v4451_v2  ;;  %v4487_v26 = vpack.c.bf16 %v4460_v60, %v4459_v42 }
 0x93f   : > { %v6137_v56 = vpop.f32.mrb[116].mxu0  ;;  %6151 = vmatprep.mubr.msk.bf16.mxu0 %vm1929_vm0, %v4483_v50 }
 0x940   : > { %v4404_v59 = vpop.f32.mrb[117].mxu0  ;;  %6152 = vmatmul.mubr.msk.bf16.vlgmr.msra.gmra.mrb[64].mxu0 %vm1929_vm0, %v4484_v7  ;;  %v4457_v8 = vmul.f32 %v6678_v13, %v6137_v56 }
 0x941   : > { %v6138_v37 = vpop.f32.mrb[118].mxu0  ;;  %v4455_v5 = vmul.f32 %v6676_v0, %v4404_v59 }
 0x942   : > { %v4458_v45 = vmul.f32 %v6680_v3, %v6138_v37  ;;  %v4407_v47 = vpop.f32.mrb[119].mxu0 }
 0x943   : > { %v4456_v31 = vmul.f32 %v6682_v14, %v4407_v47 }
 0x944   : > { %v4486_v41 = vpack.c.bf16 %v4458_v45, %v4457_v8 }
 0x945   : > { %v4485_v43 = vpack.c.bf16 %v4456_v31, %v4455_v5 }
 0x947   : > { %6155 = vmatprep.mubr.msk.bf16.mxu0 %vm1929_vm0, %v4485_v43 }
 0x948   : > { %6156 = vmatmul.mubr.msk.bf16.gmra.mrb[68].mxu0 %vm1929_vm0, %v4486_v41 }
 0x949   : > { %6159 = vmatprep.mubr.msk.bf16.mxu0 %vm1929_vm0, %v4487_v26 }
 0x950   : > { %6160 = vmatmul.mubr.msk.bf16.gmra.mrb[72].mxu0 %vm1929_vm0, %v4488_v62 }
 0x966   : > { %v6145_v30 = vpop.f32.mrb[116].mxu1 }
 0x967   : > { %v4436_v35 = vpop.f32.mrb[117].mxu1  ;;  %v4465_v27 = vmul.f32 %v6688_v55, %v6145_v30 }
 0x968   : > { %v6146_v28 = vpop.f32.mrb[118].mxu1  ;;  %v4463_v58 = vmul.f32 %v6684_v61, %v4436_v35 }
 0x969   : > { %v4466_v36 = vmul.f32 %v6686_v52, %v6146_v28  ;;  %v4439_v44 = vpop.f32.mrb[119].mxu1 }
 0x96a   : > { %v4464_v12 = vmul.f32 %v6690_v22, %v4439_v44 }
 0x96b   : > { %v4490_v40 = vpack.c.bf16 %v4466_v36, %v4465_v27 }
 0x96c   : > { %v4489_v17 = vpack.c.bf16 %v4464_v12, %v4463_v58 }
 0x96e   : > { %6163 = vmatprep.mubr.msk.bf16.mxu0 %vm1929_vm0, %v4489_v17 }
 0x96f   : > { %6164 = vmatmul.mubr.msk.bf16.gmra.mrb[76].mxu0 %vm1929_vm0, %v4490_v40 }
 0x970   : > { %6862 = shalt.err (!%p6859_p9)
}
 0x971   : > { %s6863_s28 = scalar_lea.hbm %s8897_s11, 1024  ;;  %s6867_s12 = scalar_lea.hbm %s9310_s14, 2048 }
 0x972   : > { %p6864_p0 = scmp.ne.s32.totalorder %s8897_s11, %s6863_s28  ;;  %p6868_p4 = scmp.lt.u32.totalorder %s8897_s11, %s9310_s14 }
 0x973   : > { %p6869_p8 = scmp.lt.u32.totalorder %s6867_s12, %s6863_s28  ;;  %p6871_p5 = scmp.lt.u32.totalorder %s6863_s28, %s8897_s11 }
 0x974   : > { %p6865_p11 = pnand %p6864_p0, %p7254_p3 }
 0x975   : > { %p6870_p10 = por %p6869_p8, %p6868_p4 }
 0x976   : > { %p6866_p6 = pneg %p6865_p11 }
 0x977   : > { %p6872_p7 = por %p6871_p5, %p6870_p10 }
 0x979   : > { %p6873_p12 = pnand %p6872_p7, %p6866_p6 }
 0x97b   : > { %6876 = shalt.err (!%p6873_p12)
}
 0x97c   : > { %s9210_s24 = smov 4   ;;  %s9311_s25 = smov 64   ;;  %v1306_v57 = vpop.permute.xlu1 %1305  ;;  %v1301_v15 = vpop.permute.xlu0 %1300  ;;  %v9312_v46 = vld [vmem:[#allocation26_spill] sm:$0xff]  ;;  %v9313_v20 = vld [vmem:[#allocation27_spill] sm:$0xff]  ;;  %v9314_v19 = vld [vmem:[#allocation24_spill] sm:$0xff] }
 0x97d   : > { %6281 = dma.vmem_to_hbm [thread:$0]  (%p7254_p3), %s8900_s22, 1024, %s8897_s11, %s4895_s20, %s9311_s25, %s9311_s25, %s9210_s24   ;;  %v1378_v48 = vmul.f32 %v1301_v15, %v9312_v46  ;;  %v1379_v49 = vmul.f32 %v1306_v57, %v9313_v20  ;;  %v9315_v54 = vld [vmem:[#allocation25_spill] sm:$0xff]  ;;  %v9316_v38 = vld [vmem:[#allocation30_spill] sm:$0xff]  ;;  %v9317_v9 = vld [vmem:[#allocation31_spill] sm:$0xff] }
 0x97e   : > { %v4662_v7 = vld [vmem:[%s7337_s26 + $0x10] sm:$0xff]  ;;  %v4660_v26 = vld [vmem:[%s7337_s26] sm:$0xff]  ;;  %s9318_s22 = sld [smem:[#allocation70_spill]]  ;;  %v4663_v13 = vld [vmem:[%s7337_s26 + $0x18] sm:$0xff]  ;;  %s8983_s20 = scalar_lea.vmem [#allocation14], %s7309_s23 }
 0x97f   : > { %v1415_v1 = vmul.f32 %v1378_v48, %v9312_v46  ;;  %v1416_v32 = vmul.f32 %v1379_v49, %v9313_v20  ;;  %v1394_v11 = vadd.f32 %v1379_v49, %v1378_v48  ;;  %v4661_v8 = vld [vmem:[%s7337_s26 + $0x8] sm:$0xff]  ;;  %v9319_v31 = vld [vmem:[#allocation28_spill] sm:$0xff]  ;;  %v9320_v25 = vld [vmem:[#allocation29_spill] sm:$0xff]  ;;  %s4899_s23 = sand.u32 1, %s7098_s17   ;;  %s4934_s28 = sshll.u32 %s8983_s20, 4  ;;  %s9048_s28 = int_to_ptr.vmem [resolvable:$true] %s4934_s28 }
 0x980   : > { %v1311_v51 = vpop.permute.xlu1 %1310  ;;  %v8970_v28 = vpop.permute.xlu0 %1340  ;;  %v4666_v36 = vld [vmem:[%s7337_s26 + $0x30] sm:$0xff]  ;;  %v4664_v17 = vld [vmem:[%s7337_s26 + $0x20] sm:$0xff]  ;;  %s9330_s12 = sld [smem:[#allocation72_spill]]  ;;  %s9052_s21 = scalar_lea.sflag [#allocation15], %s4899_s23 }
 0x981   : > { %v1380_v34 = vmul.f32 %v1311_v51, %v9314_v19  ;;  %v1431_v33 = vadd.f32 %v1416_v32, %v1415_v1  ;;  %v4667_v32 = vld [vmem:[%s7337_s26 + $0x38] sm:$0xff]  ;;  %s6877_s11 = scalar_lea.vmem %s9048_s28, 1024 }
 0x982   : > { %p6878_p1 = scmp.ne.s32.totalorder %s9048_s28, %s6877_s11 }
 0x983   : > { %v1417_v21 = vmul.f32 %v1380_v34, %v9314_v19  ;;  %v1395_v2 = vadd.f32 %v1394_v11, %v1380_v34  ;;  %v9321_v19 = vld [vmem:[#allocation34_spill] sm:$0xff] }
 0x984   : > { %v8929_v29 = vpop.permute.xlu1 %1315  ;;  %v8956_v56 = vld [vmem:[%s9318_s22] ss:$0 sm:$0xff]  ;;  %v1386_v34 = vmul.f32 %v8970_v28, %v9321_v19  ;;  %p6879_p2 = pnand %p6878_p1, %p7254_p3  ;;  %s7000_s22 = smov [#allocation14]  }
 0x985   : > { %v1381_v18 = vmul.f32 %v8929_v29, %v9315_v54  ;;  %v1432_v10 = vadd.f32 %v1431_v33, %v1417_v21 }
 0x986   : > { %p6880_p13 = pneg %p6879_p2 }
 0x987   : > { %v1418_v23 = vmul.f32 %v1381_v18, %v9315_v54  ;;  %v1396_v50 = vadd.f32 %v1395_v2, %v1381_v18  ;;  %v4665_v54 = vld [vmem:[%s7337_s26 + $0x28] sm:$0xff] }
 0x988   : > { %v8933_v16 = vpop.permute.xlu1 %1320 }
 0x989   : > { %v1382_v39 = vmul.f32 %v8933_v16, %v9316_v38  ;;  %v1433_v42 = vadd.f32 %v1432_v10, %v1418_v23 }
 0x98b   : > { %v1419_v62 = vmul.f32 %v1382_v39, %v9316_v38  ;;  %v1397_v43 = vadd.f32 %v1396_v50, %v1382_v39  ;;  %v9322_v50 = vld [vmem:[#allocation35_spill] sm:$0xff] }
 0x98c   : > { %v8938_v4 = vpop.permute.xlu1 %1325 }
 0x98d   : > { %v1383_v60 = vmul.f32 %v8938_v4, %v9317_v9  ;;  %v1434_v3 = vadd.f32 %v1433_v42, %v1419_v62 }
 0x98f   : > { %v1420_v45 = vmul.f32 %v1383_v60, %v9317_v9  ;;  %v1398_v58 = vadd.f32 %v1397_v43, %v1383_v60  ;;  %v1351_v43 = vpop.permute.xlu0 %1350 }
 0x990   : > { %v8946_v6 = vpop.permute.xlu1 %1330 }
 0x991   : > { %v1384_v41 = vmul.f32 %v8946_v6, %v9319_v31  ;;  %v1435_v35 = vadd.f32 %v1434_v3, %v1420_v45 }
 0x993   : > { %v1421_v44 = vmul.f32 %v1384_v41, %v9319_v31  ;;  %v1399_v38 = vadd.f32 %v1398_v58, %v1384_v41  ;;  %v1423_v41 = vmul.f32 %v1386_v34, %v9321_v19 }
 0x994   : > { %v8959_v59 = vpop.permute.xlu1 %1335 }
 0x995   : > { %v1385_v61 = vmul.f32 %v8959_v59, %v9320_v25 }
 0x997   : > { %v1422_v46 = vmul.f32 %v1385_v61, %v9320_v25  ;;  %v1400_v31 = vadd.f32 %v1399_v38, %v1385_v61 }
 0x998   : > { %v8977_v48 = vpop.permute.xlu1 %1345 }
 0xa13   : > { %v6153_v0 = vpop.f32.mrb[64].mxu0 }
 0xa14   : > { %v4694_v37 = vadd.f32 %v6153_v0, %v4662_v7  ;;  %v4565_v14 = vpop.f32.mrb[65].mxu0 }
 0xa15   : > { %v4692_v47 = vadd.f32 %v4660_v26, %v4565_v14  ;;  %v6154_v5 = vpop.f32.mrb[66].mxu0  ;;  %v1387_v26 = vmul.f32 %v8977_v48, %v9322_v50 }
 0xa16   : > { %v4717_v24 = vadd.f32 %v8956_v56, %v4694_v37  ;;  %v4695_v63 = vadd.f32 %v6154_v5, %v4663_v13  ;;  %v4568_v53 = vpop.f32.mrb[67].mxu0  ;;  %v8994_v37 = vpop.permute.xlu1 %1355  ;;  %v4670_v5 = vld [vmem:[%s7337_s26 + $0x50] sm:$0xff] }
 0xa17   : > { %v4715_v30 = vadd.f32 %v8956_v56, %v4692_v47  ;;  %v4693_v52 = vadd.f32 %v4661_v8, %v4568_v53  ;;  %v4668_v53 = vld [vmem:[%s7337_s26 + $0x40] sm:$0xff] }
 0xa18   : > { %v4718_v55 = vadd.f32 %v8956_v56, %v4695_v63  ;;  %v4813_v12 = vmul.f32 %v4717_v24, %v1311_v51 }
 0xa19   : > { %v4811_v22 = vmul.f32 %v4715_v30, %v1301_v15  ;;  %v4716_v27 = vadd.f32 %v8956_v56, %v4693_v52  ;;  %v1436_v15 = vadd.f32 %v1435_v35, %v1421_v44 }
 0xa1a   : > { %v5425_v40 = vpack.c.bf16 %v4718_v55, %v4717_v24  ;;  %v4814_v51 = vmul.f32 %v4718_v55, %v8929_v29  ;;  %v4850_v39 = vmul.f32 %v4813_v12, %v4717_v24 }
 0xa1b   : > { %v5420_v20 = vpack.c.bf16 %v4716_v27, %v4715_v30  ;;  %v4812_v49 = vmul.f32 %v4716_v27, %v1306_v57  ;;  %v6157_v1 = vpop.f32.mrb[68].mxu0  ;;  %v4848_v18 = vmul.f32 %v4811_v22, %v4715_v30  ;;  %v1437_v0 = vadd.f32 %v1436_v15, %v1422_v46 }
 0xa1c   : > { %5464 = vst [vmem:[%s8983_s20 + $0x8] sm:$0xff] %v5425_v40   ;;  %v4698_v33 = vadd.f32 %v6157_v1, %v4666_v36  ;;  %v4581_v21 = vpop.f32.mrb[69].mxu0  ;;  %v4851_v13 = vmul.f32 %v4814_v51, %v4718_v55  ;;  %v4671_v55 = vld [vmem:[%s7337_s26 + $0x58] sm:$0xff]  ;;  %v9324_v40 = vld [vmem:[#allocation32_spill] sm:$0xff] }
 0xa1d   : > { %5421 = vst [vmem:[%s8983_s20] sm:$0xff] %v5420_v20   ;;  %v4827_v11 = vadd.f32 %v4812_v49, %v4811_v22  ;;  %v4849_v57 = vmul.f32 %v4812_v49, %v4716_v27  ;;  %v4696_v10 = vadd.f32 %v4664_v17, %v4581_v21  ;;  %v6158_v23 = vpop.f32.mrb[70].mxu0  ;;  %v1424_v22 = vmul.f32 %v1387_v26, %v9322_v50  ;;  %v9323_v27 = vld [vmem:[#allocation33_spill] sm:$0xff]  ;;  %v1361_v50 = vpop.permute.xlu0 %1360 }
 0xa1e   : > { %v4721_v2 = vadd.f32 %v8956_v56, %v4698_v33  ;;  %v4699_v42 = vadd.f32 %v6158_v23, %v4667_v32  ;;  %v4584_v9 = vpop.f32.mrb[71].mxu0  ;;  %v1389_v61 = vmul.f32 %v8994_v37, %v9323_v27  ;;  %v1388_v17 = vmul.f32 %v1351_v43, %v9324_v40 }
 0xa1f   : > { %v4828_v60 = vadd.f32 %v4827_v11, %v4813_v12  ;;  %v4864_v7 = vadd.f32 %v4849_v57, %v4848_v18  ;;  %v4719_v29 = vadd.f32 %v8956_v56, %v4696_v10  ;;  %v4697_v62 = vadd.f32 %v4665_v54, %v4584_v9 }
 0xa20   : > { %v4722_v3 = vadd.f32 %v8956_v56, %v4699_v42  ;;  %v4817_v24 = vmul.f32 %v4721_v2, %v8946_v6  ;;  %v4669_v6 = vld [vmem:[%s7337_s26 + $0x48] sm:$0xff]  ;;  %v1438_v12 = vadd.f32 %v1437_v0, %v1423_v41  ;;  %v1401_v33 = vadd.f32 %v1400_v31, %v1386_v34 }
 0xa21   : > { %v4865_v14 = vadd.f32 %v4864_v7, %v4850_v39  ;;  %v4815_v8 = vmul.f32 %v4719_v29, %v8933_v16  ;;  %v4829_v45 = vadd.f32 %v4828_v60, %v4814_v51  ;;  %v4720_v47 = vadd.f32 %v8956_v56, %v4697_v62 }
 0xa22   : > { %v5435_v63 = vpack.c.bf16 %v4722_v3, %v4721_v2  ;;  %v4818_v1 = vmul.f32 %v4722_v3, %v8959_v59  ;;  %v4854_v21 = vmul.f32 %v4817_v24, %v4721_v2  ;;  %v1439_v23 = vadd.f32 %v1438_v12, %v1424_v22  ;;  %v1371_v22 = vpop.permute.xlu0 %1370 }
 0xa23   : > { %v4830_v25 = vadd.f32 %v4829_v45, %v4815_v8  ;;  %v4852_v30 = vmul.f32 %v4815_v8, %v4719_v29  ;;  %v4866_v52 = vadd.f32 %v4865_v14, %v4851_v13  ;;  %v5430_v35 = vpack.c.bf16 %v4720_v47, %v4719_v29  ;;  %v6161_v16 = vpop.f32.mrb[72].mxu0 }
 0xa24   : > { %5466 = vst [vmem:[%s8983_s20 + $0x18] sm:$0xff] %v5435_v63   ;;  %v4816_v36 = vmul.f32 %v4720_v47, %v8938_v4  ;;  %v4702_v44 = vadd.f32 %v6161_v16, %v4670_v5  ;;  %v4597_v58 = vpop.f32.mrb[73].mxu0  ;;  %v1425_v38 = vmul.f32 %v1388_v17, %v9324_v40  ;;  %v4855_v34 = vmul.f32 %v4818_v1, %v4722_v3 }
 0xa25   : > { %v4867_v46 = vadd.f32 %v4866_v52, %v4852_v30  ;;  %5465 = vst [vmem:[%s8983_s20 + $0x10] sm:$0xff] %v5430_v35   ;;  %v4700_v20 = vadd.f32 %v4668_v53, %v4597_v58  ;;  %v6162_v49 = vpop.f32.mrb[74].mxu0  ;;  %v1402_v60 = vadd.f32 %v1401_v33, %v1387_v26  ;;  %v1426_v5 = vmul.f32 %v1389_v61, %v9323_v27  ;;  %v9325_v26 = vld [vmem:[#allocation38_spill] sm:$0xff]  ;;  %v9326_v35 = vld [vmem:[#allocation39_spill] sm:$0xff] }
 0xa26   : > { %v4831_v32 = vadd.f32 %v4830_v25, %v4816_v36  ;;  %v4853_v15 = vmul.f32 %v4816_v36, %v4720_v47  ;;  %v4703_v19 = vadd.f32 %v6162_v49, %v4671_v55  ;;  %v4600_v51 = vpop.f32.mrb[75].mxu0  ;;  %v4725_v57 = vadd.f32 %v8956_v56, %v4702_v44  ;;  %v4672_v33 = vld [vmem:[%s7337_s26 + $0x60] sm:$0xff] }
 0xa27   : > { %v4723_v4 = vadd.f32 %v8956_v56, %v4700_v20  ;;  %v4701_v54 = vadd.f32 %v4669_v6, %v4600_v51  ;;  %v1440_v8 = vadd.f32 %v1439_v23, %v1425_v38  ;;  %v1403_v31 = vadd.f32 %v1402_v60, %v1388_v17  ;;  %v9327_v6 = vld [vmem:[#allocation36_spill] sm:$0xff] }
 0xa28   : > { %v4832_v18 = vadd.f32 %v4831_v32, %v4817_v24  ;;  %v4868_v11 = vadd.f32 %v4867_v46, %v4853_v15  ;;  %v4726_v10 = vadd.f32 %v8956_v56, %v4703_v19  ;;  %v4821_v0 = vmul.f32 %v4725_v57, %v1351_v43  ;;  %v1366_v24 = vpop.permute.xlu1 %1365  ;;  %v9328_v46 = vld [vmem:[#allocation37_spill] sm:$0xff]  ;;  %v4674_v19 = vld [vmem:[%s7337_s26 + $0x70] sm:$0xff] }
 0xa29   : > { %v4819_v59 = vmul.f32 %v4723_v4, %v8970_v28  ;;  %v4724_v39 = vadd.f32 %v8956_v56, %v4701_v54  ;;  %v1390_v41 = vmul.f32 %v1361_v50, %v9325_v26  ;;  %v1441_v43 = vadd.f32 %v1440_v8, %v1426_v5 }
 0xa2a   : > { %v4869_v2 = vadd.f32 %v4868_v11, %v4854_v21  ;;  %v4833_v42 = vadd.f32 %v4832_v18, %v4818_v1  ;;  %v5445_v9 = vpack.c.bf16 %v4726_v10, %v4725_v57  ;;  %v4822_v47 = vmul.f32 %v4726_v10, %v8994_v37 }
 0xa2b   : > { %v4856_v7 = vmul.f32 %v4819_v59, %v4723_v4  ;;  %v5440_v29 = vpack.c.bf16 %v4724_v39, %v4723_v4  ;;  %v4820_v62 = vmul.f32 %v4724_v39, %v8977_v48  ;;  %v4858_v63 = vmul.f32 %v4821_v0, %v4725_v57  ;;  %v4675_v4 = vld [vmem:[%s7337_s26 + $0x78] sm:$0xff]  ;;  %v4673_v57 = vld [vmem:[%s7337_s26 + $0x68] sm:$0xff]  ;;  %s9329_s26 = sshll.u32 %s7098_s17, 10 }
 0xa2c   : > { %v4834_v13 = vadd.f32 %v4833_v42, %v4819_v59  ;;  %v4870_v14 = vadd.f32 %v4869_v2, %v4855_v34  ;;  %5468 = vst [vmem:[%s8983_s20 + $0x28] sm:$0xff] %v5445_v9   ;;  %v4859_v25 = vmul.f32 %v4822_v47, %v4726_v10  ;;  %v1391_v16 = vmul.f32 %v1366_v24, %v9326_v35  ;;  %v1376_v40 = vpop.permute.xlu1 %1375  ;;  %s9046_s3 = scalar_lea.hbm %s9330_s12, %s9329_s26  ;;  %s6881_s26 = sshll.u32 %s7000_s22, 4  ;;  %s6882_s26 = int_to_ptr.vmem [resolvable:$false] %s6881_s26 }
 0xa2d   : > { %5467 = vst [vmem:[%s8983_s20 + $0x20] sm:$0xff] %v5440_v29   ;;  %v4857_v28 = vmul.f32 %v4820_v62, %v4724_v39  ;;  %v1404_v55 = vadd.f32 %v1403_v31, %v1389_v61  ;;  %v1427_v37 = vmul.f32 %v1390_v41, %v9325_v26  ;;  %v1392_v12 = vmul.f32 %v1371_v22, %v9327_v6  ;;  %s6883_s19 = scalar_lea.vmem %s6882_s26, 2048  ;;  %p6884_p9 = scmp.lt.s32.totalorder %s9048_s28, %s6882_s26 }
 0xa2e   : > { %v4871_v45 = vadd.f32 %v4870_v14, %v4856_v7  ;;  %v4835_v3 = vadd.f32 %v4834_v13, %v4820_v62  ;;  %v1428_v44 = vmul.f32 %v1391_v16, %v9326_v35  ;;  %v1393_v20 = vmul.f32 %v1376_v40, %v9328_v46  ;;  %p6885_p0 = scmp.lt.s32.totalorder %s6883_s19, %s6877_s11 }
 0xa2f   : > { %v1442_v36 = vadd.f32 %v1441_v43, %v1427_v37  ;;  %v1405_v58 = vadd.f32 %v1404_v55, %v1390_v41  ;;  %v1429_v61 = vmul.f32 %v1392_v12, %v9327_v6 }
 0xa30   : > { %v4836_v48 = vadd.f32 %v4835_v3, %v4821_v0  ;;  %v4872_v53 = vadd.f32 %v4871_v45, %v4857_v28  ;;  %v1430_v32 = vmul.f32 %v1393_v20, %v9328_v46  ;;  %p6886_p11 = por %p6885_p0, %p6884_p9 }
 0xa31   : > { %v1443_v17 = vadd.f32 %v1442_v36, %v1428_v44  ;;  %v1406_v49 = vadd.f32 %v1405_v58, %v1391_v16 }
 0xa32   : > { %v4873_v30 = vadd.f32 %v4872_v53, %v4858_v63  ;;  %v4837_v52 = vadd.f32 %v4836_v48, %v4822_v47  ;;  %p6887_p6 = pnand %p6886_p11, %p6880_p13 }
 0xa33   : > { %v1444_v1 = vadd.f32 %v1443_v17, %v1429_v61  ;;  %v1407_v15 = vadd.f32 %v1406_v49, %v1392_v12 }
 0xa34   : > { %v4874_v27 = vadd.f32 %v4873_v30, %v4859_v25 }
 0xa35   : > { %v1445_v51 = vadd.f32 %v1444_v1, %v1430_v32  ;;  %v1408_v54 = vadd.f32 %v1407_v15, %v1393_v20 }
 0xa37   : > { %v1446_v38 = vrot.slane %v1445_v51, 4  ;;  %v1409_v9 = vrot.slane %v1408_v54, 4 }
 0xa39   : > { %v1447_v62 = vadd.f32 %v1446_v38, %v1445_v51 }
 0xa3b   : > { %v1448_v31 = vrot.slane %v1447_v62, 2 }
 0xa42   : > { %v6165_v21 = vpop.f32.mrb[76].mxu0 }
 0xa43   : > { %v4706_v18 = vadd.f32 %v6165_v21, %v4674_v19  ;;  %v4613_v11 = vpop.f32.mrb[77].mxu0 }
 0xa44   : > { %v4704_v10 = vadd.f32 %v4672_v33, %v4613_v11  ;;  %v6166_v23 = vpop.f32.mrb[78].mxu0 }
 0xa45   : > { %v4729_v59 = vadd.f32 %v8956_v56, %v4706_v18  ;;  %v4707_v39 = vadd.f32 %v6166_v23, %v4675_v4  ;;  %v4616_v34 = vpop.f32.mrb[79].mxu0 }
 0xa46   : > { %v4727_v2 = vadd.f32 %v8956_v56, %v4704_v10  ;;  %v4705_v42 = vadd.f32 %v4673_v57, %v4616_v34 }
 0xa47   : > { %v4730_v60 = vadd.f32 %v8956_v56, %v4707_v39  ;;  %v4825_v0 = vmul.f32 %v4729_v59, %v1371_v22 }
 0xa48   : > { %v4823_v7 = vmul.f32 %v4727_v2, %v1361_v50  ;;  %v4728_v29 = vadd.f32 %v8956_v56, %v4705_v42  ;;  %v1410_v50 = vadd.f32 %v1409_v9, %v1408_v54 }
 0xa49   : > { %v5455_v13 = vpack.c.bf16 %v4730_v60, %v4729_v59  ;;  %v4826_v47 = vmul.f32 %v4730_v60, %v1376_v40 }
 0xa4a   : > { %v4838_v14 = vadd.f32 %v4837_v52, %v4823_v7  ;;  %v4860_v8 = vmul.f32 %v4823_v7, %v4727_v2  ;;  %v5450_v28 = vpack.c.bf16 %v4728_v29, %v4727_v2  ;;  %v4824_v45 = vmul.f32 %v4728_v29, %v1366_v24 }
 0xa4b   : > { %5470 = vst [vmem:[%s8983_s20 + $0x38] sm:$0xff] %v5455_v13  }
 0xa4c   : > { %v4875_v56 = vadd.f32 %v4874_v27, %v4860_v8  ;;  %5469 = vst [vmem:[%s8983_s20 + $0x30] sm:$0xff] %v5450_v28   ;;  %v4839_v3 = vadd.f32 %v4838_v14, %v4824_v45  ;;  %v4861_v5 = vmul.f32 %v4824_v45, %v4728_v29 }
 0xa4d   : > { %6890 = shalt.err (!%p6887_p6)
}
 0xa4e   : > { %s6891_s20 = scalar_lea.hbm %s9046_s3, 1024  ;;  %s6895_s22 = scalar_lea.hbm %s9330_s12, 2048 }
 0xa4f   : > { %p6892_p4 = scmp.ne.s32.totalorder %s9046_s3, %s6891_s20  ;;  %p6896_p5 = scmp.lt.u32.totalorder %s9046_s3, %s9330_s12 }
 0xa50   : > { %p6897_p7 = scmp.lt.u32.totalorder %s6895_s22, %s6891_s20  ;;  %p6899_p1 = scmp.lt.u32.totalorder %s6891_s20, %s9046_s3 }
 0xa51   : > { %p6893_p8 = pnand %p6892_p4, %p7254_p3 }
 0xa52   : > { %p6898_p12 = por %p6897_p7, %p6896_p5 }
 0xa53   : > { %p6894_p10 = pneg %p6893_p8 }
 0xa54   : > { %p6900_p2 = por %p6899_p1, %p6898_p12 }
 0xa56   : > { %p6901_p13 = pnand %p6900_p2, %p6894_p10 }
 0xa58   : > { %6904 = shalt.err (!%p6901_p13)
}
 0xa59   : > { %s9331_s11 = smov 4   ;;  %v4862_v26 = vmul.f32 %v4825_v0, %v4729_v59  ;;  %v4840_v41 = vadd.f32 %v4839_v3, %v4825_v0  ;;  %v4876_v24 = vadd.f32 %v4875_v56, %v4861_v5  ;;  %v1411_v63 = vrot.slane %v1410_v50, 2  ;;  %s5170_s24 = sshll.u32 %s7306_s27, 3 }
 0xa5a   : > { %6282 = dma.vmem_to_hbm [thread:$0]  (%p7254_p3), %s9048_s28, 1024, %s9046_s3, %s9052_s21, %s9311_s25, %s9311_s25, %s9331_s11   ;;  %v4863_v48 = vmul.f32 %v4826_v47, %v4730_v60  ;;  %v1449_v25 = vadd.f32 %v1448_v31, %v1447_v62  ;;  %vm4885_vm3 = vcmask 1040384   ;;  %vm4887_vm4 = vcmask 1041408  }
 0xa5b   : > { %v4841_v53 = vadd.f32 %v4840_v41, %v4826_v47  ;;  %v4877_v43 = vadd.f32 %v4876_v24, %v4862_v26  ;;  %v1412_v35 = vadd.f32 %v1411_v63, %v1410_v50  ;;  %vm4889_vm5 = vcmask 1042432   ;;  %s5337_s25 = sshll.u32 %s7098_s17, 7  ;;  %s602_s28 = scalar_lea.vmem [#allocation16], %s5170_s24 }
 0xa5c   : > { %v1450_v37 = vrot.slane %v1449_v25, 1  ;;  %s4950_s3 = sshll.u32 %s602_s28, 4  ;;  %vm4891_vm6 = vcmask 1043456   ;;  %s9332_s20 = sld [smem:[#allocation73_spill]]  ;;  %s9086_s3 = int_to_ptr.vmem [resolvable:$true] %s4950_s3 }
 0xa5d   : > { %v4842_v30 = vrot.slane %v4841_v53, 4  ;;  %v4878_v52 = vadd.f32 %v4877_v43, %v4863_v48  ;;  %v1413_v36 = vrot.slane %v1412_v35, 1  ;;  %s6905_s4 = scalar_lea.vmem %s9086_s3, 128  ;;  %s7001_s17 = smov [#allocation16]  }
 0xa5e   : > { %v1451_v6 = vadd.f32 %v1450_v37, %v1449_v25  ;;  %p6906_p9 = scmp.ne.s32.totalorder %s9086_s3, %s6905_s4  ;;  %s6909_s22 = sshll.u32 %s7001_s17, 4  ;;  %s6910_s22 = int_to_ptr.vmem [resolvable:$false] %s6909_s22 }
 0xa5f   : > { %v4843_v16 = vadd.f32 %v4842_v30, %v4841_v53  ;;  %v4879_v55 = vrot.slane %v4878_v52, 4  ;;  %v1414_v17 = vadd.f32 %v1413_v36, %v1412_v35  ;;  %s6911_s26 = scalar_lea.vmem %s6910_s22, 256  ;;  %p6912_p6 = scmp.lt.s32.totalorder %s9086_s3, %s6910_s22 }
 0xa60   : > { %p6907_p0 = pnand %p6906_p9, %p7254_p3  ;;  %p6913_p4 = scmp.lt.s32.totalorder %s6911_s26, %s6905_s4 }
 0xa61   : > { %v4844_v22 = vrot.slane %v4843_v16, 2  ;;  %v4880_v27 = vadd.f32 %v4879_v55, %v4878_v52  ;;  %v4886_v49 = vsel %vm4885_vm3, %v1414_v17, %v1451_v6 }
 0xa62   : > { %s9084_s23 = scalar_lea.hbm %s9332_s20, %s5337_s25  ;;  %p6908_p11 = pneg %p6907_p0 }
 0xa63   : > { %v4845_v44 = vadd.f32 %v4844_v22, %v4843_v16  ;;  %v4881_v58 = vrot.slane %v4880_v27, 2  ;;  %p6914_p8 = por %p6913_p4, %p6912_p6 }
 0xa65   : > { %v4846_v12 = vrot.slane %v4845_v44, 1  ;;  %v4882_v40 = vadd.f32 %v4881_v58, %v4880_v27  ;;  %p6915_p10 = pnand %p6914_p8, %p6908_p11 }
 0xa67   : > { %v4847_v46 = vadd.f32 %v4846_v12, %v4845_v44  ;;  %v4883_v20 = vrot.slane %v4882_v40, 1 }
 0xa69   : > { %v4884_v61 = vadd.f32 %v4883_v20, %v4882_v40  ;;  %v4888_v1 = vsel %vm4887_vm4, %v4886_v49, %v4847_v46 }
 0xa6b   : > { %v4890_v32 = vsel %vm4889_vm5, %v4888_v1, %v4884_v61 }
 0xa6c   : > { %v4892_v15 = vsel %vm4891_vm6, %v4890_v32, 0.0 }
 0xa6d   : > { %4893 = vst [vmem:[%s602_s28] sm:$0xff] %v4892_v15 }
 0xa6e   : > { %6918 = shalt.err (!%p6915_p10)
}
 0xa6f   : > { %s6919_s11 = scalar_lea.hbm %s9084_s23, 128  ;;  %s6923_s28 = scalar_lea.hbm %s9332_s20, 256 }
 0xa70   : > { %p6920_p5 = scmp.ne.s32.totalorder %s9084_s23, %s6919_s11  ;;  %p6924_p1 = scmp.lt.u32.totalorder %s9084_s23, %s9332_s20 }
 0xa71   : > { %p6925_p2 = scmp.lt.u32.totalorder %s6923_s28, %s6919_s11  ;;  %p6927_p9 = scmp.lt.u32.totalorder %s6919_s11, %s9084_s23 }
 0xa72   : > { %p6921_p7 = pnand %p6920_p5, %p7254_p3 }
 0xa73   : > { %p6926_p13 = por %p6925_p2, %p6924_p1 }
 0xa74   : > { %p6922_p12 = pneg %p6921_p7 }
 0xa75   : > { %p6928_p0 = por %p6927_p9, %p6926_p13 }
 0xa77   : > { %p6929_p11 = pnand %p6928_p0, %p6922_p12 }
 0xa79   : > { %6932 = shalt.err (!%p6929_p11)
}
 0xa7a   : > { %6283 = dma.vmem_to_hbm [thread:$0]  (%p7254_p3), %s9086_s3, 128, %s9084_s23, %s9052_s21  }
 0xa7b PF: > { %s9333_s4 = sld [smem:[#allocation22_spill]]  ;;  %s9334_s17 = sld [smem:[#allocation23_spill]] }
 0xa7c   : > { %p9336_p4 = scmp.ge.s32.totalorder %s6983_s16, 2 }
 0xa81   : > { %s4962_s22 = sand.u32 1, %s9333_s4   ;;  %p9335_p6 = scmp.ne.s32.totalorder %s9334_s17, 0 }
 0xa82   : > { %s4963_s26 = scalar_lea.sflag [#allocation6], %s4962_s22 }
 0xa83   : > { %p6305_p8 = pnand %p9336_p4, %p9335_p6 }
 0xa85   : > { %6962 = dma.done.wait (!%p6305_p8), %s4963_s26, 1024  }
 0xa86   : > { %6964 = vsyncadd (!%p6305_p8), %s4963_s26, 4294966272  ;;  %s9337_s11 = sadd.s32 4294967294, %s6983_s16  }
 0xa87   : > { %s4971_s24 = sand.u32 1, %s9337_s11  }
 0xa88   : > { %s4972_s25 = scalar_lea.sflag [#allocation15], %s4971_s24 }
 0xa89   : > { %6966 = dma.done.wait (!%p6305_p8), %s4972_s25, 1152  }
 0xa8a   : > { %6968 = vsyncadd (!%p6305_p8), %s4972_s25, 4294966144  ;;  %s9338_s18 = smov %s7241_s29  ;;  %p33_p3 = scmp.ge.s32.totalorder %s7241_s29, 4  }
 0xa8b   : > { %s9339_s29 = smov %s6975_s30  ;;  %s9340_s30 = smov %s6979_s15 }
 0xa8c   : > { %s9341_s15 = smov %s7250_s13  ;;  %s9342_s16 = smov %s9338_s18 }
 0xa8d   :  { %35 = sbr.rel (!%p33_p3) target bundleno = 16 (0x10), region = 170 }
 0xa94   :  { %4986 = vsyncpa [#allocation5], 1 }
 0xa95   :  { %4988 = vsyncpa [#allocation5 + $0x1], 1 }
 0xa96   :  { %4989 = vsyncpa [#allocation8], 1 }
 0xa97   :  { %4990 = vsyncpa [#allocation11], 1 }
 0xa98   :  { %4991 = vsyncpa [#allocation6], 1 }
 0xa99   :  { %4993 = vsyncpa [#allocation6 + $0x1], 1 }
 0xa9a   :  { %4994 = vsyncpa [#allocation15], 1 }
 0xa9b   :  { %4996 = vsyncpa [#allocation15 + $0x1], 1 }

</bundles_post_ra>
